<compile_context>
chip_gen: v6e
topology: v6e:2x2x1
jax: 0.10.0
libtpu: 0.0.40
codegen_flags: <defaults>
</compile_context>

<pallas_src>
import functools

import numpy as np
import jax
import jax.numpy as jnp
from jax.experimental import pallas as pl
from jax.experimental.pallas import tpu as pltpu


def _round_up(x, m):
    return ((x + m - 1) // m) * m


# ----------------------------------------------------------------------------
# Fused Pallas kernel: the whole Generator forward in ONE pallas_call.
# ----------------------------------------------------------------------------
def generator_kernel(x_ref, w_ref, s_ref, m_ref, out_ref, act_a, act_b, *,
                     bn_flags, k, Wp, F_col, counts, eps):
    """All four ConvTranspose2d(+BN+ReLU) layers, fully resident in VMEM.

    x_ref  : (Cmax, F_ext)        channel-major, zero-haloed flat grid input
    w_ref  : (L, k*k, Cmax, Cmax) per-tap weight matrices W_t[co, ci]
    s_ref  : (L, Cmax, 4)         columns: [bias, gamma, beta, unused]
    m_ref  : (L, 1, F_col)        0/1 interior mask of each layer's output
    out_ref: (Cmax, F_col)        last layer output (garbage outside interior)
    act_a/b: (Cmax, F_ext)        ping-pong activation slabs (VMEM scratch)
    """
    Cmax = out_ref.shape[0]

    # Zero the ping-pong scratches once: exterior / tail columns must stay 0
    # so the zero halo the shifted-slice convolution relies on is valid.
    act_a[...] = jnp.zeros(act_a.shape, act_a.dtype)
    act_b[...] = jnp.zeros(act_b.shape, act_b.dtype)

    ones_col = jnp.ones((F_col, 1), jnp.float32)

    cur = x_ref
    scratch = (act_a, act_b)
    for li, bn_relu in enumerate(bn_flags):
        # Transposed conv == full conv with flipped taps on the zero-haloed
        # grid.  In flat lane coordinates a tap (kh, kw) is a static lane
        # shift of kh*Wp + kw, so the layer is k*k small MXU matmuls
        # accumulated in f32 (exact for interior positions; exterior masked).
        acc = None
        for kh in range(k):
            for kw in range(k):
                t = kh * k + kw
                s = kh * Wp + kw
                w_t = w_ref[li, t]                          # (Cmax, Cmax)
                xs = cur[:, s:s + F_col]                    # (Cmax, F_col)
                d = jnp.dot(w_t, xs, preferred_element_type=jnp.float32)
                acc = d if acc is None else acc + d

        svec = s_ref[li]                                    # (Cmax, 4)
        if bn_relu:
            mask = m_ref[li]                                # (1, F_col)
            acc = acc * mask                                # zero exterior cols
            inv_n = 1.0 / counts[li]
            # Channel sums / sums-of-squares on the MXU (one pass each).
            s1 = jnp.dot(acc, ones_col, preferred_element_type=jnp.float32)
            s2 = jnp.dot(acc * acc, ones_col,
                         preferred_element_type=jnp.float32)
            mean = s1 * inv_n                               # (Cmax, 1)
            var = s2 * inv_n - mean * mean                  # biased variance
            # Conv bias omitted: a per-channel constant cancels in (x - mean).
            scale = svec[:, 1:2] * jax.lax.rsqrt(var + eps)
            shift = svec[:, 2:3] - mean * scale
            y = jnp.maximum(acc * scale + shift, 0.0) * mask
            dst = scratch[li % 2]
            dst[:, 0:F_col] = y                             # lane-aligned store
            cur = dst
        else:
            # Final layer: conv bias only, no BN/ReLU.  Exterior columns hold
            # garbage; the wrapper slices out the interior.
            out_ref[...] = (acc + svec[:, 0:1]).astype(out_ref.dtype)


# ----------------------------------------------------------------------------
# One-time (hoisted) parameter preprocessing: flip taps, pack per-tap weight
# matrices and (bias, gamma, beta) for all layers into single arrays.
# ----------------------------------------------------------------------------
def pack_generator_params(params, kernel_size):
    k = kernel_size
    L = len(params)
    cmax = max(max(int(p["w"].shape[0]), int(p["w"].shape[1])) for p in params)
    cmax = _round_up(cmax, 8)                   # sublane-aligned channel dim

    w_slab = np.zeros((L, k * k, cmax, cmax), np.float32)
    s_slab = np.zeros((L, cmax, 4), np.float32)
    cfgs = []
    for li, p in enumerate(params):
        w = np.asarray(p["w"], np.float32)      # (cin, cout, k, k)
        cin, cout = int(w.shape[0]), int(w.shape[1])
        wf = w[:, :, ::-1, ::-1]                # spatial flip
        # W_t[co, ci] = w[ci, co, k-1-kh, k-1-kw],  t = kh*k + kw
        wt = np.transpose(wf, (2, 3, 1, 0)).reshape(k * k, cout, cin)
        w_slab[li, :, :cout, :cin] = wt
        s_slab[li, :cout, 0] = np.asarray(p["b"], np.float32)
        s_slab[li, :cout, 1] = np.asarray(p["gamma"], np.float32)
        s_slab[li, :cout, 2] = np.asarray(p["beta"], np.float32)
        cfgs.append((cin, cout, li < L - 1))
    return jnp.asarray(w_slab), jnp.asarray(s_slab), tuple(cfgs)


# ----------------------------------------------------------------------------
# Generator forward (NCHW in / NCHW out, matching PyTorch)
# ----------------------------------------------------------------------------
def generator_forward(x_nchw, w_packed, s_packed, *, layer_cfgs, kernel_size):
    N, c0, H0, W0 = x_nchw.shape
    k = kernel_size
    L = len(layer_cfgs)
    Cmax = int(w_packed.shape[-1])
    c_out = layer_cfgs[-1][1]

    # Fixed zero-haloed grid shared by all layers: layer li input sits at
    # offset (pad_off - li*(k-1)); every layer keeps >= k-1 halo on all sides.
    pad_off = L * (k - 1)
    Hp = H0 + (L + 1) * (k - 1)
    Wp = W0 + (L + 1) * (k - 1)
    F_grid = N * Hp * Wp
    F_col = _round_up(F_grid, 128)              # lane-dense slab width
    s_max = (k - 1) * Wp + (k - 1)              # largest tap lane shift
    F_ext = _round_up(F_col + s_max, 128)       # activation slab width
    Hf, Wf = H0 + L * (k - 1), W0 + L * (k - 1)

    # Interior masks + element counts per layer output (compile-time consts).
    masks = np.zeros((L, 1, F_col), np.float32)
    counts = []
    for li in range(L):
        off = pad_off - (li + 1) * (k - 1)
        sh = H0 + (li + 1) * (k - 1)
        sw = W0 + (li + 1) * (k - 1)
        m = np.zeros((N, Hp, Wp), np.float32)
        m[:, off:off + sh, off:off + sw] = 1.0
        masks[li, 0, :F_grid] = m.reshape(-1)
        counts.append(float(N * sh * sw))
    masks = jnp.asarray(masks)

    # Lane-dense channel-major gridded input (layout plumbing stays in XLA).
    xg = jnp.transpose(x_nchw, (1, 0, 2, 3)).astype(jnp.float32)  # (c0,N,H,W)
    xg = jnp.pad(xg, ((0, Cmax - c0), (0, 0),
                      (pad_off, Hp - pad_off - H0),
                      (pad_off, Wp - pad_off - W0)))
    xg = xg.reshape(Cmax, F_grid)
    xg = jnp.pad(xg, ((0, 0), (0, F_ext - F_grid)))

    kernel = functools.partial(
        generator_kernel,
        bn_flags=tuple(c[2] for c in layer_cfgs),
        k=k, Wp=Wp, F_col=F_col, counts=tuple(counts), eps=1e-5)

    out2d = pl.pallas_call(
        kernel,
        out_shape=jax.ShapeDtypeStruct((Cmax, F_col), jnp.float32),
        grid=(1,),
        in_specs=[
            pl.BlockSpec((Cmax, F_ext), lambda i: (0, 0)),
            pl.BlockSpec(tuple(w_packed.shape), lambda i: (0, 0, 0, 0)),
            pl.BlockSpec(tuple(s_packed.shape), lambda i: (0, 0, 0)),
            pl.BlockSpec((L, 1, F_col), lambda i: (0, 0, 0)),
        ],
        out_specs=pl.BlockSpec((Cmax, F_col), lambda i: (0, 0)),
        scratch_shapes=[
            pltpu.VMEM((Cmax, F_ext), jnp.float32),
            pltpu.VMEM((Cmax, F_ext), jnp.float32),
        ],
        compiler_params=pltpu.CompilerParams(
            dimension_semantics=("arbitrary",)),
    )(xg, w_packed, s_packed, masks)

    # Extract the final interior (offset 0, size Hf x Wf) and go back to NCHW.
    out = out2d[:c_out, :F_grid].reshape(c_out, N, Hp, Wp)[:, :, :Hf, :Wf]
    return jnp.transpose(out, (1, 0, 2, 3))


# ----------------------------------------------------------------------------
# Pure-JAX reference (direct transposed-conv definition, independent math)
# ----------------------------------------------------------------------------
def convT_ref_nchw(x, w, b):
    N, Cin, H, W = x.shape
    Cout, k = w.shape[1], w.shape[2]
    y = jnp.zeros((N, Cout, H + k - 1, W + k - 1), jnp.float32)
    for kh in range(k):
        for kw in range(k):
            contrib = jnp.einsum('nchw,cd->ndhw', x, w[:, :, kh, kw])
            y = y.at[:, :, kh:kh + H, kw:kw + W].add(contrib)
    return y + b[None, :, None, None]


def bn_relu_ref_nchw(x, gamma, beta, eps=1e-5):
    mean = jnp.mean(x, axis=(0, 2, 3), keepdims=True)
    var = jnp.mean((x - mean) ** 2, axis=(0, 2, 3), keepdims=True)
    y = (x - mean) * jax.lax.rsqrt(var + eps)
    y = y * gamma[None, :, None, None] + beta[None, :, None, None]
    return jnp.maximum(y, 0.0)


def generator_ref(x_nchw, params):
    x = x_nchw
    n_layers = len(params)
    for li, p in enumerate(params):
        x = convT_ref_nchw(x, p["w"], p["b"])
        if li < n_layers - 1:
            x = bn_relu_ref_nchw(x, p["gamma"], p["beta"])
    return x


# ----------------------------------------------------------------------------
# Deterministic parameter init (shapes per Generator.__init__)
# ----------------------------------------------------------------------------
def init_params(key, in_channels, h_channels, out_channels, kernel_size):
    chans = [(in_channels, h_channels), (h_channels, h_channels),
             (h_channels, h_channels), (h_channels, out_channels)]
    params = []
    for (cin, cout) in chans:
        key, kw_, kb_ = jax.random.split(key, 3)
        # ConvTranspose2d weight shape in PyTorch: (Cin, Cout, k, k)
        w = 0.1 * jax.random.normal(kw_, (cin, cout, kernel_size, kernel_size),
                                    jnp.float32)
        b = 0.1 * jax.random.normal(kb_, (cout,), jnp.float32)
        gamma = jnp.ones((cout,), jnp.float32)    # BatchNorm2d default init
        beta = jnp.zeros((cout,), jnp.float32)
        params.append({"w": w, "b": b, "gamma": gamma, "beta": beta})
    return params


if __name__ == "__main__":
    in_channels, h_channels, out_channels, kernel_size = 4, 8, 4, 3
    N, H, W = 2, 8, 8

    key = jax.random.PRNGKey(0)
    key, kx = jax.random.split(key)
    x = jax.random.normal(kx, (N, in_channels, H, W), jnp.float32)
    params = init_params(key, in_channels, h_channels, out_channels,
                         kernel_size)

    # Hoisted, one-time weight packing (not in the forward path).
    w_packed, s_packed, layer_cfgs = pack_generator_params(params, kernel_size)

    fwd = jax.jit(functools.partial(generator_forward,
                                    layer_cfgs=layer_cfgs,
                                    kernel_size=kernel_size))
    out = fwd(x, w_packed, s_packed)
    out = jax.block_until_ready(out)

    ref = generator_ref(x, params)
    assert out.shape == (N, out_channels, H + 4 * (kernel_size - 1),
                         W + 4 * (kernel_size - 1)), out.shape
    assert jnp.allclose(out, ref, atol=1e-3, rtol=1e-3), (
        float(jnp.max(jnp.abs(out - ref))))

    print("KERNEL_OK")
</pallas_src>

<mosaic_0001>
module attributes {stable_mosaic.version = 11 : i64} {
  func.func @generator_kernel(%arg0: i32, %arg1: memref<8x896xf32, #tpu.memory_space<vmem>>, %arg2: memref<4x9x8x8xf32, #tpu.memory_space<vmem>>, %arg3: memref<4x8x4xf32, #tpu.memory_space<vmem>>, %arg4: memref<4x1x768xf32, #tpu.memory_space<vmem>>, %arg5: memref<8x768xf32, #tpu.memory_space<vmem>>, %arg6: memref<8x896xf32, #tpu.memory_space<vmem>>, %arg7: memref<8x896xf32, #tpu.memory_space<vmem>>) attributes {dimension_semantics = [#tpu.dimension_semantics<arbitrary>], iteration_bounds = array<i64: 1>, scalar_prefetch = 0 : i64, scratch_operands = 2 : i64, tpu.core_type = #tpu.core_type<tc>, window_params = [{pipeline_mode = #tpu.pipeline_mode<synchronous>, transform_indices = @transform_0, window_bounds = array<i64: 8, 896>}, {pipeline_mode = #tpu.pipeline_mode<synchronous>, transform_indices = @transform_1, window_bounds = array<i64: 4, 9, 8, 8>}, {pipeline_mode = #tpu.pipeline_mode<synchronous>, transform_indices = @transform_2, window_bounds = array<i64: 4, 8, 4>}, {pipeline_mode = #tpu.pipeline_mode<synchronous>, transform_indices = @transform_3, window_bounds = array<i64: 4, 1, 768>}, {pipeline_mode = #tpu.pipeline_mode<synchronous>, transform_indices = @transform_4, window_bounds = array<i64: 8, 768>}]} {
    %cst = arith.constant 0.000000e+00 : f32
    %0 = vector.broadcast %cst : f32 to vector<8x896xf32>
    %c0 = arith.constant 0 : index
    %c0_0 = arith.constant 0 : index
    %1 = vector.load %arg6[%c0, %c0_0] : memref<8x896xf32, #tpu.memory_space<vmem>>, vector<8x896xf32>
    tpu.vector_store %arg6[%c0, %c0_0], %0 {strides = array<i32>} : memref<8x896xf32, #tpu.memory_space<vmem>>, vector<8x896xf32>,
    %cst_1 = arith.constant 0.000000e+00 : f32
    %2 = vector.broadcast %cst_1 : f32 to vector<8x896xf32>
    %c0_2 = arith.constant 0 : index
    %c0_3 = arith.constant 0 : index
    %3 = vector.load %arg7[%c0_2, %c0_3] : memref<8x896xf32, #tpu.memory_space<vmem>>, vector<8x896xf32>
    tpu.vector_store %arg7[%c0_2, %c0_3], %2 {strides = array<i32>} : memref<8x896xf32, #tpu.memory_space<vmem>>, vector<8x896xf32>,
    %cst_4 = arith.constant 1.000000e+00 : f32
    %4 = vector.broadcast %cst_4 : f32 to vector<768x1xf32>
    %c0_5 = arith.constant 0 : index
    %c0_6 = arith.constant 0 : index
    %c0_7 = arith.constant 0 : index
    %c0_8 = arith.constant 0 : index
    %5 = vector.load %arg2[%c0_5, %c0_6, %c0_7, %c0_8] : memref<4x9x8x8xf32, #tpu.memory_space<vmem>>, vector<1x1x8x8xf32>
    %6 = vector.shape_cast %5 : vector<1x1x8x8xf32> to vector<8x8xf32>
    %c0_9 = arith.constant 0 : index
    %c0_10 = arith.constant 0 : index
    %7 = vector.load %arg1[%c0_9, %c0_10] : memref<8x896xf32, #tpu.memory_space<vmem>>, vector<8x768xf32>
    %cst_11 = arith.constant dense<0.000000e+00> : vector<8x768xf32>
    %8 = tpu.matmul %6, %7, %cst_11 {dimension_numbers = #tpu.dot_dimension_numbers<[1], [0], [0], [1], [0, 0, 1, 1], [], []>} : vector<8x8xf32>, vector<8x768xf32>, vector<8x768xf32> -> vector<8x768xf32>
    %c0_12 = arith.constant 0 : index
    %c1 = arith.constant 1 : index
    %c0_13 = arith.constant 0 : index
    %c0_14 = arith.constant 0 : index
    %9 = vector.load %arg2[%c0_12, %c1, %c0_13, %c0_14] : memref<4x9x8x8xf32, #tpu.memory_space<vmem>>, vector<1x1x8x8xf32>
    %10 = vector.shape_cast %9 : vector<1x1x8x8xf32> to vector<8x8xf32>
    %c0_15 = arith.constant 0 : index
    %c1_16 = arith.constant 1 : index
    %11 = vector.load %arg1[%c0_15, %c1_16] : memref<8x896xf32, #tpu.memory_space<vmem>>, vector<8x768xf32>
    %cst_17 = arith.constant dense<0.000000e+00> : vector<8x768xf32>
    %12 = tpu.matmul %10, %11, %cst_17 {dimension_numbers = #tpu.dot_dimension_numbers<[1], [0], [0], [1], [0, 0, 1, 1], [], []>} : vector<8x8xf32>, vector<8x768xf32>, vector<8x768xf32> -> vector<8x768xf32>
    %13 = arith.addf %8, %12 : vector<8x768xf32>
    %c0_18 = arith.constant 0 : index
    %c2 = arith.constant 2 : index
    %c0_19 = arith.constant 0 : index
    %c0_20 = arith.constant 0 : index
    %14 = vector.load %arg2[%c0_18, %c2, %c0_19, %c0_20] : memref<4x9x8x8xf32, #tpu.memory_space<vmem>>, vector<1x1x8x8xf32>
    %15 = vector.shape_cast %14 : vector<1x1x8x8xf32> to vector<8x8xf32>
    %c0_21 = arith.constant 0 : index
    %c2_22 = arith.constant 2 : index
    %16 = vector.load %arg1[%c0_21, %c2_22] : memref<8x896xf32, #tpu.memory_space<vmem>>, vector<8x768xf32>
    %cst_23 = arith.constant dense<0.000000e+00> : vector<8x768xf32>
    %17 = tpu.matmul %15, %16, %cst_23 {dimension_numbers = #tpu.dot_dimension_numbers<[1], [0], [0], [1], [0, 0, 1, 1], [], []>} : vector<8x8xf32>, vector<8x768xf32>, vector<8x768xf32> -> vector<8x768xf32>
    %18 = arith.addf %13, %17 : vector<8x768xf32>
    %c0_24 = arith.constant 0 : index
    %c3 = arith.constant 3 : index
    %c0_25 = arith.constant 0 : index
    %c0_26 = arith.constant 0 : index
    %19 = vector.load %arg2[%c0_24, %c3, %c0_25, %c0_26] : memref<4x9x8x8xf32, #tpu.memory_space<vmem>>, vector<1x1x8x8xf32>
    %20 = vector.shape_cast %19 : vector<1x1x8x8xf32> to vector<8x8xf32>
    %c0_27 = arith.constant 0 : index
    %c18 = arith.constant 18 : index
    %21 = vector.load %arg1[%c0_27, %c18] : memref<8x896xf32, #tpu.memory_space<vmem>>, vector<8x768xf32>
    %cst_28 = arith.constant dense<0.000000e+00> : vector<8x768xf32>
    %22 = tpu.matmul %20, %21, %cst_28 {dimension_numbers = #tpu.dot_dimension_numbers<[1], [0], [0], [1], [0, 0, 1, 1], [], []>} : vector<8x8xf32>, vector<8x768xf32>, vector<8x768xf32> -> vector<8x768xf32>
    %23 = arith.addf %18, %22 : vector<8x768xf32>
    %c0_29 = arith.constant 0 : index
    %c4 = arith.constant 4 : index
    %c0_30 = arith.constant 0 : index
    %c0_31 = arith.constant 0 : index
    %24 = vector.load %arg2[%c0_29, %c4, %c0_30, %c0_31] : memref<4x9x8x8xf32, #tpu.memory_space<vmem>>, vector<1x1x8x8xf32>
    %25 = vector.shape_cast %24 : vector<1x1x8x8xf32> to vector<8x8xf32>
    %c0_32 = arith.constant 0 : index
    %c19 = arith.constant 19 : index
    %26 = vector.load %arg1[%c0_32, %c19] : memref<8x896xf32, #tpu.memory_space<vmem>>, vector<8x768xf32>
    %cst_33 = arith.constant dense<0.000000e+00> : vector<8x768xf32>
    %27 = tpu.matmul %25, %26, %cst_33 {dimension_numbers = #tpu.dot_dimension_numbers<[1], [0], [0], [1], [0, 0, 1, 1], [], []>} : vector<8x8xf32>, vector<8x768xf32>, vector<8x768xf32> -> vector<8x768xf32>
    %28 = arith.addf %23, %27 : vector<8x768xf32>
    %c0_34 = arith.constant 0 : index
    %c5 = arith.constant 5 : index
    %c0_35 = arith.constant 0 : index
    %c0_36 = arith.constant 0 : index
    %29 = vector.load %arg2[%c0_34, %c5, %c0_35, %c0_36] : memref<4x9x8x8xf32, #tpu.memory_space<vmem>>, vector<1x1x8x8xf32>
    %30 = vector.shape_cast %29 : vector<1x1x8x8xf32> to vector<8x8xf32>
    %c0_37 = arith.constant 0 : index
    %c20 = arith.constant 20 : index
    %31 = vector.load %arg1[%c0_37, %c20] : memref<8x896xf32, #tpu.memory_space<vmem>>, vector<8x768xf32>
    %cst_38 = arith.constant dense<0.000000e+00> : vector<8x768xf32>
    %32 = tpu.matmul %30, %31, %cst_38 {dimension_numbers = #tpu.dot_dimension_numbers<[1], [0], [0], [1], [0, 0, 1, 1], [], []>} : vector<8x8xf32>, vector<8x768xf32>, vector<8x768xf32> -> vector<8x768xf32>
    %33 = arith.addf %28, %32 : vector<8x768xf32>
    %c0_39 = arith.constant 0 : index
    %c6 = arith.constant 6 : index
    %c0_40 = arith.constant 0 : index
    %c0_41 = arith.constant 0 : index
    %34 = vector.load %arg2[%c0_39, %c6, %c0_40, %c0_41] : memref<4x9x8x8xf32, #tpu.memory_space<vmem>>, vector<1x1x8x8xf32>
    %35 = vector.shape_cast %34 : vector<1x1x8x8xf32> to vector<8x8xf32>
    %c0_42 = arith.constant 0 : index
    %c36 = arith.constant 36 : index
    %36 = vector.load %arg1[%c0_42, %c36] : memref<8x896xf32, #tpu.memory_space<vmem>>, vector<8x768xf32>
    %cst_43 = arith.constant dense<0.000000e+00> : vector<8x768xf32>
    %37 = tpu.matmul %35, %36, %cst_43 {dimension_numbers = #tpu.dot_dimension_numbers<[1], [0], [0], [1], [0, 0, 1, 1], [], []>} : vector<8x8xf32>, vector<8x768xf32>, vector<8x768xf32> -> vector<8x768xf32>
    %38 = arith.addf %33, %37 : vector<8x768xf32>
    %c0_44 = arith.constant 0 : index
    %c7 = arith.constant 7 : index
    %c0_45 = arith.constant 0 : index
    %c0_46 = arith.constant 0 : index
    %39 = vector.load %arg2[%c0_44, %c7, %c0_45, %c0_46] : memref<4x9x8x8xf32, #tpu.memory_space<vmem>>, vector<1x1x8x8xf32>
    %40 = vector.shape_cast %39 : vector<1x1x8x8xf32> to vector<8x8xf32>
    %c0_47 = arith.constant 0 : index
    %c37 = arith.constant 37 : index
    %41 = vector.load %arg1[%c0_47, %c37] : memref<8x896xf32, #tpu.memory_space<vmem>>, vector<8x768xf32>
    %cst_48 = arith.constant dense<0.000000e+00> : vector<8x768xf32>
    %42 = tpu.matmul %40, %41, %cst_48 {dimension_numbers = #tpu.dot_dimension_numbers<[1], [0], [0], [1], [0, 0, 1, 1], [], []>} : vector<8x8xf32>, vector<8x768xf32>, vector<8x768xf32> -> vector<8x768xf32>
    %43 = arith.addf %38, %42 : vector<8x768xf32>
    %c0_49 = arith.constant 0 : index
    %c8 = arith.constant 8 : index
    %c0_50 = arith.constant 0 : index
    %c0_51 = arith.constant 0 : index
    %44 = vector.load %arg2[%c0_49, %c8, %c0_50, %c0_51] : memref<4x9x8x8xf32, #tpu.memory_space<vmem>>, vector<1x1x8x8xf32>
    %45 = vector.shape_cast %44 : vector<1x1x8x8xf32> to vector<8x8xf32>
    %c0_52 = arith.constant 0 : index
    %c38 = arith.constant 38 : index
    %46 = vector.load %arg1[%c0_52, %c38] : memref<8x896xf32, #tpu.memory_space<vmem>>, vector<8x768xf32>
    %cst_53 = arith.constant dense<0.000000e+00> : vector<8x768xf32>
    %47 = tpu.matmul %45, %46, %cst_53 {dimension_numbers = #tpu.dot_dimension_numbers<[1], [0], [0], [1], [0, 0, 1, 1], [], []>} : vector<8x8xf32>, vector<8x768xf32>, vector<8x768xf32> -> vector<8x768xf32>
    %48 = arith.addf %43, %47 : vector<8x768xf32>
    %c0_54 = arith.constant 0 : index
    %c0_55 = arith.constant 0 : index
    %c0_56 = arith.constant 0 : index
    %49 = vector.load %arg3[%c0_54, %c0_55, %c0_56] : memref<4x8x4xf32, #tpu.memory_space<vmem>>, vector<1x8x4xf32>
    %50 = vector.shape_cast %49 : vector<1x8x4xf32> to vector<8x4xf32>
    %c0_57 = arith.constant 0 : index
    %c0_58 = arith.constant 0 : index
    %c0_59 = arith.constant 0 : index
    %51 = vector.load %arg4[%c0_57, %c0_58, %c0_59] : memref<4x1x768xf32, #tpu.memory_space<vmem>>, vector<1x1x768xf32>
    %52 = vector.shape_cast %51 : vector<1x1x768xf32> to vector<1x768xf32>
    %53 = vector.broadcast %52 : vector<1x768xf32> to vector<8x768xf32>
    %54 = arith.mulf %48, %53 : vector<8x768xf32>
    %cst_60 = arith.constant dense<0.000000e+00> : vector<8x1xf32>
    %55 = tpu.matmul %54, %4, %cst_60 {dimension_numbers = #tpu.dot_dimension_numbers<[1], [0], [0], [1], [0, 0, 1, 1], [], []>} : vector<8x768xf32>, vector<768x1xf32>, vector<8x1xf32> -> vector<8x1xf32>
    %56 = arith.mulf %54, %54 : vector<8x768xf32>
    %cst_61 = arith.constant dense<0.000000e+00> : vector<8x1xf32>
    %57 = tpu.matmul %56, %4, %cst_61 {dimension_numbers = #tpu.dot_dimension_numbers<[1], [0], [0], [1], [0, 0, 1, 1], [], []>} : vector<8x768xf32>, vector<768x1xf32>, vector<8x1xf32> -> vector<8x1xf32>
    %cst_62 = arith.constant 5.000000e-03 : f32
    %58 = vector.broadcast %cst_62 : f32 to vector<8x1xf32>
    %59 = arith.mulf %55, %58 : vector<8x1xf32>
    %cst_63 = arith.constant 5.000000e-03 : f32
    %60 = vector.broadcast %cst_63 : f32 to vector<8x1xf32>
    %61 = arith.mulf %57, %60 : vector<8x1xf32>
    %62 = arith.mulf %59, %59 : vector<8x1xf32>
    %63 = arith.subf %61, %62 : vector<8x1xf32>
    %64 = vector.extract_strided_slice %50 {offsets = [0, 1], sizes = [8, 1], strides = [1, 1]} : vector<8x4xf32> to vector<8x1xf32>
    %cst_64 = arith.constant 9.99999974E-6 : f32
    %65 = vector.broadcast %cst_64 : f32 to vector<8x1xf32>
    %66 = arith.addf %63, %65 : vector<8x1xf32>
    %67 = math.rsqrt %66 : vector<8x1xf32>
    %68 = arith.mulf %64, %67 : vector<8x1xf32>
    %69 = vector.extract_strided_slice %50 {offsets = [0, 2], sizes = [8, 1], strides = [1, 1]} : vector<8x4xf32> to vector<8x1xf32>
    %70 = arith.mulf %59, %68 : vector<8x1xf32>
    %71 = arith.subf %69, %70 : vector<8x1xf32>
    %72 = vector.broadcast %68 : vector<8x1xf32> to vector<8x768xf32>
    %73 = arith.mulf %54, %72 : vector<8x768xf32>
    %74 = vector.broadcast %71 : vector<8x1xf32> to vector<8x768xf32>
    %75 = arith.addf %73, %74 : vector<8x768xf32>
    %cst_65 = arith.constant 0.000000e+00 : f32
    %76 = vector.broadcast %cst_65 : f32 to vector<8x768xf32>
    %77 = arith.maximumf %75, %76 : vector<8x768xf32>
    %78 = vector.broadcast %52 : vector<1x768xf32> to vector<8x768xf32>
    %79 = arith.mulf %77, %78 : vector<8x768xf32>
    %c0_66 = arith.constant 0 : index
    %c0_67 = arith.constant 0 : index
    %80 = vector.load %arg6[%c0_66, %c0_67] : memref<8x896xf32, #tpu.memory_space<vmem>>, vector<8x768xf32>
    tpu.vector_store %arg6[%c0_66, %c0_67], %79 {strides = array<i32>} : memref<8x896xf32, #tpu.memory_space<vmem>>, vector<8x768xf32>,
    %c1_68 = arith.constant 1 : index
    %c0_69 = arith.constant 0 : index
    %c0_70 = arith.constant 0 : index
    %c0_71 = arith.constant 0 : index
    %81 = vector.load %arg2[%c1_68, %c0_69, %c0_70, %c0_71] : memref<4x9x8x8xf32, #tpu.memory_space<vmem>>, vector<1x1x8x8xf32>
    %82 = vector.shape_cast %81 : vector<1x1x8x8xf32> to vector<8x8xf32>
    %c0_72 = arith.constant 0 : index
    %c0_73 = arith.constant 0 : index
    %83 = vector.load %arg6[%c0_72, %c0_73] : memref<8x896xf32, #tpu.memory_space<vmem>>, vector<8x768xf32>
    %cst_74 = arith.constant dense<0.000000e+00> : vector<8x768xf32>
    %84 = tpu.matmul %82, %83, %cst_74 {dimension_numbers = #tpu.dot_dimension_numbers<[1], [0], [0], [1], [0, 0, 1, 1], [], []>} : vector<8x8xf32>, vector<8x768xf32>, vector<8x768xf32> -> vector<8x768xf32>
    %c1_75 = arith.constant 1 : index
    %c1_76 = arith.constant 1 : index
    %c0_77 = arith.constant 0 : index
    %c0_78 = arith.constant 0 : index
    %85 = vector.load %arg2[%c1_75, %c1_76, %c0_77, %c0_78] : memref<4x9x8x8xf32, #tpu.memory_space<vmem>>, vector<1x1x8x8xf32>
    %86 = vector.shape_cast %85 : vector<1x1x8x8xf32> to vector<8x8xf32>
    %c0_79 = arith.constant 0 : index
    %c1_80 = arith.constant 1 : index
    %87 = vector.load %arg6[%c0_79, %c1_80] : memref<8x896xf32, #tpu.memory_space<vmem>>, vector<8x768xf32>
    %cst_81 = arith.constant dense<0.000000e+00> : vector<8x768xf32>
    %88 = tpu.matmul %86, %87, %cst_81 {dimension_numbers = #tpu.dot_dimension_numbers<[1], [0], [0], [1], [0, 0, 1, 1], [], []>} : vector<8x8xf32>, vector<8x768xf32>, vector<8x768xf32> -> vector<8x768xf32>
    %89 = arith.addf %84, %88 : vector<8x768xf32>
    %c1_82 = arith.constant 1 : index
    %c2_83 = arith.constant 2 : index
    %c0_84 = arith.constant 0 : index
    %c0_85 = arith.constant 0 : index
    %90 = vector.load %arg2[%c1_82, %c2_83, %c0_84, %c0_85] : memref<4x9x8x8xf32, #tpu.memory_space<vmem>>, vector<1x1x8x8xf32>
    %91 = vector.shape_cast %90 : vector<1x1x8x8xf32> to vector<8x8xf32>
    %c0_86 = arith.constant 0 : index
    %c2_87 = arith.constant 2 : index
    %92 = vector.load %arg6[%c0_86, %c2_87] : memref<8x896xf32, #tpu.memory_space<vmem>>, vector<8x768xf32>
    %cst_88 = arith.constant dense<0.000000e+00> : vector<8x768xf32>
    %93 = tpu.matmul %91, %92, %cst_88 {dimension_numbers = #tpu.dot_dimension_numbers<[1], [0], [0], [1], [0, 0, 1, 1], [], []>} : vector<8x8xf32>, vector<8x768xf32>, vector<8x768xf32> -> vector<8x768xf32>
    %94 = arith.addf %89, %93 : vector<8x768xf32>
    %c1_89 = arith.constant 1 : index
    %c3_90 = arith.constant 3 : index
    %c0_91 = arith.constant 0 : index
    %c0_92 = arith.constant 0 : index
    %95 = vector.load %arg2[%c1_89, %c3_90, %c0_91, %c0_92] : memref<4x9x8x8xf32, #tpu.memory_space<vmem>>, vector<1x1x8x8xf32>
    %96 = vector.shape_cast %95 : vector<1x1x8x8xf32> to vector<8x8xf32>
    %c0_93 = arith.constant 0 : index
    %c18_94 = arith.constant 18 : index
    %97 = vector.load %arg6[%c0_93, %c18_94] : memref<8x896xf32, #tpu.memory_space<vmem>>, vector<8x768xf32>
    %cst_95 = arith.constant dense<0.000000e+00> : vector<8x768xf32>
    %98 = tpu.matmul %96, %97, %cst_95 {dimension_numbers = #tpu.dot_dimension_numbers<[1], [0], [0], [1], [0, 0, 1, 1], [], []>} : vector<8x8xf32>, vector<8x768xf32>, vector<8x768xf32> -> vector<8x768xf32>
    %99 = arith.addf %94, %98 : vector<8x768xf32>
    %c1_96 = arith.constant 1 : index
    %c4_97 = arith.constant 4 : index
    %c0_98 = arith.constant 0 : index
    %c0_99 = arith.constant 0 : index
    %100 = vector.load %arg2[%c1_96, %c4_97, %c0_98, %c0_99] : memref<4x9x8x8xf32, #tpu.memory_space<vmem>>, vector<1x1x8x8xf32>
    %101 = vector.shape_cast %100 : vector<1x1x8x8xf32> to vector<8x8xf32>
    %c0_100 = arith.constant 0 : index
    %c19_101 = arith.constant 19 : index
    %102 = vector.load %arg6[%c0_100, %c19_101] : memref<8x896xf32, #tpu.memory_space<vmem>>, vector<8x768xf32>
    %cst_102 = arith.constant dense<0.000000e+00> : vector<8x768xf32>
    %103 = tpu.matmul %101, %102, %cst_102 {dimension_numbers = #tpu.dot_dimension_numbers<[1], [0], [0], [1], [0, 0, 1, 1], [], []>} : vector<8x8xf32>, vector<8x768xf32>, vector<8x768xf32> -> vector<8x768xf32>
    %104 = arith.addf %99, %103 : vector<8x768xf32>
    %c1_103 = arith.constant 1 : index
    %c5_104 = arith.constant 5 : index
    %c0_105 = arith.constant 0 : index
    %c0_106 = arith.constant 0 : index
    %105 = vector.load %arg2[%c1_103, %c5_104, %c0_105, %c0_106] : memref<4x9x8x8xf32, #tpu.memory_space<vmem>>, vector<1x1x8x8xf32>
    %106 = vector.shape_cast %105 : vector<1x1x8x8xf32> to vector<8x8xf32>
    %c0_107 = arith.constant 0 : index
    %c20_108 = arith.constant 20 : index
    %107 = vector.load %arg6[%c0_107, %c20_108] : memref<8x896xf32, #tpu.memory_space<vmem>>, vector<8x768xf32>
    %cst_109 = arith.constant dense<0.000000e+00> : vector<8x768xf32>
    %108 = tpu.matmul %106, %107, %cst_109 {dimension_numbers = #tpu.dot_dimension_numbers<[1], [0], [0], [1], [0, 0, 1, 1], [], []>} : vector<8x8xf32>, vector<8x768xf32>, vector<8x768xf32> -> vector<8x768xf32>
    %109 = arith.addf %104, %108 : vector<8x768xf32>
    %c1_110 = arith.constant 1 : index
    %c6_111 = arith.constant 6 : index
    %c0_112 = arith.constant 0 : index
    %c0_113 = arith.constant 0 : index
    %110 = vector.load %arg2[%c1_110, %c6_111, %c0_112, %c0_113] : memref<4x9x8x8xf32, #tpu.memory_space<vmem>>, vector<1x1x8x8xf32>
    %111 = vector.shape_cast %110 : vector<1x1x8x8xf32> to vector<8x8xf32>
    %c0_114 = arith.constant 0 : index
    %c36_115 = arith.constant 36 : index
    %112 = vector.load %arg6[%c0_114, %c36_115] : memref<8x896xf32, #tpu.memory_space<vmem>>, vector<8x768xf32>
    %cst_116 = arith.constant dense<0.000000e+00> : vector<8x768xf32>
    %113 = tpu.matmul %111, %112, %cst_116 {dimension_numbers = #tpu.dot_dimension_numbers<[1], [0], [0], [1], [0, 0, 1, 1], [], []>} : vector<8x8xf32>, vector<8x768xf32>, vector<8x768xf32> -> vector<8x768xf32>
    %114 = arith.addf %109, %113 : vector<8x768xf32>
    %c1_117 = arith.constant 1 : index
    %c7_118 = arith.constant 7 : index
    %c0_119 = arith.constant 0 : index
    %c0_120 = arith.constant 0 : index
    %115 = vector.load %arg2[%c1_117, %c7_118, %c0_119, %c0_120] : memref<4x9x8x8xf32, #tpu.memory_space<vmem>>, vector<1x1x8x8xf32>
    %116 = vector.shape_cast %115 : vector<1x1x8x8xf32> to vector<8x8xf32>
    %c0_121 = arith.constant 0 : index
    %c37_122 = arith.constant 37 : index
    %117 = vector.load %arg6[%c0_121, %c37_122] : memref<8x896xf32, #tpu.memory_space<vmem>>, vector<8x768xf32>
    %cst_123 = arith.constant dense<0.000000e+00> : vector<8x768xf32>
    %118 = tpu.matmul %116, %117, %cst_123 {dimension_numbers = #tpu.dot_dimension_numbers<[1], [0], [0], [1], [0, 0, 1, 1], [], []>} : vector<8x8xf32>, vector<8x768xf32>, vector<8x768xf32> -> vector<8x768xf32>
    %119 = arith.addf %114, %118 : vector<8x768xf32>
    %c1_124 = arith.constant 1 : index
    %c8_125 = arith.constant 8 : index
    %c0_126 = arith.constant 0 : index
    %c0_127 = arith.constant 0 : index
    %120 = vector.load %arg2[%c1_124, %c8_125, %c0_126, %c0_127] : memref<4x9x8x8xf32, #tpu.memory_space<vmem>>, vector<1x1x8x8xf32>
    %121 = vector.shape_cast %120 : vector<1x1x8x8xf32> to vector<8x8xf32>
    %c0_128 = arith.constant 0 : index
    %c38_129 = arith.constant 38 : index
    %122 = vector.load %arg6[%c0_128, %c38_129] : memref<8x896xf32, #tpu.memory_space<vmem>>, vector<8x768xf32>
    %cst_130 = arith.constant dense<0.000000e+00> : vector<8x768xf32>
    %123 = tpu.matmul %121, %122, %cst_130 {dimension_numbers = #tpu.dot_dimension_numbers<[1], [0], [0], [1], [0, 0, 1, 1], [], []>} : vector<8x8xf32>, vector<8x768xf32>, vector<8x768xf32> -> vector<8x768xf32>
    %124 = arith.addf %119, %123 : vector<8x768xf32>
    %c1_131 = arith.constant 1 : index
    %c0_132 = arith.constant 0 : index
    %c0_133 = arith.constant 0 : index
    %125 = vector.load %arg3[%c1_131, %c0_132, %c0_133] : memref<4x8x4xf32, #tpu.memory_space<vmem>>, vector<1x8x4xf32>
    %126 = vector.shape_cast %125 : vector<1x8x4xf32> to vector<8x4xf32>
    %c1_134 = arith.constant 1 : index
    %c0_135 = arith.constant 0 : index
    %c0_136 = arith.constant 0 : index
    %127 = vector.load %arg4[%c1_134, %c0_135, %c0_136] : memref<4x1x768xf32, #tpu.memory_space<vmem>>, vector<1x1x768xf32>
    %128 = vector.shape_cast %127 : vector<1x1x768xf32> to vector<1x768xf32>
    %129 = vector.broadcast %128 : vector<1x768xf32> to vector<8x768xf32>
    %130 = arith.mulf %124, %129 : vector<8x768xf32>
    %cst_137 = arith.constant dense<0.000000e+00> : vector<8x1xf32>
    %131 = tpu.matmul %130, %4, %cst_137 {dimension_numbers = #tpu.dot_dimension_numbers<[1], [0], [0], [1], [0, 0, 1, 1], [], []>} : vector<8x768xf32>, vector<768x1xf32>, vector<8x1xf32> -> vector<8x1xf32>
    %132 = arith.mulf %130, %130 : vector<8x768xf32>
    %cst_138 = arith.constant dense<0.000000e+00> : vector<8x1xf32>
    %133 = tpu.matmul %132, %4, %cst_138 {dimension_numbers = #tpu.dot_dimension_numbers<[1], [0], [0], [1], [0, 0, 1, 1], [], []>} : vector<8x768xf32>, vector<768x1xf32>, vector<8x1xf32> -> vector<8x1xf32>
    %cst_139 = arith.constant 0.00347222225 : f32
    %134 = vector.broadcast %cst_139 : f32 to vector<8x1xf32>
    %135 = arith.mulf %131, %134 : vector<8x1xf32>
    %cst_140 = arith.constant 0.00347222225 : f32
    %136 = vector.broadcast %cst_140 : f32 to vector<8x1xf32>
    %137 = arith.mulf %133, %136 : vector<8x1xf32>
    %138 = arith.mulf %135, %135 : vector<8x1xf32>
    %139 = arith.subf %137, %138 : vector<8x1xf32>
    %140 = vector.extract_strided_slice %126 {offsets = [0, 1], sizes = [8, 1], strides = [1, 1]} : vector<8x4xf32> to vector<8x1xf32>
    %cst_141 = arith.constant 9.99999974E-6 : f32
    %141 = vector.broadcast %cst_141 : f32 to vector<8x1xf32>
    %142 = arith.addf %139, %141 : vector<8x1xf32>
    %143 = math.rsqrt %142 : vector<8x1xf32>
    %144 = arith.mulf %140, %143 : vector<8x1xf32>
    %145 = vector.extract_strided_slice %126 {offsets = [0, 2], sizes = [8, 1], strides = [1, 1]} : vector<8x4xf32> to vector<8x1xf32>
    %146 = arith.mulf %135, %144 : vector<8x1xf32>
    %147 = arith.subf %145, %146 : vector<8x1xf32>
    %148 = vector.broadcast %144 : vector<8x1xf32> to vector<8x768xf32>
    %149 = arith.mulf %130, %148 : vector<8x768xf32>
    %150 = vector.broadcast %147 : vector<8x1xf32> to vector<8x768xf32>
    %151 = arith.addf %149, %150 : vector<8x768xf32>
    %cst_142 = arith.constant 0.000000e+00 : f32
    %152 = vector.broadcast %cst_142 : f32 to vector<8x768xf32>
    %153 = arith.maximumf %151, %152 : vector<8x768xf32>
    %154 = vector.broadcast %128 : vector<1x768xf32> to vector<8x768xf32>
    %155 = arith.mulf %153, %154 : vector<8x768xf32>
    %c0_143 = arith.constant 0 : index
    %c0_144 = arith.constant 0 : index
    %156 = vector.load %arg7[%c0_143, %c0_144] : memref<8x896xf32, #tpu.memory_space<vmem>>, vector<8x768xf32>
    tpu.vector_store %arg7[%c0_143, %c0_144], %155 {strides = array<i32>} : memref<8x896xf32, #tpu.memory_space<vmem>>, vector<8x768xf32>,
    %c2_145 = arith.constant 2 : index
    %c0_146 = arith.constant 0 : index
    %c0_147 = arith.constant 0 : index
    %c0_148 = arith.constant 0 : index
    %157 = vector.load %arg2[%c2_145, %c0_146, %c0_147, %c0_148] : memref<4x9x8x8xf32, #tpu.memory_space<vmem>>, vector<1x1x8x8xf32>
    %158 = vector.shape_cast %157 : vector<1x1x8x8xf32> to vector<8x8xf32>
    %c0_149 = arith.constant 0 : index
    %c0_150 = arith.constant 0 : index
    %159 = vector.load %arg7[%c0_149, %c0_150] : memref<8x896xf32, #tpu.memory_space<vmem>>, vector<8x768xf32>
    %cst_151 = arith.constant dense<0.000000e+00> : vector<8x768xf32>
    %160 = tpu.matmul %158, %159, %cst_151 {dimension_numbers = #tpu.dot_dimension_numbers<[1], [0], [0], [1], [0, 0, 1, 1], [], []>} : vector<8x8xf32>, vector<8x768xf32>, vector<8x768xf32> -> vector<8x768xf32>
    %c2_152 = arith.constant 2 : index
    %c1_153 = arith.constant 1 : index
    %c0_154 = arith.constant 0 : index
    %c0_155 = arith.constant 0 : index
    %161 = vector.load %arg2[%c2_152, %c1_153, %c0_154, %c0_155] : memref<4x9x8x8xf32, #tpu.memory_space<vmem>>, vector<1x1x8x8xf32>
    %162 = vector.shape_cast %161 : vector<1x1x8x8xf32> to vector<8x8xf32>
    %c0_156 = arith.constant 0 : index
    %c1_157 = arith.constant 1 : index
    %163 = vector.load %arg7[%c0_156, %c1_157] : memref<8x896xf32, #tpu.memory_space<vmem>>, vector<8x768xf32>
    %cst_158 = arith.constant dense<0.000000e+00> : vector<8x768xf32>
    %164 = tpu.matmul %162, %163, %cst_158 {dimension_numbers = #tpu.dot_dimension_numbers<[1], [0], [0], [1], [0, 0, 1, 1], [], []>} : vector<8x8xf32>, vector<8x768xf32>, vector<8x768xf32> -> vector<8x768xf32>
    %165 = arith.addf %160, %164 : vector<8x768xf32>
    %c2_159 = arith.constant 2 : index
    %c2_160 = arith.constant 2 : index
    %c0_161 = arith.constant 0 : index
    %c0_162 = arith.constant 0 : index
    %166 = vector.load %arg2[%c2_159, %c2_160, %c0_161, %c0_162] : memref<4x9x8x8xf32, #tpu.memory_space<vmem>>, vector<1x1x8x8xf32>
    %167 = vector.shape_cast %166 : vector<1x1x8x8xf32> to vector<8x8xf32>
    %c0_163 = arith.constant 0 : index
    %c2_164 = arith.constant 2 : index
    %168 = vector.load %arg7[%c0_163, %c2_164] : memref<8x896xf32, #tpu.memory_space<vmem>>, vector<8x768xf32>
    %cst_165 = arith.constant dense<0.000000e+00> : vector<8x768xf32>
    %169 = tpu.matmul %167, %168, %cst_165 {dimension_numbers = #tpu.dot_dimension_numbers<[1], [0], [0], [1], [0, 0, 1, 1], [], []>} : vector<8x8xf32>, vector<8x768xf32>, vector<8x768xf32> -> vector<8x768xf32>
    %170 = arith.addf %165, %169 : vector<8x768xf32>
    %c2_166 = arith.constant 2 : index
    %c3_167 = arith.constant 3 : index
    %c0_168 = arith.constant 0 : index
    %c0_169 = arith.constant 0 : index
    %171 = vector.load %arg2[%c2_166, %c3_167, %c0_168, %c0_169] : memref<4x9x8x8xf32, #tpu.memory_space<vmem>>, vector<1x1x8x8xf32>
    %172 = vector.shape_cast %171 : vector<1x1x8x8xf32> to vector<8x8xf32>
    %c0_170 = arith.constant 0 : index
    %c18_171 = arith.constant 18 : index
    %173 = vector.load %arg7[%c0_170, %c18_171] : memref<8x896xf32, #tpu.memory_space<vmem>>, vector<8x768xf32>
    %cst_172 = arith.constant dense<0.000000e+00> : vector<8x768xf32>
    %174 = tpu.matmul %172, %173, %cst_172 {dimension_numbers = #tpu.dot_dimension_numbers<[1], [0], [0], [1], [0, 0, 1, 1], [], []>} : vector<8x8xf32>, vector<8x768xf32>, vector<8x768xf32> -> vector<8x768xf32>
    %175 = arith.addf %170, %174 : vector<8x768xf32>
    %c2_173 = arith.constant 2 : index
    %c4_174 = arith.constant 4 : index
    %c0_175 = arith.constant 0 : index
    %c0_176 = arith.constant 0 : index
    %176 = vector.load %arg2[%c2_173, %c4_174, %c0_175, %c0_176] : memref<4x9x8x8xf32, #tpu.memory_space<vmem>>, vector<1x1x8x8xf32>
    %177 = vector.shape_cast %176 : vector<1x1x8x8xf32> to vector<8x8xf32>
    %c0_177 = arith.constant 0 : index
    %c19_178 = arith.constant 19 : index
    %178 = vector.load %arg7[%c0_177, %c19_178] : memref<8x896xf32, #tpu.memory_space<vmem>>, vector<8x768xf32>
    %cst_179 = arith.constant dense<0.000000e+00> : vector<8x768xf32>
    %179 = tpu.matmul %177, %178, %cst_179 {dimension_numbers = #tpu.dot_dimension_numbers<[1], [0], [0], [1], [0, 0, 1, 1], [], []>} : vector<8x8xf32>, vector<8x768xf32>, vector<8x768xf32> -> vector<8x768xf32>
    %180 = arith.addf %175, %179 : vector<8x768xf32>
    %c2_180 = arith.constant 2 : index
    %c5_181 = arith.constant 5 : index
    %c0_182 = arith.constant 0 : index
    %c0_183 = arith.constant 0 : index
    %181 = vector.load %arg2[%c2_180, %c5_181, %c0_182, %c0_183] : memref<4x9x8x8xf32, #tpu.memory_space<vmem>>, vector<1x1x8x8xf32>
    %182 = vector.shape_cast %181 : vector<1x1x8x8xf32> to vector<8x8xf32>
    %c0_184 = arith.constant 0 : index
    %c20_185 = arith.constant 20 : index
    %183 = vector.load %arg7[%c0_184, %c20_185] : memref<8x896xf32, #tpu.memory_space<vmem>>, vector<8x768xf32>
    %cst_186 = arith.constant dense<0.000000e+00> : vector<8x768xf32>
    %184 = tpu.matmul %182, %183, %cst_186 {dimension_numbers = #tpu.dot_dimension_numbers<[1], [0], [0], [1], [0, 0, 1, 1], [], []>} : vector<8x8xf32>, vector<8x768xf32>, vector<8x768xf32> -> vector<8x768xf32>
    %185 = arith.addf %180, %184 : vector<8x768xf32>
    %c2_187 = arith.constant 2 : index
    %c6_188 = arith.constant 6 : index
    %c0_189 = arith.constant 0 : index
    %c0_190 = arith.constant 0 : index
    %186 = vector.load %arg2[%c2_187, %c6_188, %c0_189, %c0_190] : memref<4x9x8x8xf32, #tpu.memory_space<vmem>>, vector<1x1x8x8xf32>
    %187 = vector.shape_cast %186 : vector<1x1x8x8xf32> to vector<8x8xf32>
    %c0_191 = arith.constant 0 : index
    %c36_192 = arith.constant 36 : index
    %188 = vector.load %arg7[%c0_191, %c36_192] : memref<8x896xf32, #tpu.memory_space<vmem>>, vector<8x768xf32>
    %cst_193 = arith.constant dense<0.000000e+00> : vector<8x768xf32>
    %189 = tpu.matmul %187, %188, %cst_193 {dimension_numbers = #tpu.dot_dimension_numbers<[1], [0], [0], [1], [0, 0, 1, 1], [], []>} : vector<8x8xf32>, vector<8x768xf32>, vector<8x768xf32> -> vector<8x768xf32>
    %190 = arith.addf %185, %189 : vector<8x768xf32>
    %c2_194 = arith.constant 2 : index
    %c7_195 = arith.constant 7 : index
    %c0_196 = arith.constant 0 : index
    %c0_197 = arith.constant 0 : index
    %191 = vector.load %arg2[%c2_194, %c7_195, %c0_196, %c0_197] : memref<4x9x8x8xf32, #tpu.memory_space<vmem>>, vector<1x1x8x8xf32>
    %192 = vector.shape_cast %191 : vector<1x1x8x8xf32> to vector<8x8xf32>
    %c0_198 = arith.constant 0 : index
    %c37_199 = arith.constant 37 : index
    %193 = vector.load %arg7[%c0_198, %c37_199] : memref<8x896xf32, #tpu.memory_space<vmem>>, vector<8x768xf32>
    %cst_200 = arith.constant dense<0.000000e+00> : vector<8x768xf32>
    %194 = tpu.matmul %192, %193, %cst_200 {dimension_numbers = #tpu.dot_dimension_numbers<[1], [0], [0], [1], [0, 0, 1, 1], [], []>} : vector<8x8xf32>, vector<8x768xf32>, vector<8x768xf32> -> vector<8x768xf32>
    %195 = arith.addf %190, %194 : vector<8x768xf32>
    %c2_201 = arith.constant 2 : index
    %c8_202 = arith.constant 8 : index
    %c0_203 = arith.constant 0 : index
    %c0_204 = arith.constant 0 : index
    %196 = vector.load %arg2[%c2_201, %c8_202, %c0_203, %c0_204] : memref<4x9x8x8xf32, #tpu.memory_space<vmem>>, vector<1x1x8x8xf32>
    %197 = vector.shape_cast %196 : vector<1x1x8x8xf32> to vector<8x8xf32>
    %c0_205 = arith.constant 0 : index
    %c38_206 = arith.constant 38 : index
    %198 = vector.load %arg7[%c0_205, %c38_206] : memref<8x896xf32, #tpu.memory_space<vmem>>, vector<8x768xf32>
    %cst_207 = arith.constant dense<0.000000e+00> : vector<8x768xf32>
    %199 = tpu.matmul %197, %198, %cst_207 {dimension_numbers = #tpu.dot_dimension_numbers<[1], [0], [0], [1], [0, 0, 1, 1], [], []>} : vector<8x8xf32>, vector<8x768xf32>, vector<8x768xf32> -> vector<8x768xf32>
    %200 = arith.addf %195, %199 : vector<8x768xf32>
    %c2_208 = arith.constant 2 : index
    %c0_209 = arith.constant 0 : index
    %c0_210 = arith.constant 0 : index
    %201 = vector.load %arg3[%c2_208, %c0_209, %c0_210] : memref<4x8x4xf32, #tpu.memory_space<vmem>>, vector<1x8x4xf32>
    %202 = vector.shape_cast %201 : vector<1x8x4xf32> to vector<8x4xf32>
    %c2_211 = arith.constant 2 : index
    %c0_212 = arith.constant 0 : index
    %c0_213 = arith.constant 0 : index
    %203 = vector.load %arg4[%c2_211, %c0_212, %c0_213] : memref<4x1x768xf32, #tpu.memory_space<vmem>>, vector<1x1x768xf32>
    %204 = vector.shape_cast %203 : vector<1x1x768xf32> to vector<1x768xf32>
    %205 = vector.broadcast %204 : vector<1x768xf32> to vector<8x768xf32>
    %206 = arith.mulf %200, %205 : vector<8x768xf32>
    %cst_214 = arith.constant dense<0.000000e+00> : vector<8x1xf32>
    %207 = tpu.matmul %206, %4, %cst_214 {dimension_numbers = #tpu.dot_dimension_numbers<[1], [0], [0], [1], [0, 0, 1, 1], [], []>} : vector<8x768xf32>, vector<768x1xf32>, vector<8x1xf32> -> vector<8x1xf32>
    %208 = arith.mulf %206, %206 : vector<8x768xf32>
    %cst_215 = arith.constant dense<0.000000e+00> : vector<8x1xf32>
    %209 = tpu.matmul %208, %4, %cst_215 {dimension_numbers = #tpu.dot_dimension_numbers<[1], [0], [0], [1], [0, 0, 1, 1], [], []>} : vector<8x768xf32>, vector<768x1xf32>, vector<8x1xf32> -> vector<8x1xf32>
    %cst_216 = arith.constant 0.00255102036 : f32
    %210 = vector.broadcast %cst_216 : f32 to vector<8x1xf32>
    %211 = arith.mulf %207, %210 : vector<8x1xf32>
    %cst_217 = arith.constant 0.00255102036 : f32
    %212 = vector.broadcast %cst_217 : f32 to vector<8x1xf32>
    %213 = arith.mulf %209, %212 : vector<8x1xf32>
    %214 = arith.mulf %211, %211 : vector<8x1xf32>
    %215 = arith.subf %213, %214 : vector<8x1xf32>
    %216 = vector.extract_strided_slice %202 {offsets = [0, 1], sizes = [8, 1], strides = [1, 1]} : vector<8x4xf32> to vector<8x1xf32>
    %cst_218 = arith.constant 9.99999974E-6 : f32
    %217 = vector.broadcast %cst_218 : f32 to vector<8x1xf32>
    %218 = arith.addf %215, %217 : vector<8x1xf32>
    %219 = math.rsqrt %218 : vector<8x1xf32>
    %220 = arith.mulf %216, %219 : vector<8x1xf32>
    %221 = vector.extract_strided_slice %202 {offsets = [0, 2], sizes = [8, 1], strides = [1, 1]} : vector<8x4xf32> to vector<8x1xf32>
    %222 = arith.mulf %211, %220 : vector<8x1xf32>
    %223 = arith.subf %221, %222 : vector<8x1xf32>
    %224 = vector.broadcast %220 : vector<8x1xf32> to vector<8x768xf32>
    %225 = arith.mulf %206, %224 : vector<8x768xf32>
    %226 = vector.broadcast %223 : vector<8x1xf32> to vector<8x768xf32>
    %227 = arith.addf %225, %226 : vector<8x768xf32>
    %cst_219 = arith.constant 0.000000e+00 : f32
    %228 = vector.broadcast %cst_219 : f32 to vector<8x768xf32>
    %229 = arith.maximumf %227, %228 : vector<8x768xf32>
    %230 = vector.broadcast %204 : vector<1x768xf32> to vector<8x768xf32>
    %231 = arith.mulf %229, %230 : vector<8x768xf32>
    %c0_220 = arith.constant 0 : index
    %c0_221 = arith.constant 0 : index
    %232 = vector.load %arg6[%c0_220, %c0_221] : memref<8x896xf32, #tpu.memory_space<vmem>>, vector<8x768xf32>
    tpu.vector_store %arg6[%c0_220, %c0_221], %231 {strides = array<i32>} : memref<8x896xf32, #tpu.memory_space<vmem>>, vector<8x768xf32>,
    %c3_222 = arith.constant 3 : index
    %c0_223 = arith.constant 0 : index
    %c0_224 = arith.constant 0 : index
    %c0_225 = arith.constant 0 : index
    %233 = vector.load %arg2[%c3_222, %c0_223, %c0_224, %c0_225] : memref<4x9x8x8xf32, #tpu.memory_space<vmem>>, vector<1x1x8x8xf32>
    %234 = vector.shape_cast %233 : vector<1x1x8x8xf32> to vector<8x8xf32>
    %c0_226 = arith.constant 0 : index
    %c0_227 = arith.constant 0 : index
    %235 = vector.load %arg6[%c0_226, %c0_227] : memref<8x896xf32, #tpu.memory_space<vmem>>, vector<8x768xf32>
    %cst_228 = arith.constant dense<0.000000e+00> : vector<8x768xf32>
    %236 = tpu.matmul %234, %235, %cst_228 {dimension_numbers = #tpu.dot_dimension_numbers<[1], [0], [0], [1], [0, 0, 1, 1], [], []>} : vector<8x8xf32>, vector<8x768xf32>, vector<8x768xf32> -> vector<8x768xf32>
    %c3_229 = arith.constant 3 : index
    %c1_230 = arith.constant 1 : index
    %c0_231 = arith.constant 0 : index
    %c0_232 = arith.constant 0 : index
    %237 = vector.load %arg2[%c3_229, %c1_230, %c0_231, %c0_232] : memref<4x9x8x8xf32, #tpu.memory_space<vmem>>, vector<1x1x8x8xf32>
    %238 = vector.shape_cast %237 : vector<1x1x8x8xf32> to vector<8x8xf32>
    %c0_233 = arith.constant 0 : index
    %c1_234 = arith.constant 1 : index
    %239 = vector.load %arg6[%c0_233, %c1_234] : memref<8x896xf32, #tpu.memory_space<vmem>>, vector<8x768xf32>
    %cst_235 = arith.constant dense<0.000000e+00> : vector<8x768xf32>
    %240 = tpu.matmul %238, %239, %cst_235 {dimension_numbers = #tpu.dot_dimension_numbers<[1], [0], [0], [1], [0, 0, 1, 1], [], []>} : vector<8x8xf32>, vector<8x768xf32>, vector<8x768xf32> -> vector<8x768xf32>
    %241 = arith.addf %236, %240 : vector<8x768xf32>
    %c3_236 = arith.constant 3 : index
    %c2_237 = arith.constant 2 : index
    %c0_238 = arith.constant 0 : index
    %c0_239 = arith.constant 0 : index
    %242 = vector.load %arg2[%c3_236, %c2_237, %c0_238, %c0_239] : memref<4x9x8x8xf32, #tpu.memory_space<vmem>>, vector<1x1x8x8xf32>
    %243 = vector.shape_cast %242 : vector<1x1x8x8xf32> to vector<8x8xf32>
    %c0_240 = arith.constant 0 : index
    %c2_241 = arith.constant 2 : index
    %244 = vector.load %arg6[%c0_240, %c2_241] : memref<8x896xf32, #tpu.memory_space<vmem>>, vector<8x768xf32>
    %cst_242 = arith.constant dense<0.000000e+00> : vector<8x768xf32>
    %245 = tpu.matmul %243, %244, %cst_242 {dimension_numbers = #tpu.dot_dimension_numbers<[1], [0], [0], [1], [0, 0, 1, 1], [], []>} : vector<8x8xf32>, vector<8x768xf32>, vector<8x768xf32> -> vector<8x768xf32>
    %246 = arith.addf %241, %245 : vector<8x768xf32>
    %c3_243 = arith.constant 3 : index
    %c3_244 = arith.constant 3 : index
    %c0_245 = arith.constant 0 : index
    %c0_246 = arith.constant 0 : index
    %247 = vector.load %arg2[%c3_243, %c3_244, %c0_245, %c0_246] : memref<4x9x8x8xf32, #tpu.memory_space<vmem>>, vector<1x1x8x8xf32>
    %248 = vector.shape_cast %247 : vector<1x1x8x8xf32> to vector<8x8xf32>
    %c0_247 = arith.constant 0 : index
    %c18_248 = arith.constant 18 : index
    %249 = vector.load %arg6[%c0_247, %c18_248] : memref<8x896xf32, #tpu.memory_space<vmem>>, vector<8x768xf32>
    %cst_249 = arith.constant dense<0.000000e+00> : vector<8x768xf32>
    %250 = tpu.matmul %248, %249, %cst_249 {dimension_numbers = #tpu.dot_dimension_numbers<[1], [0], [0], [1], [0, 0, 1, 1], [], []>} : vector<8x8xf32>, vector<8x768xf32>, vector<8x768xf32> -> vector<8x768xf32>
    %251 = arith.addf %246, %250 : vector<8x768xf32>
    %c3_250 = arith.constant 3 : index
    %c4_251 = arith.constant 4 : index
    %c0_252 = arith.constant 0 : index
    %c0_253 = arith.constant 0 : index
    %252 = vector.load %arg2[%c3_250, %c4_251, %c0_252, %c0_253] : memref<4x9x8x8xf32, #tpu.memory_space<vmem>>, vector<1x1x8x8xf32>
    %253 = vector.shape_cast %252 : vector<1x1x8x8xf32> to vector<8x8xf32>
    %c0_254 = arith.constant 0 : index
    %c19_255 = arith.constant 19 : index
    %254 = vector.load %arg6[%c0_254, %c19_255] : memref<8x896xf32, #tpu.memory_space<vmem>>, vector<8x768xf32>
    %cst_256 = arith.constant dense<0.000000e+00> : vector<8x768xf32>
    %255 = tpu.matmul %253, %254, %cst_256 {dimension_numbers = #tpu.dot_dimension_numbers<[1], [0], [0], [1], [0, 0, 1, 1], [], []>} : vector<8x8xf32>, vector<8x768xf32>, vector<8x768xf32> -> vector<8x768xf32>
    %256 = arith.addf %251, %255 : vector<8x768xf32>
    %c3_257 = arith.constant 3 : index
    %c5_258 = arith.constant 5 : index
    %c0_259 = arith.constant 0 : index
    %c0_260 = arith.constant 0 : index
    %257 = vector.load %arg2[%c3_257, %c5_258, %c0_259, %c0_260] : memref<4x9x8x8xf32, #tpu.memory_space<vmem>>, vector<1x1x8x8xf32>
    %258 = vector.shape_cast %257 : vector<1x1x8x8xf32> to vector<8x8xf32>
    %c0_261 = arith.constant 0 : index
    %c20_262 = arith.constant 20 : index
    %259 = vector.load %arg6[%c0_261, %c20_262] : memref<8x896xf32, #tpu.memory_space<vmem>>, vector<8x768xf32>
    %cst_263 = arith.constant dense<0.000000e+00> : vector<8x768xf32>
    %260 = tpu.matmul %258, %259, %cst_263 {dimension_numbers = #tpu.dot_dimension_numbers<[1], [0], [0], [1], [0, 0, 1, 1], [], []>} : vector<8x8xf32>, vector<8x768xf32>, vector<8x768xf32> -> vector<8x768xf32>
    %261 = arith.addf %256, %260 : vector<8x768xf32>
    %c3_264 = arith.constant 3 : index
    %c6_265 = arith.constant 6 : index
    %c0_266 = arith.constant 0 : index
    %c0_267 = arith.constant 0 : index
    %262 = vector.load %arg2[%c3_264, %c6_265, %c0_266, %c0_267] : memref<4x9x8x8xf32, #tpu.memory_space<vmem>>, vector<1x1x8x8xf32>
    %263 = vector.shape_cast %262 : vector<1x1x8x8xf32> to vector<8x8xf32>
    %c0_268 = arith.constant 0 : index
    %c36_269 = arith.constant 36 : index
    %264 = vector.load %arg6[%c0_268, %c36_269] : memref<8x896xf32, #tpu.memory_space<vmem>>, vector<8x768xf32>
    %cst_270 = arith.constant dense<0.000000e+00> : vector<8x768xf32>
    %265 = tpu.matmul %263, %264, %cst_270 {dimension_numbers = #tpu.dot_dimension_numbers<[1], [0], [0], [1], [0, 0, 1, 1], [], []>} : vector<8x8xf32>, vector<8x768xf32>, vector<8x768xf32> -> vector<8x768xf32>
    %266 = arith.addf %261, %265 : vector<8x768xf32>
    %c3_271 = arith.constant 3 : index
    %c7_272 = arith.constant 7 : index
    %c0_273 = arith.constant 0 : index
    %c0_274 = arith.constant 0 : index
    %267 = vector.load %arg2[%c3_271, %c7_272, %c0_273, %c0_274] : memref<4x9x8x8xf32, #tpu.memory_space<vmem>>, vector<1x1x8x8xf32>
    %268 = vector.shape_cast %267 : vector<1x1x8x8xf32> to vector<8x8xf32>
    %c0_275 = arith.constant 0 : index
    %c37_276 = arith.constant 37 : index
    %269 = vector.load %arg6[%c0_275, %c37_276] : memref<8x896xf32, #tpu.memory_space<vmem>>, vector<8x768xf32>
    %cst_277 = arith.constant dense<0.000000e+00> : vector<8x768xf32>
    %270 = tpu.matmul %268, %269, %cst_277 {dimension_numbers = #tpu.dot_dimension_numbers<[1], [0], [0], [1], [0, 0, 1, 1], [], []>} : vector<8x8xf32>, vector<8x768xf32>, vector<8x768xf32> -> vector<8x768xf32>
    %271 = arith.addf %266, %270 : vector<8x768xf32>
    %c3_278 = arith.constant 3 : index
    %c8_279 = arith.constant 8 : index
    %c0_280 = arith.constant 0 : index
    %c0_281 = arith.constant 0 : index
    %272 = vector.load %arg2[%c3_278, %c8_279, %c0_280, %c0_281] : memref<4x9x8x8xf32, #tpu.memory_space<vmem>>, vector<1x1x8x8xf32>
    %273 = vector.shape_cast %272 : vector<1x1x8x8xf32> to vector<8x8xf32>
    %c0_282 = arith.constant 0 : index
    %c38_283 = arith.constant 38 : index
    %274 = vector.load %arg6[%c0_282, %c38_283] : memref<8x896xf32, #tpu.memory_space<vmem>>, vector<8x768xf32>
    %cst_284 = arith.constant dense<0.000000e+00> : vector<8x768xf32>
    %275 = tpu.matmul %273, %274, %cst_284 {dimension_numbers = #tpu.dot_dimension_numbers<[1], [0], [0], [1], [0, 0, 1, 1], [], []>} : vector<8x8xf32>, vector<8x768xf32>, vector<8x768xf32> -> vector<8x768xf32>
    %276 = arith.addf %271, %275 : vector<8x768xf32>
    %c3_285 = arith.constant 3 : index
    %c0_286 = arith.constant 0 : index
    %c0_287 = arith.constant 0 : index
    %277 = vector.load %arg3[%c3_285, %c0_286, %c0_287] : memref<4x8x4xf32, #tpu.memory_space<vmem>>, vector<1x8x4xf32>
    %278 = vector.shape_cast %277 : vector<1x8x4xf32> to vector<8x4xf32>
    %279 = vector.extract_strided_slice %278 {offsets = [0, 0], sizes = [8, 1], strides = [1, 1]} : vector<8x4xf32> to vector<8x1xf32>
    %280 = vector.broadcast %279 : vector<8x1xf32> to vector<8x768xf32>
    %281 = arith.addf %276, %280 : vector<8x768xf32>
    %c0_288 = arith.constant 0 : index
    %c0_289 = arith.constant 0 : index
    %282 = vector.load %arg5[%c0_288, %c0_289] : memref<8x768xf32, #tpu.memory_space<vmem>>, vector<8x768xf32>
    tpu.vector_store %arg5[%c0_288, %c0_289], %281 {strides = array<i32>} : memref<8x768xf32, #tpu.memory_space<vmem>>, vector<8x768xf32>,
    return
  }
  func.func @transform_0(%arg0: i32) -> (i32, i32) {
    %c0_i32 = arith.constant 0 : i32
    %c0_i32_0 = arith.constant 0 : i32
    %c0_i32_1 = arith.constant 0 : i32
    return %c0_i32, %c0_i32_0 : i32, i32
  }
  func.func @transform_1(%arg0: i32) -> (i32, i32, i32, i32) {
    %c0_i32 = arith.constant 0 : i32
    %c0_i32_0 = arith.constant 0 : i32
    %c0_i32_1 = arith.constant 0 : i32
    %c0_i32_2 = arith.constant 0 : i32
    %c0_i32_3 = arith.constant 0 : i32
    return %c0_i32, %c0_i32_0, %c0_i32_1, %c0_i32_2 : i32, i32, i32, i32
  }
  func.func @transform_2(%arg0: i32) -> (i32, i32, i32) {
    %c0_i32 = arith.constant 0 : i32
    %c0_i32_0 = arith.constant 0 : i32
    %c0_i32_1 = arith.constant 0 : i32
    %c0_i32_2 = arith.constant 0 : i32
    return %c0_i32, %c0_i32_0, %c0_i32_1 : i32, i32, i32
  }
  func.func @transform_3(%arg0: i32) -> (i32, i32, i32) {
    %c0_i32 = arith.constant 0 : i32
    %c0_i32_0 = arith.constant 0 : i32
    %c0_i32_1 = arith.constant 0 : i32
    %c0_i32_2 = arith.constant 0 : i32
    return %c0_i32, %c0_i32_0, %c0_i32_1 : i32, i32, i32
  }
  func.func @transform_4(%arg0: i32) -> (i32, i32) {
    %c0_i32 = arith.constant 0 : i32
    %c0_i32_0 = arith.constant 0 : i32
    %c0_i32_1 = arith.constant 0 : i32
    return %c0_i32, %c0_i32_0 : i32, i32
  }
}

</mosaic_0001>

<bundles_post_ra>
// kernel: generator_forward.1
= control target key start
LH: loop header
LB: loop body
LE: loop exit
PB: predicated region body
PF: predicated region fallthrough
CT: control target
= control target key end

     0   :  { %v11374_v2 = vmov 0.0   ;;  %s11375_s19 = smov 127   ;;  %s11376_s30 = smov 126   ;;  %vm68_vm0 = vcmask 1039360   ;;  %vm81_vm1 = vcmask 64512   ;;  %vm530_vm2 = vcmask 1031168   ;;  %s13459_s0 = inlined_call_operand.vmem [shape: f32[8,896], index: 0, kind: input, shape index: {}]   ;;  %s13460_s1 = inlined_call_operand.vmem [shape: f32[4,9,8,8], index: 1, kind: input, shape index: {}]   ;;  %s13461_s3 = inlined_call_operand.vmem [shape: f32[4,1,768], index: 3, kind: input, shape index: {}]   ;;  %s13462_s2 = inlined_call_operand.vmem [shape: f32[4,8,4], index: 2, kind: input, shape index: {}]   ;;  %s13463_s4 = inlined_call_operand.vmem [shape: f32[8,768], index: 4, kind: output, shape index: {}]  }
   0x1   :  { %v11417_v0 = vld [vmem:[%s13459_s0 + $0x8] sm:$0xff]  ;;  %v11422_v1 = vld [vmem:[%s13459_s0] sm:$0xff]  ;;  %149 = vmatprep.mubr.f32.mxu0 %v11374_v2  ;;  %220 = vmatprep.mubr.f32.mxu1 %v11374_v2  ;;  %v11433_v3 = vld [vmem:[%s13459_s0 + $0x10] sm:$0xff]  ;;  %s11378_s5 = smov 109   ;;  %s11379_s6 = smov 108   ;;  %vm781_vm3 = vcmask 900096  }
   0x2   :  { %56 = vrot.lane.b32.xlu0 %v11417_v0, %s11375_s19  ;;  %54 = vrot.lane.b32.xlu1 %v11422_v1, %s11375_s19  ;;  %v11438_v4 = vld [vmem:[%s13459_s0 + $0x18] sm:$0xff]  ;;  %v11447_v5 = vld [vmem:[%s13459_s0 + $0x20] sm:$0xff]  ;;  %s11380_s7 = smov 92   ;;  %s11381_s8 = smov 91   ;;  %vm1032_vm4 = vcmask 891904   ;;  %vm1283_vm5 = vcmask 883712  }
   0x3   :  { %v11452_v6 = vld [vmem:[%s13459_s0 + $0x28] sm:$0xff]  ;;  %v46_v7 = vld [vmem:[%s13459_s0 + $0x30] sm:$0xff]  ;;  %s11377_s0 = smov 110   ;;  %s11382_s9 = smov 90   ;;  %v31_v23 = vld [vmem:[%s13460_s1] sm:$0xff]  ;;  %vm1534_vm6 = vcmask 752640  }
   0x4   :  { %v10569_v13 = vld [vmem:[%s13460_s1 + $0x8] sm:$0xff]  ;;  %v10576_v32 = vld [vmem:[%s13460_s1 + $0x10] sm:$0xff]  ;;  %v10580_v42 = vld [vmem:[%s13460_s1 + $0x18] sm:$0xff]  ;;  %vm1785_vm7 = vcmask 744448   ;;  %vm2036_vm8 = vcmask 736256   ;;  %s11385_s11 = smov 1  }
   0x5   :  { %v10584_v56 = vld [vmem:[%s13460_s1 + $0x20] sm:$0xff]  ;;  %s11387_s14 = smov 2  }
   0x6   :  { %58 = vrot.lane.b32.xlu0 %v11433_v3, %s11375_s19  ;;  %60 = vrot.lane.b32.xlu1 %v11438_v4, %s11375_s19 }
   0xa   :  { %62 = vrot.lane.b32.xlu0 %v11447_v5, %s11375_s19  ;;  %64 = vrot.lane.b32.xlu1 %v11452_v6, %s11375_s19 }
   0xe   :  { %66 = vrot.lane.b32.xlu0 %v46_v7, %s11375_s19  ;;  %518 = vrot.lane.b32.xlu1 %v11417_v0, %s11376_s30 }
  0x12   :  { %520 = vrot.lane.b32.xlu0 %v11433_v3, %s11376_s30  ;;  %516 = vrot.lane.b32.xlu1 %v11422_v1, %s11376_s30 }
  0x16   :  { %522 = vrot.lane.b32.xlu0 %v11438_v4, %s11376_s30  ;;  %524 = vrot.lane.b32.xlu1 %v11447_v5, %s11376_s30 }
  0x1a   :  { %526 = vrot.lane.b32.xlu0 %v11452_v6, %s11376_s30  ;;  %528 = vrot.lane.b32.xlu1 %v46_v7, %s11376_s30 }
  0x1e   :  { %769 = vrot.lane.b32.xlu0 %v11417_v0, %s11377_s0  ;;  %771 = vrot.lane.b32.xlu1 %v11433_v3, %s11377_s0 }
  0x22   :  { %767 = vrot.lane.b32.xlu0 %v11422_v1, %s11377_s0  ;;  %773 = vrot.lane.b32.xlu1 %v11438_v4, %s11377_s0 }
  0x26   :  { %775 = vrot.lane.b32.xlu0 %v11447_v5, %s11377_s0  ;;  %777 = vrot.lane.b32.xlu1 %v11452_v6, %s11377_s0 }
  0x2a   :  { %779 = vrot.lane.b32.xlu0 %v46_v7, %s11377_s0  ;;  %1020 = vrot.lane.b32.xlu1 %v11417_v0, %s11378_s5 }
  0x2e   :  { %1022 = vrot.lane.b32.xlu0 %v11433_v3, %s11378_s5  ;;  %1018 = vrot.lane.b32.xlu1 %v11422_v1, %s11378_s5 }
  0x32   :  { %1024 = vrot.lane.b32.xlu0 %v11438_v4, %s11378_s5  ;;  %1026 = vrot.lane.b32.xlu1 %v11447_v5, %s11378_s5 }
  0x36   :  { %1028 = vrot.lane.b32.xlu0 %v11452_v6, %s11378_s5  ;;  %1030 = vrot.lane.b32.xlu1 %v46_v7, %s11378_s5 }
  0x3a   :  { %1271 = vrot.lane.b32.xlu0 %v11417_v0, %s11379_s6  ;;  %1273 = vrot.lane.b32.xlu1 %v11433_v3, %s11379_s6 }
  0x3e   :  { %1269 = vrot.lane.b32.xlu0 %v11422_v1, %s11379_s6  ;;  %1275 = vrot.lane.b32.xlu1 %v11438_v4, %s11379_s6 }
  0x42   :  { %1277 = vrot.lane.b32.xlu0 %v11447_v5, %s11379_s6  ;;  %1279 = vrot.lane.b32.xlu1 %v11452_v6, %s11379_s6 }
  0x46   :  { %1281 = vrot.lane.b32.xlu0 %v46_v7, %s11379_s6  ;;  %1522 = vrot.lane.b32.xlu1 %v11417_v0, %s11380_s7 }
  0x4a   :  { %1524 = vrot.lane.b32.xlu0 %v11433_v3, %s11380_s7  ;;  %1520 = vrot.lane.b32.xlu1 %v11422_v1, %s11380_s7 }
  0x4e   :  { %1526 = vrot.lane.b32.xlu0 %v11438_v4, %s11380_s7  ;;  %1528 = vrot.lane.b32.xlu1 %v11447_v5, %s11380_s7 }
  0x52   :  { %1530 = vrot.lane.b32.xlu0 %v11452_v6, %s11380_s7  ;;  %1532 = vrot.lane.b32.xlu1 %v46_v7, %s11380_s7 }
  0x56   :  { %1773 = vrot.lane.b32.xlu0 %v11417_v0, %s11381_s8  ;;  %1775 = vrot.lane.b32.xlu1 %v11433_v3, %s11381_s8 }
  0x5a   :  { %1771 = vrot.lane.b32.xlu0 %v11422_v1, %s11381_s8  ;;  %1777 = vrot.lane.b32.xlu1 %v11438_v4, %s11381_s8 }
  0x5e   :  { %1779 = vrot.lane.b32.xlu0 %v11447_v5, %s11381_s8  ;;  %1781 = vrot.lane.b32.xlu1 %v11452_v6, %s11381_s8 }
  0x62   :  { %1783 = vrot.lane.b32.xlu0 %v46_v7, %s11381_s8  ;;  %2024 = vrot.lane.b32.xlu1 %v11417_v0, %s11382_s9 }
  0x66   :  { %2026 = vrot.lane.b32.xlu0 %v11433_v3, %s11382_s9  ;;  %2022 = vrot.lane.b32.xlu1 %v11422_v1, %s11382_s9 }
  0x6a   :  { %2028 = vrot.lane.b32.xlu0 %v11438_v4, %s11382_s9  ;;  %2030 = vrot.lane.b32.xlu1 %v11447_v5, %s11382_s9 }
  0x6e   :  { %2032 = vrot.lane.b32.xlu0 %v11452_v6, %s11382_s9  ;;  %2034 = vrot.lane.b32.xlu1 %v46_v7, %s11382_s9  ;;  %v10588_v7 = vld [vmem:[%s13460_s1 + $0x28] sm:$0xff] }
  0x74   :  { %v57_v8 = vpop.permute.xlu0 %56  ;;  %v55_v9 = vpop.permute.xlu1 %54 }
  0x75   :  { %v69_v14 = vsel %vm68_vm0, %v55_v9, %v57_v8 }
  0x78   :  { %v59_v10 = vpop.permute.xlu0 %58  ;;  %v61_v11 = vpop.permute.xlu1 %60 }
  0x79   :  { %v70_v12 = vsel %vm68_vm0, %v57_v8, %v59_v10  ;;  %v71_v18 = vsel %vm68_vm0, %v59_v10, %v61_v11 }
  0x7a   :  { %115 = vmatprep.subr.mxu0 %v70_v12 }
  0x7b   :  { %116 = vmatpush1.msra.mxu0 %v69_v14 }
  0x7c   :  { %v63_v15 = vpop.permute.xlu0 %62  ;;  %v65_v16 = vpop.permute.xlu1 %64  ;;  %10570 = vmatmul.mubr.msk.f32.vlgmr.msra.gmra.mxu0 %vm81_vm1, %v10569_v13 }
  0x7d   :  { %v72_v17 = vsel %vm68_vm0, %v61_v11, %v63_v15  ;;  %291 = vmatprep.mubr.f32.mxu0 %v11374_v2  ;;  %v73_v22 = vsel %vm68_vm0, %v63_v15, %v65_v16 }
  0x7e   :  { %186 = vmatprep.subr.mxu1 %v72_v17 }
  0x7f   :  { %187 = vmatpush1.msra.mxu1 %v71_v18 }
  0x80   :  { %v67_v19 = vpop.permute.xlu0 %66  ;;  %v519_v20 = vpop.permute.xlu1 %518  ;;  %10571 = vmatmul.mubr.msk.f32.vlgmr.msra.gmra.mxu1 %vm81_vm1, %v10569_v13  ;;  %331 = vmatprep.subr.mxu1 %v11417_v0 }
  0x81   :  { %v74_v21 = vsel %vm68_vm0, %v65_v16, %v67_v19  ;;  %332 = vmatpush1.msra.mxu1 %v11422_v1  ;;  %365 = vmatprep.mubr.f32.mxu1 %v11374_v2 }
  0x82   :  { %257 = vmatprep.subr.mxu0 %v74_v21  ;;  %473 = vmatprep.subr.mxu1 %v11452_v6  ;;  %v10592_v21 = vld [vmem:[%s13460_s1 + $0x30] sm:$0xff] }
  0x83   :  { %258 = vmatpush1.msra.mxu0 %v73_v22 }
  0x84   :  { %v521_v24 = vpop.permute.xlu0 %520  ;;  %10572 = vmatmul.mubr.msk.f32.vlgmr.msra.gmra.mxu0 %vm81_vm1, %v10569_v13  ;;  %v517_v25 = vpop.permute.xlu1 %516  ;;  %402 = vmatprep.subr.mxu0 %v11438_v4 }
  0x85   :  { %403 = vmatpush1.msra.mxu0 %v11433_v3  ;;  %v532_v26 = vsel %vm530_vm2, %v519_v20, %v521_v24  ;;  %10573 = vmatmul.mubr.msk.f32.vlgmr.msra.gmra.mxu1 %vm81_vm1, %v31_v23  ;;  %v531_v27 = vsel %vm530_vm2, %v517_v25, %v519_v20 }
  0x86   :  { %576 = vmatprep.subr.mxu0 %v532_v26  ;;  %436 = vmatprep.mubr.f32.mxu0 %v11374_v2 }
  0x87   :  { %474 = vmatpush1.msra.mxu1 %v11447_v5  ;;  %507 = vmatprep.mubr.f32.mxu1 %v11374_v2 }
  0x88   :  { %v523_v28 = vpop.permute.xlu0 %522  ;;  %v525_v29 = vpop.permute.xlu1 %524  ;;  %10574 = vmatmul.mubr.msk.f32.vlgmr.msra.gmra.mxu0 %vm81_vm1, %v31_v23 }
  0x89   :  { %577 = vmatpush1.msra.mxu0 %v531_v27  ;;  %v534_v30 = vsel %vm530_vm2, %v523_v28, %v525_v29  ;;  %10575 = vmatmul.mubr.msk.f32.vlgmr.msra.gmra.mxu1 %vm81_vm1, %v31_v23  ;;  %v533_v31 = vsel %vm530_vm2, %v521_v24, %v523_v28 }
  0x8a   :  { %647 = vmatprep.subr.mxu1 %v534_v30  ;;  %610 = vmatprep.mubr.f32.mxu0 %v11374_v2 }
  0x8b   :  { %648 = vmatpush1.msra.mxu1 %v533_v31  ;;  %681 = vmatprep.mubr.f32.mxu1 %v11374_v2 }
  0x8c   :  { %v527_v33 = vpop.permute.xlu0 %526  ;;  %v529_v34 = vpop.permute.xlu1 %528  ;;  %10577 = vmatmul.mubr.msk.f32.vlgmr.msra.gmra.mxu0 %vm81_vm1, %v10576_v32 }
  0x8d   :  { %v536_v35 = vsel %vm530_vm2, %v527_v33, %v529_v34  ;;  %v535_v36 = vsel %vm530_vm2, %v525_v29, %v527_v33  ;;  %10578 = vmatmul.mubr.msk.f32.vlgmr.msra.gmra.mxu1 %vm81_vm1, %v10576_v32  ;;  %752 = vmatprep.mubr.f32.mxu0 %v11374_v2 }
  0x8e   :  { %718 = vmatprep.subr.mxu0 %v536_v35  ;;  %861 = vmatprep.mubr.f32.mxu1 %v11374_v2  ;;  %v10596_v35 = vld [vmem:[%s13460_s1 + $0x38] sm:$0xff] }
  0x8f   :  { %719 = vmatpush1.msra.mxu0 %v535_v36 }
  0x90   :  { %v770_v37 = vpop.permute.xlu0 %769  ;;  %v772_v38 = vpop.permute.xlu1 %771  ;;  %10579 = vmatmul.mubr.msk.f32.vlgmr.msra.gmra.mxu0 %vm81_vm1, %v10576_v32 }
  0x91   :  { %v783_v39 = vsel %vm781_vm3, %v770_v37, %v772_v38  ;;  %932 = vmatprep.mubr.f32.mxu0 %v11374_v2 }
  0x92   :  { %827 = vmatprep.subr.mxu1 %v783_v39 }
  0x94   :  { %v768_v40 = vpop.permute.xlu0 %767  ;;  %v774_v41 = vpop.permute.xlu1 %773 }
  0x95   :  { %v782_v43 = vsel %vm781_vm3, %v768_v40, %v770_v37  ;;  %v784_v47 = vsel %vm781_vm3, %v772_v38, %v774_v41 }
  0x96   :  { %828 = vmatpush1.msra.mxu1 %v782_v43 }
  0x97   :  { %10581 = vmatmul.mubr.msk.f32.vlgmr.msra.gmra.mxu1 %vm81_vm1, %v10580_v42 }
  0x98   :  { %v776_v44 = vpop.permute.xlu0 %775  ;;  %v778_v45 = vpop.permute.xlu1 %777  ;;  %1003 = vmatprep.mubr.f32.mxu1 %v11374_v2 }
  0x99   :  { %v785_v46 = vsel %vm781_vm3, %v774_v41, %v776_v44  ;;  %v786_v51 = vsel %vm781_vm3, %v776_v44, %v778_v45 }
  0x9a   :  { %898 = vmatprep.subr.mxu0 %v785_v46 }
  0x9b   :  { %899 = vmatpush1.msra.mxu0 %v784_v47 }
  0x9c   :  { %v780_v48 = vpop.permute.xlu0 %779  ;;  %v1021_v49 = vpop.permute.xlu1 %1020  ;;  %10582 = vmatmul.mubr.msk.f32.vlgmr.msra.gmra.mxu0 %vm81_vm1, %v10580_v42 }
  0x9d   :  { %v787_v50 = vsel %vm781_vm3, %v778_v45, %v780_v48  ;;  %1112 = vmatprep.mubr.f32.mxu0 %v11374_v2 }
  0x9e   :  { %969 = vmatprep.subr.mxu1 %v787_v50 }
  0x9f   :  { %970 = vmatpush1.msra.mxu1 %v786_v51 }
  0xa0   :  { %v1023_v52 = vpop.permute.xlu0 %1022  ;;  %v1019_v53 = vpop.permute.xlu1 %1018  ;;  %10583 = vmatmul.mubr.msk.f32.vlgmr.msra.gmra.mxu1 %vm81_vm1, %v10580_v42 }
  0xa1   :  { %v1033_v54 = vsel %vm1032_vm4, %v1019_v53, %v1021_v49  ;;  %v1034_v55 = vsel %vm1032_vm4, %v1021_v49, %v1023_v52  ;;  %1183 = vmatprep.mubr.f32.mxu1 %v11374_v2  ;;  %v10600_v49 = vld [vmem:[%s13460_s1 + $0x40] sm:$0xff] }
  0xa2   :  { %1078 = vmatprep.subr.mxu0 %v1034_v55 }
  0xa3   :  { %1079 = vmatpush1.msra.mxu0 %v1033_v54 }
  0xa4   :  { %v1025_v57 = vpop.permute.xlu0 %1024  ;;  %v1027_v58 = vpop.permute.xlu1 %1026  ;;  %10585 = vmatmul.mubr.msk.f32.vlgmr.msra.gmra.mxu0 %vm81_vm1, %v10584_v56 }
  0xa5   :  { %v1036_v59 = vsel %vm1032_vm4, %v1025_v57, %v1027_v58  ;;  %v1035_v60 = vsel %vm1032_vm4, %v1023_v52, %v1025_v57  ;;  %1254 = vmatprep.mubr.f32.mxu0 %v11374_v2 }
  0xa6   :  { %1149 = vmatprep.subr.mxu1 %v1036_v59 }
  0xa7   :  { %1150 = vmatpush1.msra.mxu1 %v1035_v60 }
  0xa8   :  { %v1029_v61 = vpop.permute.xlu0 %1028  ;;  %v1031_v62 = vpop.permute.xlu1 %1030  ;;  %10586 = vmatmul.mubr.msk.f32.vlgmr.msra.gmra.mxu1 %vm81_vm1, %v10584_v56 }
  0xa9   :  { %v1038_v63 = vsel %vm1032_vm4, %v1029_v61, %v1031_v62  ;;  %v1037_v0 = vsel %vm1032_vm4, %v1027_v58, %v1029_v61  ;;  %1363 = vmatprep.mubr.f32.mxu1 %v11374_v2  ;;  %v11383_v58 = vmov 1.0  }
  0xaa   :  { %1220 = vmatprep.subr.mxu0 %v1038_v63 }
  0xab   :  { %1221 = vmatpush1.msra.mxu0 %v1037_v0 }
  0xac   :  { %v1272_v1 = vpop.permute.xlu0 %1271  ;;  %v1274_v3 = vpop.permute.xlu1 %1273  ;;  %10587 = vmatmul.mubr.msk.f32.vlgmr.msra.gmra.mxu0 %vm81_vm1, %v10584_v56 }
  0xad   :  { %v1285_v4 = vsel %vm1283_vm5, %v1272_v1, %v1274_v3  ;;  %1434 = vmatprep.mubr.f32.mxu0 %v11374_v2 }
  0xae   :  { %1329 = vmatprep.subr.mxu1 %v1285_v4 }
  0xb0   :  { %v1270_v5 = vpop.permute.xlu0 %1269  ;;  %v1276_v6 = vpop.permute.xlu1 %1275 }
  0xb1   :  { %v1284_v8 = vsel %vm1283_vm5, %v1270_v5, %v1272_v1  ;;  %v1286_v12 = vsel %vm1283_vm5, %v1274_v3, %v1276_v6 }
  0xb2   :  { %1330 = vmatpush1.msra.mxu1 %v1284_v8 }
  0xb3   :  { %10589 = vmatmul.mubr.msk.f32.vlgmr.msra.gmra.mxu1 %vm81_vm1, %v10588_v7 }
  0xb4   :  { %v1278_v9 = vpop.permute.xlu0 %1277  ;;  %v1280_v10 = vpop.permute.xlu1 %1279  ;;  %1505 = vmatprep.mubr.f32.mxu1 %v11374_v2 }
  0xb5   :  { %v1287_v11 = vsel %vm1283_vm5, %v1276_v6, %v1278_v9  ;;  %v1288_v16 = vsel %vm1283_vm5, %v1278_v9, %v1280_v10 }
  0xb6   :  { %1400 = vmatprep.subr.mxu0 %v1287_v11 }
  0xb7   :  { %1401 = vmatpush1.msra.mxu0 %v1286_v12 }
  0xb8   :  { %v1282_v13 = vpop.permute.xlu0 %1281  ;;  %v1523_v14 = vpop.permute.xlu1 %1522  ;;  %10590 = vmatmul.mubr.msk.f32.vlgmr.msra.gmra.mxu0 %vm81_vm1, %v10588_v7 }
  0xb9   :  { %v1289_v15 = vsel %vm1283_vm5, %v1280_v10, %v1282_v13  ;;  %1614 = vmatprep.mubr.f32.mxu0 %v11374_v2 }
  0xba   :  { %1471 = vmatprep.subr.mxu1 %v1289_v15 }
  0xbb   :  { %1472 = vmatpush1.msra.mxu1 %v1288_v16 }
  0xbc   :  { %v1525_v17 = vpop.permute.xlu0 %1524  ;;  %v1521_v18 = vpop.permute.xlu1 %1520  ;;  %10591 = vmatmul.mubr.msk.f32.vlgmr.msra.gmra.mxu1 %vm81_vm1, %v10588_v7 }
  0xbd   :  { %v1535_v19 = vsel %vm1534_vm6, %v1521_v18, %v1523_v14  ;;  %v1536_v20 = vsel %vm1534_vm6, %v1523_v14, %v1525_v17  ;;  %1685 = vmatprep.mubr.f32.mxu1 %v11374_v2 }
  0xbe   :  { %1580 = vmatprep.subr.mxu0 %v1536_v20 }
  0xbf   :  { %1581 = vmatpush1.msra.mxu0 %v1535_v19 }
  0xc0   :  { %v1527_v22 = vpop.permute.xlu0 %1526  ;;  %v1529_v23 = vpop.permute.xlu1 %1528  ;;  %10593 = vmatmul.mubr.msk.f32.vlgmr.msra.gmra.mxu0 %vm81_vm1, %v10592_v21 }
  0xc1   :  { %v1538_v24 = vsel %vm1534_vm6, %v1527_v22, %v1529_v23  ;;  %v1537_v25 = vsel %vm1534_vm6, %v1525_v17, %v1527_v22  ;;  %1756 = vmatprep.mubr.f32.mxu0 %v11374_v2 }
  0xc2   :  { %1651 = vmatprep.subr.mxu1 %v1538_v24 }
  0xc3   :  { %1652 = vmatpush1.msra.mxu1 %v1537_v25 }
  0xc4   :  { %v1531_v26 = vpop.permute.xlu0 %1530  ;;  %v1533_v27 = vpop.permute.xlu1 %1532  ;;  %10594 = vmatmul.mubr.msk.f32.vlgmr.msra.gmra.mxu1 %vm81_vm1, %v10592_v21 }
  0xc5   :  { %v1540_v28 = vsel %vm1534_vm6, %v1531_v26, %v1533_v27  ;;  %v1539_v29 = vsel %vm1534_vm6, %v1529_v23, %v1531_v26  ;;  %1865 = vmatprep.mubr.f32.mxu1 %v11374_v2 }
  0xc6   :  { %1722 = vmatprep.subr.mxu0 %v1540_v28 }
  0xc7   :  { %1723 = vmatpush1.msra.mxu0 %v1539_v29 }
  0xc8   :  { %v1774_v30 = vpop.permute.xlu0 %1773  ;;  %v1776_v31 = vpop.permute.xlu1 %1775  ;;  %10595 = vmatmul.mubr.msk.f32.vlgmr.msra.gmra.mxu0 %vm81_vm1, %v10592_v21 }
  0xc9   :  { %v1787_v32 = vsel %vm1785_vm7, %v1774_v30, %v1776_v31  ;;  %1936 = vmatprep.mubr.f32.mxu0 %v11374_v2 }
  0xca   :  { %1831 = vmatprep.subr.mxu1 %v1787_v32 }
  0xcc   :  { %v1772_v33 = vpop.permute.xlu0 %1771  ;;  %v1778_v34 = vpop.permute.xlu1 %1777 }
  0xcd   :  { %v1786_v36 = vsel %vm1785_vm7, %v1772_v33, %v1774_v30  ;;  %v1788_v40 = vsel %vm1785_vm7, %v1776_v31, %v1778_v34 }
  0xce   :  { %1832 = vmatpush1.msra.mxu1 %v1786_v36 }
  0xcf   :  { %10597 = vmatmul.mubr.msk.f32.vlgmr.msra.gmra.mxu1 %vm81_vm1, %v10596_v35 }
  0xd0   :  { %v1780_v37 = vpop.permute.xlu0 %1779  ;;  %v1782_v38 = vpop.permute.xlu1 %1781  ;;  %2007 = vmatprep.mubr.f32.mxu1 %v11374_v2 }
  0xd1   :  { %v1789_v39 = vsel %vm1785_vm7, %v1778_v34, %v1780_v37  ;;  %v1790_v44 = vsel %vm1785_vm7, %v1780_v37, %v1782_v38 }
  0xd2   :  { %1902 = vmatprep.subr.mxu0 %v1789_v39 }
  0xd3   :  { %1903 = vmatpush1.msra.mxu0 %v1788_v40 }
  0xd4   :  { %v1784_v41 = vpop.permute.xlu0 %1783  ;;  %v2025_v42 = vpop.permute.xlu1 %2024  ;;  %10598 = vmatmul.mubr.msk.f32.vlgmr.msra.gmra.mxu0 %vm81_vm1, %v10596_v35 }
  0xd5   :  { %v1791_v43 = vsel %vm1785_vm7, %v1782_v38, %v1784_v41  ;;  %2116 = vmatprep.mubr.f32.mxu0 %v11374_v2 }
  0xd6   :  { %1973 = vmatprep.subr.mxu1 %v1791_v43 }
  0xd7   :  { %1974 = vmatpush1.msra.mxu1 %v1790_v44 }
  0xd8   :  { %v2027_v45 = vpop.permute.xlu0 %2026  ;;  %v2023_v46 = vpop.permute.xlu1 %2022  ;;  %10599 = vmatmul.mubr.msk.f32.vlgmr.msra.gmra.mxu1 %vm81_vm1, %v10596_v35 }
  0xd9   :  { %v2037_v47 = vsel %vm2036_vm8, %v2023_v46, %v2025_v42  ;;  %v2038_v48 = vsel %vm2036_vm8, %v2025_v42, %v2027_v45  ;;  %2187 = vmatprep.mubr.f32.mxu1 %v11374_v2  ;;  %v2274_v46 = vlaneseq }
  0xda   :  { %2082 = vmatprep.subr.mxu0 %v2038_v48 }
  0xdb   :  { %2083 = vmatpush1.msra.mxu0 %v2037_v47 }
  0xdc   :  { %v2029_v50 = vpop.permute.xlu0 %2028  ;;  %v2031_v51 = vpop.permute.xlu1 %2030  ;;  %10601 = vmatmul.mubr.msk.f32.vlgmr.msra.gmra.mxu0 %vm81_vm1, %v10600_v49 }
  0xdd   :  { %v2040_v52 = vsel %vm2036_vm8, %v2029_v50, %v2031_v51  ;;  %v2039_v53 = vsel %vm2036_vm8, %v2027_v45, %v2029_v50  ;;  %2258 = vmatprep.mubr.f32.mxu0 %v11374_v2 }
  0xde   :  { %2153 = vmatprep.subr.mxu1 %v2040_v52 }
  0xdf   :  { %2154 = vmatpush1.msra.mxu1 %v2039_v53 }
  0xe0   :  { %v2033_v54 = vpop.permute.xlu0 %2032  ;;  %v2035_v55 = vpop.permute.xlu1 %2034  ;;  %10602 = vmatmul.mubr.msk.f32.vlgmr.msra.gmra.mxu1 %vm81_vm1, %v10600_v49  ;;  %10717 = vmatprep.subr.mxu1 %v11383_v58 }
  0xe1   :  { %v2042_v56 = vsel %vm2036_vm8, %v2033_v54, %v2035_v55  ;;  %v2041_v57 = vsel %vm2036_vm8, %v2031_v51, %v2033_v54  ;;  %10718 = vmatpush3.msra.mxu1 %v11383_v58  ;;  %v11766_v55 = vshrl.u32 %v2274_v46, 7 }
  0xe2   :  { %2224 = vmatprep.subr.mxu0 %v2042_v56  ;;  %10719 = vmatprep.subr.mxu1 %v11383_v58 }
  0xe3   :  { %2225 = vmatpush1.msra.mxu0 %v2041_v57  ;;  %10720 = vmatpush3.msra.mxu1 %v11383_v58 }
  0xe4   :  { %10603 = vmatmul.mubr.msk.f32.vlgmr.msra.gmra.mxu0 %vm81_vm1, %v10600_v49  ;;  %10752 = vmatprep.subr.mxu0 %v11383_v58 }
  0xe5   :  { %10753 = vmatpush3.msra.mxu0 %v11383_v58  ;;  %10721 = vmatprep.subr.mxu1 %v11383_v58 }
  0xe6   :  { %10754 = vmatprep.subr.mxu0 %v11383_v58  ;;  %10722 = vmatpush3.msra.mxu1 %v11383_v58 }
  0xe7   :  { %10755 = vmatpush3.msra.mxu0 %v11383_v58  ;;  %10723 = vmatprep.subr.mxu1 %v11383_v58 }
  0xe8   :  { %10756 = vmatprep.subr.mxu0 %v11383_v58  ;;  %10724 = vmatpush3.msra.mxu1 %v11383_v58 }
  0xe9   :  { %10757 = vmatpush3.msra.mxu0 %v11383_v58  ;;  %10725 = vmatprep.subr.mxu1 %v11383_v58 }
  0xea   :  { %10758 = vmatprep.subr.mxu0 %v11383_v58  ;;  %10726 = vmatpush3.msra.mxu1 %v11383_v58 }
  0xeb   :  { %10759 = vmatpush3.msra.mxu0 %v11383_v58  ;;  %10727 = vmatprep.subr.mxu1 %v11383_v58 }
  0xec   :  { %10760 = vmatprep.subr.mxu0 %v11383_v58  ;;  %10728 = vmatpush3.msra.mxu1 %v11383_v58 }
  0xed   :  { %10761 = vmatpush3.msra.mxu0 %v11383_v58  ;;  %10729 = vmatprep.subr.mxu1 %v11383_v58 }
  0xee   :  { %10762 = vmatprep.subr.mxu0 %v11383_v58  ;;  %10730 = vmatpush3.msra.mxu1 %v11383_v58 }
  0xef   :  { %10763 = vmatpush3.msra.mxu0 %v11383_v58  ;;  %10731 = vmatprep.subr.mxu1 %v11383_v58 }
  0xf0   :  { %10764 = vmatprep.subr.mxu0 %v11383_v58  ;;  %10732 = vmatpush3.msra.mxu1 %v11383_v58 }
  0xf1   :  { %10765 = vmatpush3.msra.mxu0 %v11383_v58  ;;  %10733 = vmatprep.subr.mxu1 %v11383_v58 }
  0xf2   :  { %10766 = vmatprep.subr.mxu0 %v11383_v58  ;;  %10734 = vmatpush3.msra.mxu1 %v11383_v58 }
  0xf3   :  { %10767 = vmatpush3.msra.mxu0 %v11383_v58  ;;  %10735 = vmatprep.subr.mxu1 %v11383_v58 }
  0xf4   :  { %10768 = vmatprep.subr.mxu0 %v11383_v58  ;;  %10736 = vmatpush3.msra.mxu1 %v11383_v58 }
  0xf5   :  { %10769 = vmatpush3.msra.mxu0 %v11383_v58  ;;  %10737 = vmatprep.subr.mxu1 %v11383_v58 }
  0xf6   :  { %10770 = vmatprep.subr.mxu0 %v11383_v58  ;;  %10738 = vmatpush3.msra.mxu1 %v11383_v58 }
  0xf7   :  { %10771 = vmatpush3.msra.mxu0 %v11383_v58  ;;  %10739 = vmatprep.subr.mxu1 %v11383_v58 }
  0xf8   :  { %10772 = vmatprep.subr.mxu0 %v11383_v58  ;;  %10740 = vmatpush3.msra.mxu1 %v11383_v58 }
  0xf9   :  { %10773 = vmatpush3.msra.mxu0 %v11383_v58  ;;  %10741 = vmatprep.subr.mxu1 %v11383_v58 }
  0xfa   :  { %10774 = vmatprep.subr.mxu0 %v11383_v58  ;;  %10742 = vmatpush3.msra.mxu1 %v11383_v58 }
  0xfb   :  { %10775 = vmatpush3.msra.mxu0 %v11383_v58  ;;  %10743 = vmatprep.subr.mxu1 %v11383_v58 }
  0xfc   :  { %10776 = vmatprep.subr.mxu0 %v11383_v58  ;;  %10744 = vmatpush3.msra.mxu1 %v11383_v58 }
  0xfd   :  { %10777 = vmatpush3.msra.mxu0 %v11383_v58  ;;  %10745 = vmatprep.subr.mxu1 %v11383_v58 }
  0xfe   :  { %10778 = vmatprep.subr.mxu0 %v11383_v58  ;;  %10746 = vmatpush3.msra.mxu1 %v11383_v58 }
  0xff   :  { %10779 = vmatpush3.msra.mxu0 %v11383_v58  ;;  %10747 = vmatprep.subr.mxu1 %v11383_v58 }
 0x100   :  { %10780 = vmatprep.subr.mxu0 %v11383_v58  ;;  %10748 = vmatpush3.msra.mxu1 %v11383_v58 }
 0x101   :  { %10781 = vmatpush3.msra.mxu0 %v11383_v58  ;;  %10787 = vmatprep.subr.mxu1 %v11383_v58 }
 0x102   :  { %10782 = vmatprep.subr.mxu0 %v11383_v58 }
 0x103   :  { %10783 = vmatpush3.msra.mxu0 %v11383_v58 }
 0x104   :  { %10822 = vmatprep.subr.mxu0 %v11383_v58 }
 0x13c   :  { %v151_v59 = vpop.f32.mrf.mxu0 }
 0x13e   :  { %v153_v60 = vpop.f32.mrf.mxu0 }
 0x140   :  { %v222_v61 = vpop.f32.mrf.mxu1 }
 0x142   :  { %v224_v63 = vpop.f32.mrf.mxu1 }
 0x144   :  { %v11752_v62 = vpop.f32.mrf.mxu0 }
 0x145   :  { %v367_v1 = vpop.f32.mrf.mxu1 }
 0x146   :  { %v295_v0 = vpop.f32.mrf.mxu0  ;;  %v368_v29 = vadd.f32 %v367_v1, %v151_v59  ;;  %v11769_v1 = vsub.s32 1, %v11766_v55 }
 0x147   :  { %v369_v4 = vpop.f32.mrf.mxu1 }
 0x148   :  { %v438_v3 = vpop.f32.mrf.mxu0  ;;  %v370_v32 = vadd.f32 %v369_v4, %v153_v60 }
 0x149   :  { %v11754_v6 = vpop.f32.mrf.mxu1  ;;  %v439_v34 = vadd.f32 %v438_v3, %v222_v61 }
 0x14a   :  { %v440_v5 = vpop.f32.mrf.mxu0 }
 0x14b   :  { %v511_v8 = vpop.f32.mrf.mxu1  ;;  %v441_v40 = vadd.f32 %v440_v5, %v224_v63  ;;  %v11774_v5 = vsub.s32 0, %v11766_v55 }
 0x14c   :  { %v612_v7 = vpop.f32.mrf.mxu0  ;;  %v512_v47 = vadd.f32 %v511_v8, %v295_v0 }
 0x14d   :  { %v683_v10 = vpop.f32.mrf.mxu1  ;;  %v759_v35 = vadd.f32 %v612_v7, %v368_v29 }
 0x14e   :  { %v614_v9 = vpop.f32.mrf.mxu0  ;;  %v761_v41 = vadd.f32 %v683_v10, %v439_v34  ;;  %v11779_v10 = vld [vmem:[%s13461_s3] sm:$0x3f] }
 0x14f   :  { %v685_v12 = vpop.f32.mrf.mxu1  ;;  %v760_v37 = vadd.f32 %v614_v9, %v370_v32 }
 0x150   :  { %v11756_v11 = vpop.f32.mrf.mxu0  ;;  %v762_v48 = vadd.f32 %v685_v12, %v441_v40 }
 0x152   :  { %v756_v13 = vpop.f32.mrf.mxu0 }
 0x153   :  { %v764_v56 = vadd.f32 %v756_v13, %v512_v47 }
 0x157   :  { %v863_v14 = vpop.f32.mrf.mxu1 }
 0x158   :  { %v1010_v42 = vadd.f32 %v863_v14, %v759_v35 }
 0x159   :  { %v865_v16 = vpop.f32.mrf.mxu1 }
 0x15a   :  { %v1011_v44 = vadd.f32 %v865_v16, %v760_v37 }
 0x15c   :  { %v934_v15 = vpop.f32.mrf.mxu0 }
 0x15d   :  { %v1012_v49 = vadd.f32 %v934_v15, %v761_v41  ;;  %v11782_v15 = vsub.s32 3, %v11766_v55 }
 0x15e   :  { %v936_v17 = vpop.f32.mrf.mxu0 }
 0x15f   :  { %v1013_v57 = vadd.f32 %v936_v17, %v762_v48  ;;  %v11797_v34 = vrot.slane %v11779_v10, %v11782_v15 }
 0x160   :  { %v11758_v18 = vpop.f32.mrf.mxu1 }
 0x162   :  { %v1007_v20 = vpop.f32.mrf.mxu1 }
 0x163   :  { %v1015_v7 = vadd.f32 %v1007_v20, %v764_v56 }
 0x164   :  { %v1114_v19 = vpop.f32.mrf.mxu0 }
 0x165   :  { %v1261_v50 = vadd.f32 %v1114_v19, %v1010_v42  ;;  %v11786_v19 = vrot.slane %v11779_v10, %v11769_v1 }
 0x166   :  { %v1116_v21 = vpop.f32.mrf.mxu0 }
 0x167   :  { %v1262_v53 = vadd.f32 %v1116_v21, %v1011_v44 }
 0x168   :  { %v1185_v22 = vpop.f32.mrf.mxu1 }
 0x169   :  { %v1263_v59 = vadd.f32 %v1185_v22, %v1012_v49 }
 0x16a   :  { %v1187_v24 = vpop.f32.mrf.mxu1 }
 0x16b   :  { %v1264_v8 = vadd.f32 %v1187_v24, %v1013_v57  ;;  %v11790_v24 = vrot.slane %v11779_v10, %v11774_v5 }
 0x16c   :  { %v11760_v23 = vpop.f32.mrf.mxu0 }
 0x16e   :  { %v1258_v25 = vpop.f32.mrf.mxu0 }
 0x173   :  { %v1365_v26 = vpop.f32.mrf.mxu1 }
 0x174   :  { %v1512_v60 = vadd.f32 %v1365_v26, %v1261_v50 }
 0x175   :  { %v1367_v28 = vpop.f32.mrf.mxu1 }
 0x176   :  { %v1513_v63 = vadd.f32 %v1367_v28, %v1262_v53  ;;  %v1266_v28 = vadd.f32 %v1258_v25, %v1015_v7 }
 0x178   :  { %v1436_v27 = vpop.f32.mrf.mxu0 }
 0x179   :  { %v1514_v12 = vadd.f32 %v1436_v27, %v1263_v59  ;;  %v11793_v27 = vsub.s32 2, %v11766_v55 }
 0x17a   :  { %v1438_v30 = vpop.f32.mrf.mxu0 }
 0x17b   :  { %v1515_v16 = vadd.f32 %v1438_v30, %v1264_v8  ;;  %v11810_v41 = vrot.slane %v11779_v10, %v11793_v27 }
 0x17c   :  { %v11762_v31 = vpop.f32.mrf.mxu1 }
 0x17e   :  { %v1509_v36 = vpop.f32.mrf.mxu1 }
 0x17f   :  { %v1517_v35 = vadd.f32 %v1509_v36, %v1266_v28 }
 0x180   :  { %v1616_v33 = vpop.f32.mrf.mxu0 }
 0x181   :  { %v1763_v3 = vadd.f32 %v1616_v33, %v1512_v60 }
 0x182   :  { %v1618_v38 = vpop.f32.mrf.mxu0 }
 0x183   :  { %v1764_v9 = vadd.f32 %v1618_v38, %v1513_v63 }
 0x184   :  { %v1687_v39 = vpop.f32.mrf.mxu1 }
 0x185   :  { %v1765_v20 = vadd.f32 %v1687_v39, %v1514_v12  ;;  %v11803_v39 = vsub.s32 5, %v11766_v55 }
 0x186   :  { %v1689_v45 = vpop.f32.mrf.mxu1 }
 0x187   :  { %v1766_v29 = vadd.f32 %v1689_v45, %v1515_v16  ;;  %v11822_v48 = vrot.slane %v11779_v10, %v11803_v39 }
 0x188   :  { %v11764_v43 = vpop.f32.mrf.mxu0 }
 0x18a   :  { %v1760_v51 = vpop.f32.mrf.mxu0 }
 0x18b   :  { %v1768_v44 = vadd.f32 %v1760_v51, %v1517_v35 }
 0x18f   :  { %v1867_v52 = vpop.f32.mrf.mxu1 }
 0x190   :  { %v2014_v13 = vadd.f32 %v1867_v52, %v1763_v3 }
 0x191   :  { %v1869_v61 = vpop.f32.mrf.mxu1 }
 0x192   :  { %v2015_v17 = vadd.f32 %v1869_v61, %v1764_v9 }
 0x194   :  { %v1938_v54 = vpop.f32.mrf.mxu0 }
 0x195   :  { %v2016_v30 = vadd.f32 %v1938_v54, %v1765_v20  ;;  %v510_v54 = vadd.f32 %v11754_v6, %v11752_v62 }
 0x196   :  { %v1940_v0 = vpop.f32.mrf.mxu0 }
 0x197   :  { %v2017_v37 = vadd.f32 %v1940_v0, %v1766_v29  ;;  %v763_v56 = vadd.f32 %v11756_v11, %v510_v54 }
 0x198   :  { %v11771_v4 = vpop.f32.mrf.mxu1 }
 0x199   :  { %v1014_v62 = vadd.f32 %v11758_v18, %v763_v56  ;;  %v11386_v56 = vmov 2  }
 0x19a   :  { %v2011_v21 = vpop.f32.mrf.mxu1  ;;  %11363 = vset.pattern.permute.xlu0 %v11386_v56 }
 0x19b   :  { %v2019_v46 = vadd.f32 %v2011_v21, %v1768_v44  ;;  %v1265_v6 = vadd.f32 %v11760_v23, %v1014_v62  ;;  %v11880_v23 = vsub.s32 4, %v11766_v55 }
 0x19c   :  { %v2118_v14 = vpop.f32.mrf.mxu0 }
 0x19d   :  { %v2265_v22 = vadd.f32 %v2118_v14, %v2014_v13  ;;  %v1516_v11 = vadd.f32 %v11762_v31, %v1265_v6  ;;  %v11894_v55 = vrot.slane %v11779_v10, %v11880_v23 }
 0x19e   :  { %v2120_v26 = vpop.f32.mrf.mxu0 }
 0x19f   :  { %v2266_v32 = vadd.f32 %v2120_v26, %v2015_v17  ;;  %v11806_v40 = vmul.f32 %v11790_v24, %v2265_v22  ;;  %v1767_v18 = vadd.f32 %v11764_v43, %v1516_v11 }
 0x1a0   :  { %v2189_v33 = vpop.f32.mrf.mxu1 }
 0x1a1   :  { %v11800_v38 = vmul.f32 %v11786_v19, %v2266_v32  ;;  %v2267_v25 = vadd.f32 %v2189_v33, %v2016_v30  ;;  %v2018_v31 = vadd.f32 %v11771_v4, %v1767_v18  ;;  %v2520_v60 = vmul.f32 %v11806_v40, %v11806_v40 }
 0x1a2   :  { %v2191_v42 = vpop.f32.mrf.mxu1 }
 0x1a3   :  { %v2268_v45 = vadd.f32 %v2191_v42, %v2017_v37  ;;  %2374 = vmatprep.mubr.f32.mxu1 %v11800_v38  ;;  %v11825_v49 = vmul.f32 %v11810_v41, %v2267_v25  ;;  %v2521_v53 = vmul.f32 %v11800_v38, %v11800_v38 }
 0x1a4   :  { %v11813_v36 = vpop.f32.mrf.mxu0  ;;  %2375 = vmatmul.mubr.f32.vlgmr.msra.gmra.mxu1 %v11806_v40 }
 0x1a5   :  { %v11817_v47 = vmul.f32 %v11797_v34, %v2268_v45  ;;  %10788 = vmatpush3.msra.mxu1 %v11383_v58  ;;  %v2269_v43 = vadd.f32 %v11813_v36, %v2018_v31  ;;  %v2522_v63 = vmul.f32 %v11825_v49, %v11825_v49 }
 0x1a6   :  { %10789 = vmatprep.subr.mxu1 %v11383_v58  ;;  %v2262_v50 = vpop.f32.mrf.mxu0 }
 0x1a7   :  { %v2270_v51 = vadd.f32 %v2262_v50, %v2019_v46  ;;  %10790 = vmatpush3.msra.mxu1 %v11383_v58  ;;  %2444 = vmatprep.mubr.f32.mxu0 %v11817_v47  ;;  %v11905_v57 = vmul.f32 %v11894_v55, %v2269_v43  ;;  %v2523_v59 = vmul.f32 %v11817_v47, %v11817_v47  ;;  %v11384_v46 = vmov 1  }
 0x1a8   :  { %10791 = vmatprep.subr.mxu1 %v11383_v58  ;;  %2445 = vmatmul.mubr.f32.vlgmr.msra.gmra.mxu0 %v11825_v49 }
 0x1a9   :  { %v11833_v52 = vmul.f32 %v11822_v48, %v2270_v51  ;;  %10792 = vmatpush3.msra.mxu1 %v11383_v58  ;;  %10823 = vmatpush3.msra.mxu0 %v11383_v58  ;;  %v2524_v3 = vmul.f32 %v11905_v57, %v11905_v57  ;;  %v2271_v51 = vld [vmem:[%s13462_s2] sm:$0xff] }
 0x1aa   :  { %10793 = vmatprep.subr.mxu1 %v11383_v58  ;;  %10824 = vmatprep.subr.mxu0 %v11383_v58 }
 0x1ab   :  { %2590 = vmatprep.mubr.f32.mxu0 %v2521_v53  ;;  %10794 = vmatpush3.msra.mxu1 %v11383_v58  ;;  %v2525_v61 = vmul.f32 %v11833_v52, %v11833_v52 }
 0x1ac   :  { %10825 = vmatpush3.msra.mxu0 %v11383_v58  ;;  %10795 = vmatprep.subr.mxu1 %v11383_v58 }
 0x1ad   :  { %2514 = vmatprep.mubr.f32.mxu1 %v11833_v52  ;;  %10826 = vmatprep.subr.mxu0 %v11383_v58 }
 0x1ae   :  { %10796 = vmatpush3.msra.mxu1 %v11383_v58  ;;  %10827 = vmatpush3.msra.mxu0 %v11383_v58 }
 0x1af   :  { %10797 = vmatprep.subr.mxu1 %v11383_v58  ;;  %10828 = vmatprep.subr.mxu0 %v11383_v58 }
 0x1b0   :  { %10798 = vmatpush3.msra.mxu1 %v11383_v58  ;;  %10829 = vmatpush3.msra.mxu0 %v11383_v58 }
 0x1b1   :  { %10799 = vmatprep.subr.mxu1 %v11383_v58  ;;  %10830 = vmatprep.subr.mxu0 %v11383_v58 }
 0x1b2   :  { %10800 = vmatpush3.msra.mxu1 %v11383_v58  ;;  %10831 = vmatpush3.msra.mxu0 %v11383_v58 }
 0x1b3   :  { %10801 = vmatprep.subr.mxu1 %v11383_v58  ;;  %10832 = vmatprep.subr.mxu0 %v11383_v58 }
 0x1b4   :  { %10802 = vmatpush3.msra.mxu1 %v11383_v58  ;;  %10833 = vmatpush3.msra.mxu0 %v11383_v58 }
 0x1b5   :  { %10803 = vmatprep.subr.mxu1 %v11383_v58  ;;  %10834 = vmatprep.subr.mxu0 %v11383_v58 }
 0x1b6   :  { %10804 = vmatpush3.msra.mxu1 %v11383_v58  ;;  %10835 = vmatpush3.msra.mxu0 %v11383_v58 }
 0x1b7   :  { %10805 = vmatprep.subr.mxu1 %v11383_v58  ;;  %10836 = vmatprep.subr.mxu0 %v11383_v58 }
 0x1b8   :  { %10806 = vmatpush3.msra.mxu1 %v11383_v58  ;;  %10837 = vmatpush3.msra.mxu0 %v11383_v58 }
 0x1b9   :  { %10807 = vmatprep.subr.mxu1 %v11383_v58  ;;  %10838 = vmatprep.subr.mxu0 %v11383_v58 }
 0x1ba   :  { %10808 = vmatpush3.msra.mxu1 %v11383_v58  ;;  %10839 = vmatpush3.msra.mxu0 %v11383_v58 }
 0x1bb   :  { %10809 = vmatprep.subr.mxu1 %v11383_v58  ;;  %10840 = vmatprep.subr.mxu0 %v11383_v58 }
 0x1bc   :  { %10810 = vmatpush3.msra.mxu1 %v11383_v58  ;;  %10841 = vmatpush3.msra.mxu0 %v11383_v58 }
 0x1bd   :  { %10811 = vmatprep.subr.mxu1 %v11383_v58  ;;  %10842 = vmatprep.subr.mxu0 %v11383_v58 }
 0x1be   :  { %10812 = vmatpush3.msra.mxu1 %v11383_v58  ;;  %10843 = vmatpush3.msra.mxu0 %v11383_v58 }
 0x1bf   :  { %10813 = vmatprep.subr.mxu1 %v11383_v58  ;;  %10844 = vmatprep.subr.mxu0 %v11383_v58 }
 0x1c0   :  { %10814 = vmatpush3.msra.mxu1 %v11383_v58  ;;  %10845 = vmatpush3.msra.mxu0 %v11383_v58 }
 0x1c1   :  { %10815 = vmatprep.subr.mxu1 %v11383_v58  ;;  %10846 = vmatprep.subr.mxu0 %v11383_v58 }
 0x1c2   :  { %10816 = vmatpush3.msra.mxu1 %v11383_v58  ;;  %10847 = vmatpush3.msra.mxu0 %v11383_v58 }
 0x1c3   :  { %10817 = vmatprep.subr.mxu1 %v11383_v58  ;;  %10848 = vmatprep.subr.mxu0 %v11383_v58 }
 0x1c4   :  { %10818 = vmatpush3.msra.mxu1 %v11383_v58  ;;  %10849 = vmatpush3.msra.mxu0 %v11383_v58 }
 0x1c5   :  { %2515 = vmatmul.mubr.f32.vlgmr.msra.gmra.mxu1 %v11905_v57  ;;  %10850 = vmatprep.subr.mxu0 %v11383_v58 }
 0x1c6   :  { %10857 = vmatprep.subr.mxu1 %v11383_v58  ;;  %10851 = vmatpush3.msra.mxu0 %v11383_v58 }
 0x1c7   :  { %10858 = vmatpush3.msra.mxu1 %v11383_v58  ;;  %2660 = vmatprep.mubr.f32.mxu1 %v2523_v59 }
 0x1c8   :  { %10852 = vmatprep.subr.mxu0 %v11383_v58  ;;  %10859 = vmatprep.subr.mxu1 %v11383_v58 }
 0x1c9   :  { %10853 = vmatpush3.msra.mxu0 %v11383_v58  ;;  %10860 = vmatpush3.msra.mxu1 %v11383_v58 }
 0x1ca   :  { %2591 = vmatmul.mubr.f32.vlgmr.msra.gmra.mxu0 %v2520_v60  ;;  %10861 = vmatprep.subr.mxu1 %v11383_v58 }
 0x1cb   :  { %10892 = vmatprep.subr.mxu0 %v11383_v58  ;;  %10862 = vmatpush3.msra.mxu1 %v11383_v58 }
 0x1cc   :  { %10893 = vmatpush3.msra.mxu0 %v11383_v58  ;;  %2730 = vmatprep.mubr.f32.mxu0 %v2525_v61 }
 0x1cd   :  { %10863 = vmatprep.subr.mxu1 %v11383_v58  ;;  %10894 = vmatprep.subr.mxu0 %v11383_v58 }
 0x1ce   :  { %10864 = vmatpush3.msra.mxu1 %v11383_v58  ;;  %10895 = vmatpush3.msra.mxu0 %v11383_v58 }
 0x1cf   :  { %10865 = vmatprep.subr.mxu1 %v11383_v58  ;;  %10896 = vmatprep.subr.mxu0 %v11383_v58 }
 0x1d0   :  { %10866 = vmatpush3.msra.mxu1 %v11383_v58  ;;  %10897 = vmatpush3.msra.mxu0 %v11383_v58 }
 0x1d1   :  { %10867 = vmatprep.subr.mxu1 %v11383_v58  ;;  %10898 = vmatprep.subr.mxu0 %v11383_v58 }
 0x1d2   :  { %10868 = vmatpush3.msra.mxu1 %v11383_v58  ;;  %10899 = vmatpush3.msra.mxu0 %v11383_v58 }
 0x1d3   :  { %10869 = vmatprep.subr.mxu1 %v11383_v58  ;;  %10900 = vmatprep.subr.mxu0 %v11383_v58 }
 0x1d4   :  { %10870 = vmatpush3.msra.mxu1 %v11383_v58  ;;  %10901 = vmatpush3.msra.mxu0 %v11383_v58 }
 0x1d5   :  { %10871 = vmatprep.subr.mxu1 %v11383_v58  ;;  %10902 = vmatprep.subr.mxu0 %v11383_v58 }
 0x1d6   :  { %10872 = vmatpush3.msra.mxu1 %v11383_v58  ;;  %10903 = vmatpush3.msra.mxu0 %v11383_v58 }
 0x1d7   :  { %10873 = vmatprep.subr.mxu1 %v11383_v58  ;;  %10904 = vmatprep.subr.mxu0 %v11383_v58 }
 0x1d8   :  { %10874 = vmatpush3.msra.mxu1 %v11383_v58  ;;  %10905 = vmatpush3.msra.mxu0 %v11383_v58 }
 0x1d9   :  { %10875 = vmatprep.subr.mxu1 %v11383_v58  ;;  %10906 = vmatprep.subr.mxu0 %v11383_v58 }
 0x1da   :  { %10876 = vmatpush3.msra.mxu1 %v11383_v58  ;;  %10907 = vmatpush3.msra.mxu0 %v11383_v58 }
 0x1db   :  { %10877 = vmatprep.subr.mxu1 %v11383_v58  ;;  %10908 = vmatprep.subr.mxu0 %v11383_v58 }
 0x1dc   :  { %10878 = vmatpush3.msra.mxu1 %v11383_v58  ;;  %10909 = vmatpush3.msra.mxu0 %v11383_v58 }
 0x1dd   :  { %10879 = vmatprep.subr.mxu1 %v11383_v58  ;;  %10910 = vmatprep.subr.mxu0 %v11383_v58 }
 0x1de   :  { %10880 = vmatpush3.msra.mxu1 %v11383_v58  ;;  %10911 = vmatpush3.msra.mxu0 %v11383_v58 }
 0x1df   :  { %10881 = vmatprep.subr.mxu1 %v11383_v58  ;;  %10912 = vmatprep.subr.mxu0 %v11383_v58 }
 0x1e0   :  { %10882 = vmatpush3.msra.mxu1 %v11383_v58  ;;  %10913 = vmatpush3.msra.mxu0 %v11383_v58 }
 0x1e1   :  { %10883 = vmatprep.subr.mxu1 %v11383_v58  ;;  %10914 = vmatprep.subr.mxu0 %v11383_v58 }
 0x1e2   :  { %10884 = vmatpush3.msra.mxu1 %v11383_v58  ;;  %10915 = vmatpush3.msra.mxu0 %v11383_v58 }
 0x1e3   :  { %10885 = vmatprep.subr.mxu1 %v11383_v58  ;;  %10916 = vmatprep.subr.mxu0 %v11383_v58 }
 0x1e4   :  { %10886 = vmatpush3.msra.mxu1 %v11383_v58  ;;  %10917 = vmatpush3.msra.mxu0 %v11383_v58 }
 0x1e5   :  { %10887 = vmatprep.subr.mxu1 %v11383_v58  ;;  %10918 = vmatprep.subr.mxu0 %v11383_v58 }
 0x1e6   :  { %10888 = vmatpush3.msra.mxu1 %v11383_v58  ;;  %10919 = vmatpush3.msra.mxu0 %v11383_v58 }
 0x1e7   :  { %2661 = vmatmul.mubr.f32.vlgmr.msra.gmra.mxu1 %v2522_v63  ;;  %10920 = vmatprep.subr.mxu0 %v11383_v58 }
 0x1e8   :  { %10921 = vmatpush3.msra.mxu0 %v11383_v58  ;;  %2913 = vmatprep.mubr.f32.mxu1 %v11374_v2 }
 0x1e9   :  { %10922 = vmatprep.subr.mxu0 %v11383_v58  ;;  %11362 = vset.pattern.permute.xlu1 %v11384_v46 }
 0x1ea   :  { %10923 = vmatpush3.msra.mxu0 %v11383_v58 }
 0x1eb   :  { %2731 = vmatmul.mubr.f32.vlgmr.msra.gmra.mxu0 %v2524_v3 }
 0x1ec   :  { %2984 = vmatprep.mubr.f32.mxu0 %v11374_v2 }
 0x264   :  { %v10749_v0 = vpop.f32.mrf.mxu1 }
 0x266   :  { %v10750_v4 = vpop.f32.mrf.mxu1 }
 0x267   :  { %v10751_v14 = vadd.f32 %v10750_v4, %v10749_v0 }
 0x268   :  { %v10784_v7 = vpop.f32.mrf.mxu0 }
 0x26a   :  { %v10785_v9 = vpop.f32.mrf.mxu0 }
 0x26b   :  { %v10786_v12 = vadd.f32 %v10785_v9, %v10784_v7 }
 0x26d   :  { %v2447_v20 = vadd.f32 %v10786_v12, %v10751_v14 }
 0x285   :  { %v10819_v8 = vpop.f32.mrf.mxu1 }
 0x287   :  { %v10820_v10 = vpop.f32.mrf.mxu1 }
 0x288   :  { %v10821_v16 = vadd.f32 %v10820_v10, %v10819_v8 }
 0x28a   :  { %v10854_v13 = vpop.f32.mrf.mxu0  ;;  %v2517_v26 = vadd.f32 %v10821_v16, %v2447_v20 }
 0x28c   :  { %v10855_v21 = vpop.f32.mrf.mxu0  ;;  %v2736_v33 = vmul.f32 0.005, %v2517_v26 }
 0x28d   :  { %v10856_v32 = vadd.f32 %v10855_v21, %v10854_v13 }
 0x28e   :  { %v2738_v42 = vmul.f32 %v2736_v33, %v2736_v33 }
 0x2a7   :  { %v10889_v17 = vpop.f32.mrf.mxu1 }
 0x2a9   :  { %v10890_v22 = vpop.f32.mrf.mxu1 }
 0x2aa   :  { %v10891_v28 = vadd.f32 %v10890_v22, %v10889_v17 }
 0x2ab   :  { %v10924_v29 = vpop.f32.mrf.mxu0 }
 0x2ac   :  { %v2663_v35 = vadd.f32 %v10891_v28, %v10856_v32 }
 0x2ad   :  { %v10925_v30 = vpop.f32.mrf.mxu0 }
 0x2ae   :  { %v10926_v37 = vadd.f32 %v10925_v30, %v10924_v29 }
 0x2b0   :  { %v2733_v25 = vadd.f32 %v10926_v37, %v2663_v35 }
 0x2b2   :  { %v2737_v44 = vmul.f32 0.005, %v2733_v25 }
 0x2b4   :  { %v2739_v45 = vsub.f32 %v2737_v44, %v2738_v42 }
 0x2b6   :  { %v2740_v36 = vadd.f32 1e-05, %v2739_v45 }
 0x2b8   :  { %11368 = vrsqrt.f32 %v2740_v36 }
 0x2c5   :  { %v11369_v50 = vpop.eup %11368 }
 0x2c6   :  { %2743 = vrot.lane.b32.xlu0 %v11369_v50, %s11385_s11 }
 0x338   :  { %v2744_v53 = vpop.permute.xlu0 %2743 }
 0x339   :  { %v2746_v54 = vmul.f32 %v2744_v53, %v2271_v51  ;;  %v10604_v53 = vld [vmem:[%s13460_s1 + $0x48] sm:$0xff] }
 0x33b   :  { %2748 = vrot.lane.b32.xlu1 %v2746_v54, %s11375_s19 }
 0x33f   :  { %2758 = vperm.xlu1 %11362, %v2746_v54  }
 0x343   :  { %3292 = vrot.lane.b32.xlu1 %v11374_v2, %s11376_s30 }
 0x347   :  { %3792 = vrot.lane.b32.xlu1 %v11374_v2, %s11378_s5 }
 0x34b   :  { %4292 = vrot.lane.b32.xlu1 %v11374_v2, %s11380_s7 }
 0x3ad   :  { %v2749_v62 = vpop.permute.xlu1 %2748 }
 0x3ae   :  { %v2751_v6 = vmul.f32 %v2749_v62, %v2736_v33  ;;  %v10605_v33 = vld [vmem:[%s13460_s1 + $0x50] sm:$0xff] }
 0x3b0   :  { %2753 = vrot.lane.b32.xlu0 %v2751_v6, %s11387_s14 }
 0x3ba   :  { %v2759_v31 = vpop.permute.xlu1 %2758 }
 0x3bb   :  { %v2761_v43 = vmul.f32 %v2759_v31, %v11806_v40  ;;  %v2762_v59 = vmul.f32 %v2759_v31, %v11800_v38  ;;  %v2763_v60 = vmul.f32 %v2759_v31, %v11825_v49  ;;  %v2765_v61 = vmul.f32 %v2759_v31, %v11905_v57 }
 0x3bc   :  { %v2764_v7 = vmul.f32 %v2759_v31, %v11817_v47  ;;  %v2766_v49 = vmul.f32 %v2759_v31, %v11833_v52 }
 0x3be   :  { %v3293_v52 = vpop.permute.xlu1 %3292 }
 0x3c2   :  { %v12140_v20 = vpop.permute.xlu1 %3792 }
 0x3c6   :  { %v12144_v22 = vpop.permute.xlu1 %4292 }
 0x422   :  { %v2754_v11 = vpop.permute.xlu0 %2753 }
 0x423   :  { %v2756_v18 = vsub.f32 %v2271_v51, %v2754_v11 }
 0x425   :  { %2769 = vperm.xlu0 %11363, %v2756_v18  }
 0x429   :  { %2832 = vrot.lane.b32.xlu0 %v11374_v2, %s11375_s19 }
 0x42d   :  { %3542 = vrot.lane.b32.xlu0 %v11374_v2, %s11377_s0 }
 0x431   :  { %4042 = vrot.lane.b32.xlu0 %v11374_v2, %s11379_s6 }
 0x435   :  { %4542 = vrot.lane.b32.xlu0 %v11374_v2, %s11381_s8 }
 0x4a0   :  { %v2770_v63 = vpop.permute.xlu0 %2769 }
 0x4a1   :  { %v2772_v3 = vadd.f32 %v2770_v63, %v2761_v43  ;;  %v2773_v0 = vadd.f32 %v2770_v63, %v2762_v59  ;;  %v2774_v4 = vadd.f32 %v2770_v63, %v2763_v60  ;;  %v2776_v8 = vadd.f32 %v2770_v63, %v2765_v61  ;;  %v10612_v59 = vld [vmem:[%s13460_s1 + $0x58] sm:$0xff] }
 0x4a2   :  { %v2775_v12 = vadd.f32 %v2770_v63, %v2764_v7  ;;  %v2777_v47 = vadd.f32 %v2770_v63, %v2766_v49 }
 0x4a3   :  { %v2778_v9 = vmax.f32 %v2772_v3, 0.0  ;;  %v2779_v10 = vmax.f32 %v2773_v0, 0.0  ;;  %v2780_v13 = vmax.f32 %v2774_v4, 0.0  ;;  %v2782_v14 = vmax.f32 %v2776_v8, 0.0 }
 0x4a4   :  { %v2781_v57 = vmax.f32 %v2775_v12, 0.0 }
 0x4a5   :  { %v12020_v40 = vmul.f32 %v2778_v9, %v11790_v24  ;;  %v12023_v38 = vmul.f32 %v2779_v10, %v11786_v19  ;;  %v12031_v16 = vmul.f32 %v2780_v13, %v11810_v41  ;;  %v12034_v17 = vmul.f32 %v2782_v14, %v11894_v55  ;;  %v10616_v9 = vld [vmem:[%s13460_s1 + $0x60] sm:$0xff] }
 0x4a6   :  { %v2783_v19 = vmax.f32 %v2777_v47, 0.0  ;;  %v12041_v24 = vmul.f32 %v2781_v57, %v11797_v34  ;;  %v2833_v34 = vpop.permute.xlu0 %2832 }
 0x4a7   :  { %2822 = vrot.lane.b32.xlu1 %v12023_v38, %s11375_s19  ;;  %2820 = vrot.lane.b32.xlu0 %v12020_v40, %s11375_s19 }
 0x4a8   :  { %v12048_v41 = vmul.f32 %v2783_v19, %v11822_v48 }
 0x4aa   :  { %v12134_v48 = vpop.permute.xlu0 %3542 }
 0x4ab   :  { %2824 = vrot.lane.b32.xlu1 %v12031_v16, %s11375_s19  ;;  %2828 = vrot.lane.b32.xlu0 %v12034_v17, %s11375_s19 }
 0x4ae   :  { %v12138_v55 = vpop.permute.xlu0 %4042 }
 0x4af   :  { %2826 = vrot.lane.b32.xlu1 %v12041_v24, %s11375_s19  ;;  %3284 = vrot.lane.b32.xlu0 %v12031_v16, %s11376_s30 }
 0x4b2   :  { %v12142_v21 = vpop.permute.xlu0 %4542 }
 0x4b3   :  { %2830 = vrot.lane.b32.xlu1 %v12048_v41, %s11375_s19  ;;  %3286 = vrot.lane.b32.xlu0 %v12041_v24, %s11376_s30 }
 0x4b7   :  { %3282 = vrot.lane.b32.xlu1 %v12023_v38, %s11376_s30  ;;  %3290 = vrot.lane.b32.xlu0 %v12048_v41, %s11376_s30 }
 0x4bb   :  { %3280 = vrot.lane.b32.xlu1 %v12020_v40, %s11376_s30  ;;  %3532 = vrot.lane.b32.xlu0 %v12023_v38, %s11377_s0 }
 0x4bf   :  { %3288 = vrot.lane.b32.xlu1 %v12034_v17, %s11376_s30  ;;  %3530 = vrot.lane.b32.xlu0 %v12020_v40, %s11377_s0 }
 0x4c3   :  { %3534 = vrot.lane.b32.xlu1 %v12031_v16, %s11377_s0  ;;  %3538 = vrot.lane.b32.xlu0 %v12034_v17, %s11377_s0 }
 0x4c7   :  { %3536 = vrot.lane.b32.xlu1 %v12041_v24, %s11377_s0  ;;  %3784 = vrot.lane.b32.xlu0 %v12031_v16, %s11378_s5 }
 0x4cb   :  { %3540 = vrot.lane.b32.xlu1 %v12048_v41, %s11377_s0  ;;  %3786 = vrot.lane.b32.xlu0 %v12041_v24, %s11378_s5 }
 0x4cf   :  { %3782 = vrot.lane.b32.xlu1 %v12023_v38, %s11378_s5  ;;  %3790 = vrot.lane.b32.xlu0 %v12048_v41, %s11378_s5 }
 0x4d3   :  { %3780 = vrot.lane.b32.xlu1 %v12020_v40, %s11378_s5  ;;  %4032 = vrot.lane.b32.xlu0 %v12023_v38, %s11379_s6 }
 0x4d7   :  { %3788 = vrot.lane.b32.xlu1 %v12034_v17, %s11378_s5  ;;  %4030 = vrot.lane.b32.xlu0 %v12020_v40, %s11379_s6 }
 0x4db   :  { %4034 = vrot.lane.b32.xlu1 %v12031_v16, %s11379_s6  ;;  %4038 = vrot.lane.b32.xlu0 %v12034_v17, %s11379_s6 }
 0x4df   :  { %4036 = vrot.lane.b32.xlu1 %v12041_v24, %s11379_s6  ;;  %4284 = vrot.lane.b32.xlu0 %v12031_v16, %s11380_s7 }
 0x4e3   :  { %4040 = vrot.lane.b32.xlu1 %v12048_v41, %s11379_s6  ;;  %4286 = vrot.lane.b32.xlu0 %v12041_v24, %s11380_s7 }
 0x4e7   :  { %4282 = vrot.lane.b32.xlu1 %v12023_v38, %s11380_s7  ;;  %4290 = vrot.lane.b32.xlu0 %v12048_v41, %s11380_s7 }
 0x4eb   :  { %4280 = vrot.lane.b32.xlu1 %v12020_v40, %s11380_s7  ;;  %4532 = vrot.lane.b32.xlu0 %v12023_v38, %s11381_s8 }
 0x4ef   :  { %4288 = vrot.lane.b32.xlu1 %v12034_v17, %s11380_s7  ;;  %4530 = vrot.lane.b32.xlu0 %v12020_v40, %s11381_s8 }
 0x4f3   :  { %4534 = vrot.lane.b32.xlu1 %v12031_v16, %s11381_s8  ;;  %4538 = vrot.lane.b32.xlu0 %v12034_v17, %s11381_s8 }
 0x4f7   :  { %4536 = vrot.lane.b32.xlu1 %v12041_v24, %s11381_s8  ;;  %4784 = vrot.lane.b32.xlu0 %v12031_v16, %s11382_s9 }
 0x4fb   :  { %4540 = vrot.lane.b32.xlu1 %v12048_v41, %s11381_s8  ;;  %4786 = vrot.lane.b32.xlu0 %v12041_v24, %s11382_s9 }
 0x4ff   :  { %4782 = vrot.lane.b32.xlu1 %v12023_v38, %s11382_s9  ;;  %4790 = vrot.lane.b32.xlu0 %v12048_v41, %s11382_s9 }
 0x503   :  { %4780 = vrot.lane.b32.xlu1 %v12020_v40, %s11382_s9 }
 0x507   :  { %4788 = vrot.lane.b32.xlu1 %v12034_v17, %s11382_s9 }
 0x50b   :  { %4792 = vrot.lane.b32.xlu1 %v11374_v2, %s11382_s9 }
 0x519   :  { %v2821_v26 = vpop.permute.xlu0 %2820  ;;  %v2823_v28 = vpop.permute.xlu1 %2822 }
 0x51a   :  { %v2834_v35 = vsel %vm68_vm0, %v2821_v26, %v2823_v28 }
 0x51d   :  { %v2829_v29 = vpop.permute.xlu0 %2828  ;;  %v2825_v32 = vpop.permute.xlu1 %2824 }
 0x51e   :  { %v2835_v30 = vsel %vm68_vm0, %v2823_v28, %v2825_v32 }
 0x51f   :  { %2879 = vmatprep.subr.mxu1 %v2835_v30 }
 0x520   :  { %2880 = vmatpush1.msra.mxu1 %v2834_v35 }
 0x521   :  { %v3285_v37 = vpop.permute.xlu0 %3284  ;;  %v2827_v25 = vpop.permute.xlu1 %2826  ;;  %10606 = vmatmul.mubr.msk.f32.vlgmr.msra.gmra.mxu1 %vm81_vm1, %v10605_v33 }
 0x522   :  { %v2837_v42 = vsel %vm68_vm0, %v2827_v25, %v2829_v29  ;;  %v2836_v44 = vsel %vm68_vm0, %v2825_v32, %v2827_v25  ;;  %3055 = vmatprep.mubr.f32.mxu1 %v11374_v2 }
 0x523   :  { %2950 = vmatprep.subr.mxu0 %v2837_v42 }
 0x524   :  { %2951 = vmatpush1.msra.mxu0 %v2836_v44 }
 0x525   :  { %v3287_v45 = vpop.permute.xlu0 %3286  ;;  %10607 = vmatmul.mubr.msk.f32.vlgmr.msra.gmra.mxu0 %vm81_vm1, %v10605_v33  ;;  %3095 = vmatprep.subr.mxu0 %v12023_v38  ;;  %v2831_v36 = vpop.permute.xlu1 %2830 }
 0x526   :  { %3096 = vmatpush1.msra.mxu0 %v12020_v40  ;;  %v2839_v50 = vsel %vm68_vm0, %v2831_v36, %v2833_v34  ;;  %v2838_v51 = vsel %vm68_vm0, %v2829_v29, %v2831_v36  ;;  %3129 = vmatprep.mubr.f32.mxu0 %v11374_v2  ;;  %v3296_v0 = vsel %vm530_vm2, %v3285_v37, %v3287_v45  ;;  %v10620_v34 = vld [vmem:[%s13460_s1 + $0x68] sm:$0xff] }
 0x527   :  { %3021 = vmatprep.subr.mxu1 %v2839_v50  ;;  %3237 = vmatprep.subr.mxu0 %v12048_v41 }
 0x528   :  { %3022 = vmatpush1.msra.mxu1 %v2838_v51 }
 0x529   :  { %v3291_v54 = vpop.permute.xlu0 %3290  ;;  %10609 = vmatmul.mubr.msk.f32.vlgmr.msra.gmra.mxu0 %vm81_vm1, %v10604_v53  ;;  %3166 = vmatprep.subr.mxu1 %v12041_v24  ;;  %v3283_v62 = vpop.permute.xlu1 %3282 }
 0x52a   :  { %3238 = vmatpush1.msra.mxu0 %v12034_v17  ;;  %10608 = vmatmul.mubr.msk.f32.vlgmr.msra.gmra.mxu1 %vm81_vm1, %v10605_v33  ;;  %v3295_v6 = vsel %vm530_vm2, %v3283_v62, %v3285_v37  ;;  %v3299_v43 = vsel %vm530_vm2, %v3291_v54, %v3293_v52  ;;  %v10624_v37 = vld [vmem:[%s13460_s1 + $0x70] sm:$0xff] }
 0x52b   :  { %3167 = vmatpush1.msra.mxu1 %v12031_v16  ;;  %3200 = vmatprep.mubr.f32.mxu1 %v11374_v2 }
 0x52c   :  { %3339 = vmatprep.subr.mxu1 %v3295_v6  ;;  %3271 = vmatprep.mubr.f32.mxu0 %v11374_v2 }
 0x52d   :  { %v3533_v11 = vpop.permute.xlu0 %3532  ;;  %v3281_v18 = vpop.permute.xlu1 %3280  ;;  %10611 = vmatmul.mubr.msk.f32.vlgmr.msra.gmra.mxu0 %vm81_vm1, %v10604_v53 }
 0x52e   :  { %v3294_v31 = vsel %vm530_vm2, %v3281_v18, %v3283_v62  ;;  %10610 = vmatmul.mubr.msk.f32.vlgmr.msra.gmra.mxu1 %vm81_vm1, %v10604_v53  ;;  %3444 = vmatprep.mubr.f32.mxu0 %v11374_v2 }
 0x52f   :  { %3340 = vmatpush1.msra.mxu1 %v3294_v31  ;;  %3373 = vmatprep.mubr.f32.mxu1 %v11374_v2 }
 0x530   :  { %3481 = vmatprep.subr.mxu1 %v3299_v43 }
 0x531   :  { %v3531_v60 = vpop.permute.xlu0 %3530  ;;  %v3289_v61 = vpop.permute.xlu1 %3288 }
 0x532   :  { %10613 = vmatmul.mubr.msk.f32.vlgmr.msra.gmra.mxu1 %vm81_vm1, %v10612_v59  ;;  %v3297_v63 = vsel %vm530_vm2, %v3287_v45, %v3289_v61  ;;  %v3298_v3 = vsel %vm530_vm2, %v3289_v61, %v3291_v54  ;;  %v3544_v10 = vsel %vm781_vm3, %v3531_v60, %v3533_v11 }
 0x533   :  { %3410 = vmatprep.subr.mxu0 %v3297_v63  ;;  %3482 = vmatpush1.msra.mxu1 %v3298_v3 }
 0x534   :  { %3411 = vmatpush1.msra.mxu0 %v3296_v0  ;;  %3515 = vmatprep.mubr.f32.mxu1 %v11374_v2 }
 0x535   :  { %v3539_v4 = vpop.permute.xlu0 %3538  ;;  %v3535_v7 = vpop.permute.xlu1 %3534  ;;  %10614 = vmatmul.mubr.msk.f32.vlgmr.msra.gmra.mxu0 %vm81_vm1, %v10612_v59 }
 0x536   :  { %v3545_v8 = vsel %vm781_vm3, %v3533_v11, %v3535_v7  ;;  %10615 = vmatmul.mubr.msk.f32.vlgmr.msra.gmra.mxu1 %vm81_vm1, %v10612_v59  ;;  %3623 = vmatprep.mubr.f32.mxu0 %v11374_v2 }
 0x537   :  { %3589 = vmatprep.subr.mxu0 %v3545_v8  ;;  %3694 = vmatprep.mubr.f32.mxu1 %v11374_v2 }
 0x538   :  { %3590 = vmatpush1.msra.mxu0 %v3544_v10 }
 0x539   :  { %v3785_v12 = vpop.permute.xlu0 %3784  ;;  %v3537_v13 = vpop.permute.xlu1 %3536  ;;  %10617 = vmatmul.mubr.msk.f32.vlgmr.msra.gmra.mxu0 %vm81_vm1, %v10616_v9 }
 0x53a   :  { %v3547_v14 = vsel %vm781_vm3, %v3537_v13, %v3539_v4  ;;  %v3546_v40 = vsel %vm781_vm3, %v3535_v7, %v3537_v13  ;;  %3765 = vmatprep.mubr.f32.mxu0 %v11374_v2  ;;  %v10632_v7 = vld [vmem:[%s13460_s1 + $0x80] sm:$0xff] }
 0x53b   :  { %3660 = vmatprep.subr.mxu1 %v3547_v14 }
 0x53c   :  { %3661 = vmatpush1.msra.mxu1 %v3546_v40 }
 0x53d   :  { %v3787_v38 = vpop.permute.xlu0 %3786  ;;  %v3541_v49 = vpop.permute.xlu1 %3540  ;;  %10618 = vmatmul.mubr.msk.f32.vlgmr.msra.gmra.mxu1 %vm81_vm1, %v10616_v9 }
 0x53e   :  { %v3549_v47 = vsel %vm781_vm3, %v3541_v49, %v12134_v48  ;;  %v3548_v57 = vsel %vm781_vm3, %v3539_v4, %v3541_v49  ;;  %3873 = vmatprep.mubr.f32.mxu1 %v11374_v2  ;;  %v3796_v30 = vsel %vm1032_vm4, %v3785_v12, %v3787_v38 }
 0x53f   :  { %3731 = vmatprep.subr.mxu0 %v3549_v47 }
 0x540   :  { %3732 = vmatpush1.msra.mxu0 %v3548_v57 }
 0x541   :  { %v3791_v16 = vpop.permute.xlu0 %3790  ;;  %v3783_v17 = vpop.permute.xlu1 %3782  ;;  %10619 = vmatmul.mubr.msk.f32.vlgmr.msra.gmra.mxu0 %vm81_vm1, %v10616_v9 }
 0x542   :  { %v3795_v19 = vsel %vm1032_vm4, %v3783_v17, %v3785_v12  ;;  %3944 = vmatprep.mubr.f32.mxu0 %v11374_v2  ;;  %v3799_v52 = vsel %vm1032_vm4, %v3791_v16, %v12140_v20 }
 0x543   :  { %3839 = vmatprep.subr.mxu1 %v3795_v19 }
 0x545   :  { %v4033_v24 = vpop.permute.xlu0 %4032  ;;  %v3781_v41 = vpop.permute.xlu1 %3780 }
 0x546   :  { %v3794_v48 = vsel %vm1032_vm4, %v3781_v41, %v3783_v17 }
 0x547   :  { %3840 = vmatpush1.msra.mxu1 %v3794_v48 }
 0x548   :  { %3981 = vmatprep.subr.mxu1 %v3799_v52  ;;  %10621 = vmatmul.mubr.msk.f32.vlgmr.msra.gmra.mxu1 %vm81_vm1, %v10620_v34 }
 0x549   :  { %v4031_v26 = vpop.permute.xlu0 %4030  ;;  %v3789_v28 = vpop.permute.xlu1 %3788  ;;  %4015 = vmatprep.mubr.f32.mxu1 %v11374_v2 }
 0x54a   :  { %v3797_v29 = vsel %vm1032_vm4, %v3787_v38, %v3789_v28  ;;  %v3798_v32 = vsel %vm1032_vm4, %v3789_v28, %v3791_v16  ;;  %v4044_v25 = vsel %vm1283_vm5, %v4031_v26, %v4033_v24 }
 0x54b   :  { %3910 = vmatprep.subr.mxu0 %v3797_v29  ;;  %3982 = vmatpush1.msra.mxu1 %v3798_v32 }
 0x54c   :  { %3911 = vmatpush1.msra.mxu0 %v3796_v30  ;;  %10623 = vmatmul.mubr.msk.f32.vlgmr.msra.gmra.mxu1 %vm81_vm1, %v10620_v34 }
 0x54d   :  { %v4039_v33 = vpop.permute.xlu0 %4038  ;;  %10622 = vmatmul.mubr.msk.f32.vlgmr.msra.gmra.mxu0 %vm81_vm1, %v10620_v34  ;;  %v4035_v20 = vpop.permute.xlu1 %4034  ;;  %4194 = vmatprep.mubr.f32.mxu1 %v11374_v2 }
 0x54e   :  { %v4045_v35 = vsel %vm1283_vm5, %v4033_v24, %v4035_v20  ;;  %4123 = vmatprep.mubr.f32.mxu0 %v11374_v2 }
 0x54f   :  { %4089 = vmatprep.subr.mxu0 %v4045_v35 }
 0x550   :  { %4090 = vmatpush1.msra.mxu0 %v4044_v25 }
 0x551   :  { %v4285_v42 = vpop.permute.xlu0 %4284  ;;  %10625 = vmatmul.mubr.msk.f32.vlgmr.msra.gmra.mxu0 %vm81_vm1, %v10624_v37  ;;  %v4037_v44 = vpop.permute.xlu1 %4036 }
 0x552   :  { %v4047_v45 = vsel %vm1283_vm5, %v4037_v44, %v4039_v33  ;;  %v4046_v36 = vsel %vm1283_vm5, %v4035_v20, %v4037_v44  ;;  %4265 = vmatprep.mubr.f32.mxu0 %v11374_v2 }
 0x553   :  { %4160 = vmatprep.subr.mxu1 %v4047_v45 }
 0x554   :  { %4161 = vmatpush1.msra.mxu1 %v4046_v36 }
 0x555   :  { %v4287_v50 = vpop.permute.xlu0 %4286  ;;  %10626 = vmatmul.mubr.msk.f32.vlgmr.msra.gmra.mxu1 %vm81_vm1, %v10624_v37  ;;  %v4041_v51 = vpop.permute.xlu1 %4040 }
 0x556   :  { %v4049_v53 = vsel %vm1283_vm5, %v4041_v51, %v12138_v55  ;;  %v4048_v54 = vsel %vm1283_vm5, %v4039_v33, %v4041_v51  ;;  %4373 = vmatprep.mubr.f32.mxu1 %v11374_v2  ;;  %v10628_v55 = vld [vmem:[%s13460_s1 + $0x78] sm:$0xff]  ;;  %v4296_v0 = vsel %vm1534_vm6, %v4285_v42, %v4287_v50 }
 0x557   :  { %4231 = vmatprep.subr.mxu0 %v4049_v53 }
 0x558   :  { %4232 = vmatpush1.msra.mxu0 %v4048_v54 }
 0x559   :  { %v4291_v62 = vpop.permute.xlu0 %4290  ;;  %10627 = vmatmul.mubr.msk.f32.vlgmr.msra.gmra.mxu0 %vm81_vm1, %v10624_v37  ;;  %v4283_v6 = vpop.permute.xlu1 %4282 }
 0x55a   :  { %v4295_v11 = vsel %vm1534_vm6, %v4283_v6, %v4285_v42  ;;  %4444 = vmatprep.mubr.f32.mxu0 %v11374_v2  ;;  %v4299_v59 = vsel %vm1534_vm6, %v4291_v62, %v12144_v22 }
 0x55b   :  { %4339 = vmatprep.subr.mxu1 %v4295_v11 }
 0x55d   :  { %v4533_v18 = vpop.permute.xlu0 %4532  ;;  %v4281_v31 = vpop.permute.xlu1 %4280 }
 0x55e   :  { %v4294_v43 = vsel %vm1534_vm6, %v4281_v31, %v4283_v6 }
 0x55f   :  { %4340 = vmatpush1.msra.mxu1 %v4294_v43 }
 0x560   :  { %10629 = vmatmul.mubr.msk.f32.vlgmr.msra.gmra.mxu1 %vm81_vm1, %v10628_v55  ;;  %4481 = vmatprep.subr.mxu1 %v4299_v59 }
 0x561   :  { %v4289_v60 = vpop.permute.xlu1 %4288  ;;  %4515 = vmatprep.mubr.f32.mxu1 %v11374_v2  ;;  %v4531_v3 = vpop.permute.xlu0 %4530 }
 0x562   :  { %v4297_v61 = vsel %vm1534_vm6, %v4287_v50, %v4289_v60  ;;  %v4298_v63 = vsel %vm1534_vm6, %v4289_v60, %v4291_v62  ;;  %v4544_v8 = vsel %vm1785_vm7, %v4531_v3, %v4533_v18 }
 0x563   :  { %4410 = vmatprep.subr.mxu0 %v4297_v61  ;;  %4482 = vmatpush1.msra.mxu1 %v4298_v63 }
 0x564   :  { %4411 = vmatpush1.msra.mxu0 %v4296_v0  ;;  %10631 = vmatmul.mubr.msk.f32.vlgmr.msra.gmra.mxu1 %vm81_vm1, %v10628_v55 }
 0x565   :  { %10630 = vmatmul.mubr.msk.f32.vlgmr.msra.gmra.mxu0 %vm81_vm1, %v10628_v55  ;;  %v4535_v22 = vpop.permute.xlu1 %4534  ;;  %4694 = vmatprep.mubr.f32.mxu1 %v11374_v2  ;;  %v4539_v9 = vpop.permute.xlu0 %4538 }
 0x566   :  { %v4545_v4 = vsel %vm1785_vm7, %v4533_v18, %v4535_v22  ;;  %4623 = vmatprep.mubr.f32.mxu0 %v11374_v2 }
 0x567   :  { %4589 = vmatprep.subr.mxu0 %v4545_v4 }
 0x568   :  { %4590 = vmatpush1.msra.mxu0 %v4544_v8 }
 0x569   :  { %10633 = vmatmul.mubr.msk.f32.vlgmr.msra.gmra.mxu0 %vm81_vm1, %v10632_v7  ;;  %v4537_v10 = vpop.permute.xlu1 %4536  ;;  %v4785_v49 = vpop.permute.xlu0 %4784 }
 0x56a   :  { %v4547_v12 = vsel %vm1785_vm7, %v4537_v10, %v4539_v9  ;;  %v4546_v13 = vsel %vm1785_vm7, %v4535_v22, %v4537_v10  ;;  %4765 = vmatprep.mubr.f32.mxu0 %v11374_v2 }
 0x56b   :  { %4660 = vmatprep.subr.mxu1 %v4547_v12 }
 0x56c   :  { %4661 = vmatpush1.msra.mxu1 %v4546_v13 }
 0x56d   :  { %10634 = vmatmul.mubr.msk.f32.vlgmr.msra.gmra.mxu1 %vm81_vm1, %v10632_v7  ;;  %v4541_v14 = vpop.permute.xlu1 %4540  ;;  %v4787_v19 = vpop.permute.xlu0 %4786 }
 0x56e   :  { %v4549_v40 = vsel %vm1785_vm7, %v4541_v14, %v12142_v21  ;;  %v4548_v38 = vsel %vm1785_vm7, %v4539_v9, %v4541_v14  ;;  %4873 = vmatprep.mubr.f32.mxu1 %v11374_v2  ;;  %v10636_v21 = vld [vmem:[%s13460_s1 + $0x88] sm:$0xff]  ;;  %v4796_v34 = vsel %vm2036_vm8, %v4785_v49, %v4787_v19 }
 0x56f   :  { %4731 = vmatprep.subr.mxu0 %v4549_v40 }
 0x570   :  { %4732 = vmatpush1.msra.mxu0 %v4548_v38 }
 0x571   :  { %10635 = vmatmul.mubr.msk.f32.vlgmr.msra.gmra.mxu0 %vm81_vm1, %v10632_v7  ;;  %v4783_v47 = vpop.permute.xlu1 %4782  ;;  %v4791_v48 = vpop.permute.xlu0 %4790 }
 0x572   :  { %v4795_v57 = vsel %vm2036_vm8, %v4783_v47, %v4785_v49  ;;  %4944 = vmatprep.mubr.f32.mxu0 %v11374_v2 }
 0x573   :  { %4839 = vmatprep.subr.mxu1 %v4795_v57 }
 0x575   :  { %v4781_v16 = vpop.permute.xlu1 %4780 }
 0x576   :  { %v4794_v17 = vsel %vm2036_vm8, %v4781_v16, %v4783_v47 }
 0x577   :  { %4840 = vmatpush1.msra.mxu1 %v4794_v17 }
 0x578   :  { %10637 = vmatmul.mubr.msk.f32.vlgmr.msra.gmra.mxu1 %vm81_vm1, %v10636_v21 }
 0x579   :  { %v4789_v24 = vpop.permute.xlu1 %4788  ;;  %5015 = vmatprep.mubr.f32.mxu1 %v11374_v2 }
 0x57a   :  { %v4797_v41 = vsel %vm2036_vm8, %v4787_v19, %v4789_v24  ;;  %v4798_v28 = vsel %vm2036_vm8, %v4789_v24, %v4791_v48 }
 0x57b   :  { %4910 = vmatprep.subr.mxu0 %v4797_v41 }
 0x57c   :  { %4911 = vmatpush1.msra.mxu0 %v4796_v34 }
 0x57d   :  { %10638 = vmatmul.mubr.msk.f32.vlgmr.msra.gmra.mxu0 %vm81_vm1, %v10636_v21  ;;  %v4793_v52 = vpop.permute.xlu1 %4792  ;;  %10927 = vmatprep.subr.mxu0 %v11383_v58 }
 0x57e   :  { %v4799_v26 = vsel %vm2036_vm8, %v4791_v48, %v4793_v52  ;;  %10928 = vmatpush3.msra.mxu0 %v11383_v58 }
 0x57f   :  { %4981 = vmatprep.subr.mxu1 %v4799_v26  ;;  %10929 = vmatprep.subr.mxu0 %v11383_v58 }
 0x580   :  { %4982 = vmatpush1.msra.mxu1 %v4798_v28  ;;  %10930 = vmatpush3.msra.mxu0 %v11383_v58 }
 0x581   :  { %10639 = vmatmul.mubr.msk.f32.vlgmr.msra.gmra.mxu1 %vm81_vm1, %v10636_v21  ;;  %10931 = vmatprep.subr.mxu0 %v11383_v58 }
 0x582   :  { %10932 = vmatpush3.msra.mxu0 %v11383_v58  ;;  %10962 = vmatprep.subr.mxu1 %v11383_v58 }
 0x583   :  { %10933 = vmatprep.subr.mxu0 %v11383_v58  ;;  %10963 = vmatpush3.msra.mxu1 %v11383_v58 }
 0x584   :  { %10934 = vmatpush3.msra.mxu0 %v11383_v58  ;;  %10964 = vmatprep.subr.mxu1 %v11383_v58 }
 0x585   :  { %10935 = vmatprep.subr.mxu0 %v11383_v58  ;;  %10965 = vmatpush3.msra.mxu1 %v11383_v58 }
 0x586   :  { %10936 = vmatpush3.msra.mxu0 %v11383_v58  ;;  %10966 = vmatprep.subr.mxu1 %v11383_v58 }
 0x587   :  { %10937 = vmatprep.subr.mxu0 %v11383_v58  ;;  %10967 = vmatpush3.msra.mxu1 %v11383_v58 }
 0x588   :  { %10938 = vmatpush3.msra.mxu0 %v11383_v58  ;;  %10968 = vmatprep.subr.mxu1 %v11383_v58 }
 0x589   :  { %10939 = vmatprep.subr.mxu0 %v11383_v58  ;;  %10969 = vmatpush3.msra.mxu1 %v11383_v58 }
 0x58a   :  { %10940 = vmatpush3.msra.mxu0 %v11383_v58  ;;  %10970 = vmatprep.subr.mxu1 %v11383_v58 }
 0x58b   :  { %10941 = vmatprep.subr.mxu0 %v11383_v58  ;;  %10971 = vmatpush3.msra.mxu1 %v11383_v58 }
 0x58c   :  { %10942 = vmatpush3.msra.mxu0 %v11383_v58  ;;  %10972 = vmatprep.subr.mxu1 %v11383_v58 }
 0x58d   :  { %10943 = vmatprep.subr.mxu0 %v11383_v58  ;;  %10973 = vmatpush3.msra.mxu1 %v11383_v58 }
 0x58e   :  { %10944 = vmatpush3.msra.mxu0 %v11383_v58  ;;  %10974 = vmatprep.subr.mxu1 %v11383_v58 }
 0x58f   :  { %10945 = vmatprep.subr.mxu0 %v11383_v58  ;;  %10975 = vmatpush3.msra.mxu1 %v11383_v58 }
 0x590   :  { %10946 = vmatpush3.msra.mxu0 %v11383_v58  ;;  %10976 = vmatprep.subr.mxu1 %v11383_v58 }
 0x591   :  { %10947 = vmatprep.subr.mxu0 %v11383_v58  ;;  %10977 = vmatpush3.msra.mxu1 %v11383_v58 }
 0x592   :  { %10948 = vmatpush3.msra.mxu0 %v11383_v58  ;;  %10978 = vmatprep.subr.mxu1 %v11383_v58 }
 0x593   :  { %10949 = vmatprep.subr.mxu0 %v11383_v58  ;;  %10979 = vmatpush3.msra.mxu1 %v11383_v58 }
 0x594   :  { %10950 = vmatpush3.msra.mxu0 %v11383_v58  ;;  %10980 = vmatprep.subr.mxu1 %v11383_v58 }
 0x595   :  { %10951 = vmatprep.subr.mxu0 %v11383_v58  ;;  %10981 = vmatpush3.msra.mxu1 %v11383_v58 }
 0x596   :  { %10952 = vmatpush3.msra.mxu0 %v11383_v58  ;;  %10982 = vmatprep.subr.mxu1 %v11383_v58 }
 0x597   :  { %10953 = vmatprep.subr.mxu0 %v11383_v58  ;;  %10983 = vmatpush3.msra.mxu1 %v11383_v58 }
 0x598   :  { %10954 = vmatpush3.msra.mxu0 %v11383_v58  ;;  %10984 = vmatprep.subr.mxu1 %v11383_v58 }
 0x599   :  { %10955 = vmatprep.subr.mxu0 %v11383_v58  ;;  %10985 = vmatpush3.msra.mxu1 %v11383_v58 }
 0x59a   :  { %10956 = vmatpush3.msra.mxu0 %v11383_v58  ;;  %10986 = vmatprep.subr.mxu1 %v11383_v58 }
 0x59b   :  { %10957 = vmatprep.subr.mxu0 %v11383_v58  ;;  %10987 = vmatpush3.msra.mxu1 %v11383_v58 }
 0x59c   :  { %10958 = vmatpush3.msra.mxu0 %v11383_v58  ;;  %10988 = vmatprep.subr.mxu1 %v11383_v58 }
 0x59d   :  { %10989 = vmatpush3.msra.mxu1 %v11383_v58  ;;  %10997 = vmatprep.subr.mxu0 %v11383_v58 }
 0x59e   :  { %10990 = vmatprep.subr.mxu1 %v11383_v58 }
 0x59f   :  { %10991 = vmatpush3.msra.mxu1 %v11383_v58 }
 0x5a0   :  { %10992 = vmatprep.subr.mxu1 %v11383_v58 }
 0x5a1   :  { %10993 = vmatpush3.msra.mxu1 %v11383_v58 }
 0x5a2   :  { %11032 = vmatprep.subr.mxu1 %v11383_v58 }
 0x5e1   :  { %v2915_v29 = vpop.f32.mrf.mxu1 }
 0x5e3   :  { %v2917_v30 = vpop.f32.mrf.mxu1 }
 0x5e5   :  { %v2986_v32 = vpop.f32.mrf.mxu0 }
 0x5e7   :  { %v2988_v33 = vpop.f32.mrf.mxu0 }
 0x5e9   :  { %v3131_v37 = vpop.f32.mrf.mxu0 }
 0x5ea   :  { %v12350_v20 = vpop.f32.mrf.mxu1  ;;  %v3132_v12 = vadd.f32 %v3131_v37, %v2915_v29 }
 0x5eb   :  { %v3133_v42 = vpop.f32.mrf.mxu0 }
 0x5ec   :  { %v3059_v35 = vpop.f32.mrf.mxu1  ;;  %v3134_v14 = vadd.f32 %v3133_v42, %v2917_v30 }
 0x5ed   :  { %v12352_v45 = vpop.f32.mrf.mxu0 }
 0x5ee   :  { %v3202_v25 = vpop.f32.mrf.mxu1 }
 0x5ef   :  { %v3275_v50 = vpop.f32.mrf.mxu0  ;;  %v3203_v47 = vadd.f32 %v3202_v25, %v2986_v32 }
 0x5f0   :  { %v3204_v44 = vpop.f32.mrf.mxu1  ;;  %v3276_v48 = vadd.f32 %v3275_v50, %v3059_v35  ;;  %v12369_v35 = vld [vmem:[%s13461_s3 + $0x6] sm:$0x3f] }
 0x5f1   :  { %v3205_v21 = vadd.f32 %v3204_v44, %v2988_v33 }
 0x5f2   :  { %v3375_v36 = vpop.f32.mrf.mxu1 }
 0x5f3   :  { %v3522_v38 = vadd.f32 %v3375_v36, %v3132_v12 }
 0x5f4   :  { %v3377_v51 = vpop.f32.mrf.mxu1 }
 0x5f5   :  { %v3446_v53 = vpop.f32.mrf.mxu0  ;;  %v3523_v57 = vadd.f32 %v3377_v51, %v3134_v14 }
 0x5f6   :  { %v12354_v54 = vpop.f32.mrf.mxu1  ;;  %v3524_v24 = vadd.f32 %v3446_v53, %v3203_v47 }
 0x5f7   :  { %v3448_v62 = vpop.f32.mrf.mxu0 }
 0x5f8   :  { %v3519_v6 = vpop.f32.mrf.mxu1  ;;  %v3525_v52 = vadd.f32 %v3448_v62, %v3205_v21 }
 0x5f9   :  { %v3625_v11 = vpop.f32.mrf.mxu0  ;;  %v3527_v36 = vadd.f32 %v3519_v6, %v3276_v48 }
 0x5fa   :  { %v3772_v17 = vadd.f32 %v3625_v11, %v3522_v38 }
 0x5fb   :  { %v3627_v31 = vpop.f32.mrf.mxu0 }
 0x5fc   :  { %v3773_v41 = vadd.f32 %v3627_v31, %v3523_v57 }
 0x5fd   :  { %v3696_v18 = vpop.f32.mrf.mxu1 }
 0x5fe   :  { %v3774_v29 = vadd.f32 %v3696_v18, %v3524_v24  ;;  %v12387_v24 = vrot.slane %v12369_v35, %v11782_v15 }
 0x5ff   :  { %v3698_v55 = vpop.f32.mrf.mxu1 }
 0x600   :  { %v3775_v12 = vadd.f32 %v3698_v55, %v3525_v52 }
 0x601   :  { %v12356_v43 = vpop.f32.mrf.mxu0 }
 0x603   :  { %v3769_v60 = vpop.f32.mrf.mxu0 }
 0x604   :  { %v3777_v50 = vadd.f32 %v3769_v60, %v3527_v36 }
 0x608   :  { %v3875_v59 = vpop.f32.mrf.mxu1 }
 0x609   :  { %v4022_v26 = vadd.f32 %v3875_v59, %v3772_v17  ;;  %v12373_v59 = vrot.slane %v12369_v35, %v11769_v1 }
 0x60a   :  { %v3877_v61 = vpop.f32.mrf.mxu1 }
 0x60b   :  { %v4023_v37 = vadd.f32 %v3877_v61, %v3773_v41 }
 0x60c   :  { %v12358_v3 = vpop.f32.mrf.mxu1 }
 0x60d   :  { %v3946_v63 = vpop.f32.mrf.mxu0 }
 0x60e   :  { %v4019_v22 = vpop.f32.mrf.mxu1  ;;  %v4024_v25 = vadd.f32 %v3946_v63, %v3774_v29  ;;  %v12404_v29 = vrot.slane %v12369_v35, %v11803_v39 }
 0x60f   :  { %v3948_v0 = vpop.f32.mrf.mxu0  ;;  %v4027_v60 = vadd.f32 %v4019_v22, %v3777_v50 }
 0x610   :  { %v4025_v62 = vadd.f32 %v3948_v0, %v3775_v12  ;;  %v3274_v12 = vadd.f32 %v12352_v45, %v12350_v20 }
 0x611   :  { %v4125_v4 = vpop.f32.mrf.mxu0 }
 0x612   :  { %v4272_v32 = vadd.f32 %v4125_v4, %v4022_v26  ;;  %v12377_v4 = vrot.slane %v12369_v35, %v11774_v5 }
 0x613   :  { %v4127_v8 = vpop.f32.mrf.mxu0 }
 0x614   :  { %v4273_v51 = vadd.f32 %v4127_v8, %v4023_v37 }
 0x615   :  { %v4196_v7 = vpop.f32.mrf.mxu1 }
 0x616   :  { %v4274_v6 = vadd.f32 %v4196_v7, %v4024_v25 }
 0x617   :  { %v4198_v9 = vpop.f32.mrf.mxu1 }
 0x618   :  { %v4275_v61 = vadd.f32 %v4198_v9, %v4025_v62 }
 0x619   :  { %v12360_v10 = vpop.f32.mrf.mxu0 }
 0x61b   :  { %v4269_v40 = vpop.f32.mrf.mxu0 }
 0x61c   :  { %v4277_v21 = vadd.f32 %v4269_v40, %v4027_v60 }
 0x620   :  { %v4375_v13 = vpop.f32.mrf.mxu1 }
 0x621   :  { %v4522_v44 = vadd.f32 %v4375_v13, %v4272_v32  ;;  %v3526_v32 = vadd.f32 %v12354_v54, %v3274_v12 }
 0x622   :  { %v4377_v49 = vpop.f32.mrf.mxu1 }
 0x623   :  { %v4523_v14 = vadd.f32 %v4377_v49, %v4273_v51  ;;  %v3776_v20 = vadd.f32 %v12356_v43, %v3526_v32 }
 0x624   :  { %v12362_v19 = vpop.f32.mrf.mxu1 }
 0x625   :  { %v4446_v16 = vpop.f32.mrf.mxu0  ;;  %v4026_v45 = vadd.f32 %v12358_v3, %v3776_v20 }
 0x626   :  { %v4519_v28 = vpop.f32.mrf.mxu1  ;;  %v4524_v13 = vadd.f32 %v4446_v16, %v4274_v6  ;;  %v12391_v16 = vrot.slane %v12369_v35, %v11793_v27 }
 0x627   :  { %v4448_v34 = vpop.f32.mrf.mxu0  ;;  %v4276_v54 = vadd.f32 %v12360_v10, %v4026_v45 }
 0x628   :  { %v4525_v0 = vadd.f32 %v4448_v34, %v4275_v61  ;;  %v4527_v34 = vadd.f32 %v4519_v28, %v4277_v21 }
 0x629   :  { %v4625_v30 = vpop.f32.mrf.mxu0  ;;  %v4526_v43 = vadd.f32 %v12362_v19, %v4276_v54  ;;  %v12471_v19 = vrot.slane %v12369_v35, %v11880_v23 }
 0x62a   :  { %v4772_v18 = vadd.f32 %v4625_v30, %v4522_v44 }
 0x62b   :  { %v4627_v33 = vpop.f32.mrf.mxu0 }
 0x62c   :  { %v4773_v55 = vadd.f32 %v4627_v33, %v4523_v14 }
 0x62d   :  { %v4696_v42 = vpop.f32.mrf.mxu1 }
 0x62e   :  { %v4774_v47 = vadd.f32 %v4696_v42, %v4524_v13 }
 0x62f   :  { %v4698_v11 = vpop.f32.mrf.mxu1 }
 0x630   :  { %v4775_v17 = vadd.f32 %v4698_v11, %v4525_v0 }
 0x631   :  { %v12364_v53 = vpop.f32.mrf.mxu0 }
 0x632   :  { %v4776_v3 = vadd.f32 %v12364_v53, %v4526_v43 }
 0x633   :  { %v4769_v38 = vpop.f32.mrf.mxu0 }
 0x634   :  { %v4777_v52 = vadd.f32 %v4769_v38, %v4527_v34 }
 0x638   :  { %v4875_v31 = vpop.f32.mrf.mxu1 }
 0x639   :  { %v5022_v63 = vadd.f32 %v4875_v31, %v4772_v18 }
 0x63a   :  { %v4877_v8 = vpop.f32.mrf.mxu1 }
 0x63b   :  { %v5023_v49 = vadd.f32 %v4877_v8, %v4773_v55  ;;  %v12383_v9 = vmul.f32 %v12377_v4, %v5022_v63 }
 0x63d   :  { %v12380_v7 = vmul.f32 %v12373_v59, %v5023_v49  ;;  %v4946_v57 = vpop.f32.mrf.mxu0  ;;  %v5279_v33 = vmul.f32 %v12383_v9, %v12383_v9 }
 0x63e   :  { %v5024_v41 = vadd.f32 %v4946_v57, %v4774_v47 }
 0x63f   :  { %v4948_v22 = vpop.f32.mrf.mxu0  ;;  %5133 = vmatprep.mubr.f32.mxu0 %v12380_v7  ;;  %v5280_v36 = vmul.f32 %v12380_v7, %v12380_v7 }
 0x640   :  { %v5025_v48 = vadd.f32 %v4948_v22, %v4775_v17  ;;  %5134 = vmatmul.mubr.f32.vlgmr.msra.gmra.mxu0 %v12383_v9  ;;  %v12407_v37 = vmul.f32 %v12391_v16, %v5024_v41 }
 0x641   :  { %10998 = vmatpush3.msra.mxu0 %v11383_v58  ;;  %v12396_v40 = vpop.f32.mrf.mxu1 }
 0x642   :  { %v12399_v26 = vmul.f32 %v12387_v24, %v5025_v48  ;;  %10999 = vmatprep.subr.mxu0 %v11383_v58  ;;  %v5026_v10 = vadd.f32 %v12396_v40, %v4776_v3  ;;  %v5281_v11 = vmul.f32 %v12407_v37, %v12407_v37 }
 0x643   :  { %11000 = vmatpush3.msra.mxu0 %v11383_v58  ;;  %v5019_v28 = vpop.f32.mrf.mxu1 }
 0x644   :  { %v5027_v30 = vadd.f32 %v5019_v28, %v4777_v52  ;;  %11001 = vmatprep.subr.mxu0 %v11383_v58  ;;  %5203 = vmatprep.mubr.f32.mxu1 %v12399_v26  ;;  %v12482_v25 = vmul.f32 %v12471_v19, %v5026_v10  ;;  %v5282_v51 = vmul.f32 %v12399_v26, %v12399_v26 }
 0x645   :  { %11002 = vmatpush3.msra.mxu0 %v11383_v58  ;;  %5204 = vmatmul.mubr.f32.vlgmr.msra.gmra.mxu1 %v12407_v37 }
 0x646   :  { %v12415_v42 = vmul.f32 %v12404_v29, %v5027_v30  ;;  %11003 = vmatprep.subr.mxu0 %v11383_v58  ;;  %11033 = vmatpush3.msra.mxu1 %v11383_v58  ;;  %v5283_v14 = vmul.f32 %v12482_v25, %v12482_v25 }
 0x647   :  { %11004 = vmatpush3.msra.mxu0 %v11383_v58  ;;  %11034 = vmatprep.subr.mxu1 %v11383_v58 }
 0x648   :  { %5349 = vmatprep.mubr.f32.mxu1 %v5280_v36  ;;  %11005 = vmatprep.subr.mxu0 %v11383_v58  ;;  %v5284_v44 = vmul.f32 %v12415_v42, %v12415_v42  ;;  %v10640_v36 = vld [vmem:[%s13462_s2 + $0x8] sm:$0xff] }
 0x649   :  { %11035 = vmatpush3.msra.mxu1 %v11383_v58  ;;  %11006 = vmatpush3.msra.mxu0 %v11383_v58 }
 0x64a   :  { %5273 = vmatprep.mubr.f32.mxu0 %v12415_v42  ;;  %11036 = vmatprep.subr.mxu1 %v11383_v58 }
 0x64b   :  { %11007 = vmatprep.subr.mxu0 %v11383_v58  ;;  %11037 = vmatpush3.msra.mxu1 %v11383_v58 }
 0x64c   :  { %11008 = vmatpush3.msra.mxu0 %v11383_v58  ;;  %11038 = vmatprep.subr.mxu1 %v11383_v58 }
 0x64d   :  { %11009 = vmatprep.subr.mxu0 %v11383_v58  ;;  %11039 = vmatpush3.msra.mxu1 %v11383_v58 }
 0x64e   :  { %11010 = vmatpush3.msra.mxu0 %v11383_v58  ;;  %11040 = vmatprep.subr.mxu1 %v11383_v58 }
 0x64f   :  { %11011 = vmatprep.subr.mxu0 %v11383_v58  ;;  %11041 = vmatpush3.msra.mxu1 %v11383_v58 }
 0x650   :  { %11012 = vmatpush3.msra.mxu0 %v11383_v58  ;;  %11042 = vmatprep.subr.mxu1 %v11383_v58 }
 0x651   :  { %11013 = vmatprep.subr.mxu0 %v11383_v58  ;;  %11043 = vmatpush3.msra.mxu1 %v11383_v58 }
 0x652   :  { %11014 = vmatpush3.msra.mxu0 %v11383_v58  ;;  %11044 = vmatprep.subr.mxu1 %v11383_v58 }
 0x653   :  { %11015 = vmatprep.subr.mxu0 %v11383_v58  ;;  %11045 = vmatpush3.msra.mxu1 %v11383_v58 }
 0x654   :  { %11016 = vmatpush3.msra.mxu0 %v11383_v58  ;;  %11046 = vmatprep.subr.mxu1 %v11383_v58 }
 0x655   :  { %11017 = vmatprep.subr.mxu0 %v11383_v58  ;;  %11047 = vmatpush3.msra.mxu1 %v11383_v58 }
 0x656   :  { %11018 = vmatpush3.msra.mxu0 %v11383_v58  ;;  %11048 = vmatprep.subr.mxu1 %v11383_v58 }
 0x657   :  { %11019 = vmatprep.subr.mxu0 %v11383_v58  ;;  %11049 = vmatpush3.msra.mxu1 %v11383_v58 }
 0x658   :  { %11020 = vmatpush3.msra.mxu0 %v11383_v58  ;;  %11050 = vmatprep.subr.mxu1 %v11383_v58 }
 0x659   :  { %11021 = vmatprep.subr.mxu0 %v11383_v58  ;;  %11051 = vmatpush3.msra.mxu1 %v11383_v58 }
 0x65a   :  { %11022 = vmatpush3.msra.mxu0 %v11383_v58  ;;  %11052 = vmatprep.subr.mxu1 %v11383_v58 }
 0x65b   :  { %11023 = vmatprep.subr.mxu0 %v11383_v58  ;;  %11053 = vmatpush3.msra.mxu1 %v11383_v58 }
 0x65c   :  { %11024 = vmatpush3.msra.mxu0 %v11383_v58  ;;  %11054 = vmatprep.subr.mxu1 %v11383_v58 }
 0x65d   :  { %11025 = vmatprep.subr.mxu0 %v11383_v58  ;;  %11055 = vmatpush3.msra.mxu1 %v11383_v58 }
 0x65e   :  { %11026 = vmatpush3.msra.mxu0 %v11383_v58  ;;  %11056 = vmatprep.subr.mxu1 %v11383_v58 }
 0x65f   :  { %11027 = vmatprep.subr.mxu0 %v11383_v58  ;;  %11057 = vmatpush3.msra.mxu1 %v11383_v58 }
 0x660   :  { %11028 = vmatpush3.msra.mxu0 %v11383_v58  ;;  %11058 = vmatprep.subr.mxu1 %v11383_v58 }
 0x661   :  { %5274 = vmatmul.mubr.f32.vlgmr.msra.gmra.mxu0 %v12482_v25  ;;  %11059 = vmatpush3.msra.mxu1 %v11383_v58 }
 0x662   :  { %11067 = vmatprep.subr.mxu0 %v11383_v58  ;;  %11060 = vmatprep.subr.mxu1 %v11383_v58 }
 0x663   :  { %11068 = vmatpush3.msra.mxu0 %v11383_v58  ;;  %5419 = vmatprep.mubr.f32.mxu0 %v5282_v51 }
 0x664   :  { %11061 = vmatpush3.msra.mxu1 %v11383_v58  ;;  %11069 = vmatprep.subr.mxu0 %v11383_v58 }
 0x665   :  { %11062 = vmatprep.subr.mxu1 %v11383_v58  ;;  %11070 = vmatpush3.msra.mxu0 %v11383_v58 }
 0x666   :  { %11063 = vmatpush3.msra.mxu1 %v11383_v58  ;;  %11071 = vmatprep.subr.mxu0 %v11383_v58 }
 0x667   :  { %5350 = vmatmul.mubr.f32.vlgmr.msra.gmra.mxu1 %v5279_v33  ;;  %11072 = vmatpush3.msra.mxu0 %v11383_v58 }
 0x668   :  { %11102 = vmatprep.subr.mxu1 %v11383_v58  ;;  %11073 = vmatprep.subr.mxu0 %v11383_v58 }
 0x669   :  { %11103 = vmatpush3.msra.mxu1 %v11383_v58  ;;  %5489 = vmatprep.mubr.f32.mxu1 %v5284_v44 }
 0x66a   :  { %11074 = vmatpush3.msra.mxu0 %v11383_v58  ;;  %11104 = vmatprep.subr.mxu1 %v11383_v58 }
 0x66b   :  { %11075 = vmatprep.subr.mxu0 %v11383_v58  ;;  %11105 = vmatpush3.msra.mxu1 %v11383_v58 }
 0x66c   :  { %11076 = vmatpush3.msra.mxu0 %v11383_v58  ;;  %11106 = vmatprep.subr.mxu1 %v11383_v58 }
 0x66d   :  { %11077 = vmatprep.subr.mxu0 %v11383_v58  ;;  %11107 = vmatpush3.msra.mxu1 %v11383_v58 }
 0x66e   :  { %11078 = vmatpush3.msra.mxu0 %v11383_v58  ;;  %11108 = vmatprep.subr.mxu1 %v11383_v58 }
 0x66f   :  { %11079 = vmatprep.subr.mxu0 %v11383_v58  ;;  %11109 = vmatpush3.msra.mxu1 %v11383_v58 }
 0x670   :  { %11080 = vmatpush3.msra.mxu0 %v11383_v58  ;;  %11110 = vmatprep.subr.mxu1 %v11383_v58 }
 0x671   :  { %11081 = vmatprep.subr.mxu0 %v11383_v58  ;;  %11111 = vmatpush3.msra.mxu1 %v11383_v58 }
 0x672   :  { %11082 = vmatpush3.msra.mxu0 %v11383_v58  ;;  %11112 = vmatprep.subr.mxu1 %v11383_v58 }
 0x673   :  { %11083 = vmatprep.subr.mxu0 %v11383_v58  ;;  %11113 = vmatpush3.msra.mxu1 %v11383_v58 }
 0x674   :  { %11084 = vmatpush3.msra.mxu0 %v11383_v58  ;;  %11114 = vmatprep.subr.mxu1 %v11383_v58 }
 0x675   :  { %11085 = vmatprep.subr.mxu0 %v11383_v58  ;;  %11115 = vmatpush3.msra.mxu1 %v11383_v58 }
 0x676   :  { %11086 = vmatpush3.msra.mxu0 %v11383_v58  ;;  %11116 = vmatprep.subr.mxu1 %v11383_v58 }
 0x677   :  { %11087 = vmatprep.subr.mxu0 %v11383_v58  ;;  %11117 = vmatpush3.msra.mxu1 %v11383_v58 }
 0x678   :  { %11088 = vmatpush3.msra.mxu0 %v11383_v58  ;;  %11118 = vmatprep.subr.mxu1 %v11383_v58 }
 0x679   :  { %11089 = vmatprep.subr.mxu0 %v11383_v58  ;;  %11119 = vmatpush3.msra.mxu1 %v11383_v58 }
 0x67a   :  { %11090 = vmatpush3.msra.mxu0 %v11383_v58  ;;  %11120 = vmatprep.subr.mxu1 %v11383_v58 }
 0x67b   :  { %11091 = vmatprep.subr.mxu0 %v11383_v58  ;;  %11121 = vmatpush3.msra.mxu1 %v11383_v58 }
 0x67c   :  { %11092 = vmatpush3.msra.mxu0 %v11383_v58  ;;  %11122 = vmatprep.subr.mxu1 %v11383_v58 }
 0x67d   :  { %11093 = vmatprep.subr.mxu0 %v11383_v58  ;;  %11123 = vmatpush3.msra.mxu1 %v11383_v58 }
 0x67e   :  { %11094 = vmatpush3.msra.mxu0 %v11383_v58  ;;  %11124 = vmatprep.subr.mxu1 %v11383_v58 }
 0x67f   :  { %11095 = vmatprep.subr.mxu0 %v11383_v58  ;;  %11125 = vmatpush3.msra.mxu1 %v11383_v58 }
 0x680   :  { %11096 = vmatpush3.msra.mxu0 %v11383_v58  ;;  %11126 = vmatprep.subr.mxu1 %v11383_v58 }
 0x681   :  { %11097 = vmatprep.subr.mxu0 %v11383_v58  ;;  %11127 = vmatpush3.msra.mxu1 %v11383_v58 }
 0x682   :  { %11098 = vmatpush3.msra.mxu0 %v11383_v58  ;;  %11128 = vmatprep.subr.mxu1 %v11383_v58 }
 0x683   :  { %5420 = vmatmul.mubr.f32.vlgmr.msra.gmra.mxu0 %v5281_v11  ;;  %11129 = vmatpush3.msra.mxu1 %v11383_v58 }
 0x684   :  { %11130 = vmatprep.subr.mxu1 %v11383_v58  ;;  %5672 = vmatprep.mubr.f32.mxu0 %v11374_v2 }
 0x685   :  { %11131 = vmatpush3.msra.mxu1 %v11383_v58 }
 0x686   :  { %11132 = vmatprep.subr.mxu1 %v11383_v58 }
 0x687   :  { %11133 = vmatpush3.msra.mxu1 %v11383_v58 }
 0x688   :  { %5490 = vmatmul.mubr.f32.vlgmr.msra.gmra.mxu1 %v5283_v14 }
 0x689   :  { %5743 = vmatprep.mubr.f32.mxu1 %v11374_v2 }
 0x700   :  { %v10959_v53 = vpop.f32.mrf.mxu0 }
 0x702   :  { %v10960_v35 = vpop.f32.mrf.mxu0 }
 0x703   :  { %v10961_v61 = vadd.f32 %v10960_v35, %v10959_v53 }
 0x705   :  { %v10994_v50 = vpop.f32.mrf.mxu1 }
 0x707   :  { %v10995_v18 = vpop.f32.mrf.mxu1 }
 0x708   :  { %v10996_v6 = vadd.f32 %v10995_v18, %v10994_v50 }
 0x70a   :  { %v5206_v13 = vadd.f32 %v10996_v6, %v10961_v61 }
 0x721   :  { %v11029_v62 = vpop.f32.mrf.mxu0 }
 0x723   :  { %v11030_v31 = vpop.f32.mrf.mxu0 }
 0x724   :  { %v11031_v63 = vadd.f32 %v11030_v31, %v11029_v62 }
 0x726   :  { %v5276_v60 = vadd.f32 %v11031_v63, %v5206_v13 }
 0x727   :  { %v11064_v55 = vpop.f32.mrf.mxu1 }
 0x728   :  { %v5495_v17 = vmul.f32 0.0034722222, %v5276_v60 }
 0x729   :  { %v11065_v49 = vpop.f32.mrf.mxu1 }
 0x72a   :  { %v11066_v57 = vadd.f32 %v11065_v49, %v11064_v55  ;;  %v5497_v48 = vmul.f32 %v5495_v17, %v5495_v17 }
 0x743   :  { %v11099_v8 = vpop.f32.mrf.mxu0 }
 0x745   :  { %v11100_v38 = vpop.f32.mrf.mxu0 }
 0x746   :  { %v11101_v0 = vadd.f32 %v11100_v38, %v11099_v8 }
 0x748   :  { %v11134_v47 = vpop.f32.mrf.mxu1  ;;  %v5422_v41 = vadd.f32 %v11101_v0, %v11066_v57  ;;  %v10643_v57 = vld [vmem:[%s13460_s1 + $0x98] sm:$0xff] }
 0x74a   :  { %v11135_v21 = vpop.f32.mrf.mxu1 }
 0x74b   :  { %v11136_v22 = vadd.f32 %v11135_v21, %v11134_v47 }
 0x74d   :  { %v5492_v34 = vadd.f32 %v11136_v22, %v5422_v41 }
 0x74f   :  { %v5496_v40 = vmul.f32 0.0034722222, %v5492_v34 }
 0x751   :  { %v5498_v52 = vsub.f32 %v5496_v40, %v5497_v48 }
 0x753   :  { %v5499_v28 = vadd.f32 1e-05, %v5498_v52 }
 0x755   :  { %11370 = vrsqrt.f32 %v5499_v28 }
 0x762   :  { %v11371_v30 = vpop.eup %11370 }
 0x763   :  { %5502 = vrot.lane.b32.xlu0 %v11371_v30, %s11385_s11 }
 0x7d5   :  { %v5503_v12 = vpop.permute.xlu0 %5502 }
 0x7d6   :  { %v5505_v32 = vmul.f32 %v10640_v36, %v5503_v12 }
 0x7d8   :  { %5507 = vrot.lane.b32.xlu1 %v5505_v32, %s11375_s19 }
 0x7dc   :  { %5517 = vperm.xlu1 %11362, %v5505_v32  }
 0x7e0   :  { %5591 = vrot.lane.b32.xlu1 %v11374_v2, %s11375_s19 }
 0x7e1   :  { %11365 = vset.pattern.permute.xlu1 %v11386_v56 }
 0x7e4   :  { %6301 = vrot.lane.b32.xlu1 %v11374_v2, %s11377_s0 }
 0x7e8   :  { %6801 = vrot.lane.b32.xlu1 %v11374_v2, %s11379_s6 }
 0x7ec   :  { %7301 = vrot.lane.b32.xlu1 %v11374_v2, %s11381_s8 }
 0x84a   :  { %v5508_v20 = vpop.permute.xlu1 %5507 }
 0x84b   :  { %v5510_v45 = vmul.f32 %v5508_v20, %v5495_v17 }
 0x84d   :  { %5512 = vrot.lane.b32.xlu0 %v5510_v45, %s11387_s14  ;;  %v10650_v45 = vld [vmem:[%s13460_s1 + $0xa0] sm:$0xff] }
 0x857   :  { %v5518_v56 = vpop.permute.xlu1 %5517 }
 0x858   :  { %v5520_v3 = vmul.f32 %v5518_v56, %v12383_v9  ;;  %v5521_v10 = vmul.f32 %v5518_v56, %v12380_v7  ;;  %v5522_v51 = vmul.f32 %v5518_v56, %v12407_v37  ;;  %v5523_v33 = vmul.f32 %v5518_v56, %v12399_v26 }
 0x859   :  { %v5524_v35 = vmul.f32 %v5518_v56, %v12482_v25  ;;  %v5525_v50 = vmul.f32 %v5518_v56, %v12415_v42 }
 0x8bf   :  { %v5513_v54 = vpop.permute.xlu0 %5512 }
 0x8c0   :  { %v5515_v43 = vsub.f32 %v10640_v36, %v5513_v54  ;;  %v10642_v36 = vld [vmem:[%s13460_s1 + $0x90] sm:$0xff] }
 0x8c2   :  { %5528 = vperm.xlu0 %11363, %v5515_v43  }
 0x8c6   :  { %6051 = vrot.lane.b32.xlu0 %v11374_v2, %s11376_s30 }
 0x8c7   :  { %11364 = vset.pattern.permute.xlu0 %v11384_v46 }
 0x8ca   :  { %6551 = vrot.lane.b32.xlu0 %v11374_v2, %s11378_s5 }
 0x8ce   :  { %7051 = vrot.lane.b32.xlu0 %v11374_v2, %s11380_s7 }
 0x93d   :  { %v5529_v44 = vpop.permute.xlu0 %5528 }
 0x93e   :  { %v5531_v11 = vadd.f32 %v5529_v44, %v5520_v3  ;;  %v5532_v14 = vadd.f32 %v5529_v44, %v5521_v10  ;;  %v5533_v53 = vadd.f32 %v5529_v44, %v5522_v51  ;;  %v5534_v46 = vadd.f32 %v5529_v44, %v5523_v33 }
 0x93f   :  { %v5535_v31 = vadd.f32 %v5529_v44, %v5524_v35  ;;  %v5536_v6 = vadd.f32 %v5529_v44, %v5525_v50 }
 0x940   :  { %v5538_v62 = vmax.f32 %v5532_v14, 0.0  ;;  %v5539_v18 = vmax.f32 %v5533_v53, 0.0  ;;  %v5537_v9 = vmax.f32 %v5531_v11, 0.0  ;;  %v5540_v55 = vmax.f32 %v5534_v46, 0.0  ;;  %v10654_v46 = vld [vmem:[%s13460_s1 + $0xa8] sm:$0xff] }
 0x941   :  { %v5541_v37 = vmax.f32 %v5535_v31, 0.0  ;;  %v5542_v42 = vmax.f32 %v5536_v6, 0.0 }
 0x942   :  { %v12599_v7 = vmul.f32 %v5538_v62, %v12373_v59  ;;  %v12602_v26 = vmul.f32 %v5539_v18, %v12391_v16  ;;  %v12609_v25 = vmul.f32 %v5537_v9, %v12377_v4  ;;  %v12612_v61 = vmul.f32 %v5540_v55, %v12387_v24  ;;  %v5592_v4 = vpop.permute.xlu1 %5591  ;;  %v6052_v24 = vpop.permute.xlu0 %6051 }
 0x943   :  { %v12619_v59 = vmul.f32 %v5541_v37, %v12471_v19  ;;  %v12622_v16 = vmul.f32 %v5542_v42, %v12404_v29 }
 0x944   :  { %5583 = vrot.lane.b32.xlu0 %v12602_v26, %s11375_s19  ;;  %5581 = vrot.lane.b32.xlu1 %v12599_v7, %s11375_s19 }
 0x946   :  { %v12714_v29 = vpop.permute.xlu1 %6301  ;;  %v12716_v19 = vpop.permute.xlu0 %6551 }
 0x948   :  { %5585 = vrot.lane.b32.xlu0 %v12612_v61, %s11375_s19  ;;  %5579 = vrot.lane.b32.xlu1 %v12609_v25, %s11375_s19 }
 0x94a   :  { %v12718_v63 = vpop.permute.xlu1 %6801  ;;  %v12720_v8 = vpop.permute.xlu0 %7051 }
 0x94c   :  { %5589 = vrot.lane.b32.xlu0 %v12622_v16, %s11375_s19  ;;  %5587 = vrot.lane.b32.xlu1 %v12619_v59, %s11375_s19 }
 0x94e   :  { %v12722_v13 = vpop.permute.xlu1 %7301 }
 0x950   :  { %6041 = vrot.lane.b32.xlu0 %v12599_v7, %s11376_s30  ;;  %6043 = vrot.lane.b32.xlu1 %v12602_v26, %s11376_s30 }
 0x954   :  { %6039 = vrot.lane.b32.xlu0 %v12609_v25, %s11376_s30  ;;  %6045 = vrot.lane.b32.xlu1 %v12612_v61, %s11376_s30 }
 0x958   :  { %6047 = vrot.lane.b32.xlu0 %v12619_v59, %s11376_s30  ;;  %6049 = vrot.lane.b32.xlu1 %v12622_v16, %s11376_s30 }
 0x95c   :  { %6293 = vrot.lane.b32.xlu0 %v12602_v26, %s11377_s0  ;;  %6291 = vrot.lane.b32.xlu1 %v12599_v7, %s11377_s0 }
 0x960   :  { %6295 = vrot.lane.b32.xlu0 %v12612_v61, %s11377_s0  ;;  %6289 = vrot.lane.b32.xlu1 %v12609_v25, %s11377_s0 }
 0x964   :  { %6299 = vrot.lane.b32.xlu0 %v12622_v16, %s11377_s0  ;;  %6297 = vrot.lane.b32.xlu1 %v12619_v59, %s11377_s0 }
 0x968   :  { %6541 = vrot.lane.b32.xlu0 %v12599_v7, %s11378_s5  ;;  %6543 = vrot.lane.b32.xlu1 %v12602_v26, %s11378_s5 }
 0x96c   :  { %6539 = vrot.lane.b32.xlu0 %v12609_v25, %s11378_s5  ;;  %6545 = vrot.lane.b32.xlu1 %v12612_v61, %s11378_s5 }
 0x970   :  { %6547 = vrot.lane.b32.xlu0 %v12619_v59, %s11378_s5  ;;  %6549 = vrot.lane.b32.xlu1 %v12622_v16, %s11378_s5 }
 0x974   :  { %6793 = vrot.lane.b32.xlu0 %v12602_v26, %s11379_s6  ;;  %6791 = vrot.lane.b32.xlu1 %v12599_v7, %s11379_s6 }
 0x978   :  { %6795 = vrot.lane.b32.xlu0 %v12612_v61, %s11379_s6  ;;  %6789 = vrot.lane.b32.xlu1 %v12609_v25, %s11379_s6 }
 0x97c   :  { %6799 = vrot.lane.b32.xlu0 %v12622_v16, %s11379_s6  ;;  %6797 = vrot.lane.b32.xlu1 %v12619_v59, %s11379_s6 }
 0x980   :  { %7041 = vrot.lane.b32.xlu0 %v12599_v7, %s11380_s7  ;;  %7043 = vrot.lane.b32.xlu1 %v12602_v26, %s11380_s7 }
 0x984   :  { %7039 = vrot.lane.b32.xlu0 %v12609_v25, %s11380_s7  ;;  %7045 = vrot.lane.b32.xlu1 %v12612_v61, %s11380_s7 }
 0x988   :  { %7047 = vrot.lane.b32.xlu0 %v12619_v59, %s11380_s7  ;;  %7049 = vrot.lane.b32.xlu1 %v12622_v16, %s11380_s7 }
 0x98c   :  { %7293 = vrot.lane.b32.xlu0 %v12602_v26, %s11381_s8  ;;  %7291 = vrot.lane.b32.xlu1 %v12599_v7, %s11381_s8 }
 0x990   :  { %7295 = vrot.lane.b32.xlu0 %v12612_v61, %s11381_s8  ;;  %7289 = vrot.lane.b32.xlu1 %v12609_v25, %s11381_s8 }
 0x994   :  { %7299 = vrot.lane.b32.xlu0 %v12622_v16, %s11381_s8  ;;  %7297 = vrot.lane.b32.xlu1 %v12619_v59, %s11381_s8 }
 0x998   :  { %7541 = vrot.lane.b32.xlu0 %v12599_v7, %s11382_s9  ;;  %7543 = vrot.lane.b32.xlu1 %v12602_v26, %s11382_s9 }
 0x99c   :  { %7539 = vrot.lane.b32.xlu0 %v12609_v25, %s11382_s9  ;;  %7545 = vrot.lane.b32.xlu1 %v12612_v61, %s11382_s9 }
 0x9a0   :  { %7547 = vrot.lane.b32.xlu0 %v12619_v59, %s11382_s9  ;;  %7549 = vrot.lane.b32.xlu1 %v12622_v16, %s11382_s9 }
 0x9a4   :  { %7551 = vrot.lane.b32.xlu0 %v11374_v2, %s11382_s9 }
 0x9b6   :  { %v5584_v38 = vpop.permute.xlu0 %5583  ;;  %v5582_v49 = vpop.permute.xlu1 %5581 }
 0x9b7   :  { %v5594_v60 = vsel %vm68_vm0, %v5582_v49, %v5584_v38 }
 0x9b8   :  { %5638 = vmatprep.subr.mxu0 %v5594_v60 }
 0x9ba   :  { %v5586_v0 = vpop.permute.xlu0 %5585  ;;  %v5580_v47 = vpop.permute.xlu1 %5579 }
 0x9bb   :  { %v5593_v21 = vsel %vm68_vm0, %v5580_v47, %v5582_v49  ;;  %v5595_v40 = vsel %vm68_vm0, %v5584_v38, %v5586_v0 }
 0x9bc   :  { %5639 = vmatpush1.msra.mxu0 %v5593_v21 }
 0x9bd   :  { %10644 = vmatmul.mubr.msk.f32.vlgmr.msra.gmra.mxu0 %vm81_vm1, %v10643_v57 }
 0x9be   :  { %v5590_v17 = vpop.permute.xlu0 %5589  ;;  %v5588_v41 = vpop.permute.xlu1 %5587  ;;  %5814 = vmatprep.mubr.f32.mxu0 %v11374_v2 }
 0x9bf   :  { %v5596_v22 = vsel %vm68_vm0, %v5586_v0, %v5588_v41  ;;  %v5598_v34 = vsel %vm68_vm0, %v5590_v17, %v5592_v4  ;;  %v5597_v48 = vsel %vm68_vm0, %v5588_v41, %v5590_v17 }
 0x9c0   :  { %5709 = vmatprep.subr.mxu1 %v5596_v22  ;;  %5780 = vmatprep.subr.mxu0 %v5598_v34 }
 0x9c1   :  { %5710 = vmatpush1.msra.mxu1 %v5595_v40  ;;  %5781 = vmatpush1.msra.mxu0 %v5597_v48 }
 0x9c2   :  { %v6042_v52 = vpop.permute.xlu0 %6041  ;;  %10645 = vmatmul.mubr.msk.f32.vlgmr.msra.gmra.mxu1 %vm81_vm1, %v10643_v57  ;;  %5854 = vmatprep.subr.mxu1 %v12599_v7  ;;  %v6044_v28 = vpop.permute.xlu1 %6043 }
 0x9c3   :  { %5925 = vmatprep.subr.mxu0 %v12612_v61  ;;  %10646 = vmatmul.mubr.msk.f32.vlgmr.msra.gmra.mxu0 %vm81_vm1, %v10643_v57  ;;  %v6054_v30 = vsel %vm530_vm2, %v6042_v52, %v6044_v28  ;;  %v10662_v57 = vld [vmem:[%s13460_s1 + $0xb8] sm:$0xff] }
 0x9c4   :  { %5855 = vmatpush1.msra.mxu1 %v12609_v25  ;;  %5926 = vmatpush1.msra.mxu0 %v12602_v26  ;;  %v10658_v25 = vld [vmem:[%s13460_s1 + $0xb0] sm:$0xff] }
 0x9c5   :  { %5996 = vmatprep.subr.mxu1 %v12622_v16  ;;  %6098 = vmatprep.subr.mxu0 %v6054_v30 }
 0x9c6   :  { %5888 = vmatprep.mubr.f32.mxu1 %v11374_v2  ;;  %v6040_v12 = vpop.permute.xlu0 %6039  ;;  %v6046_v32 = vpop.permute.xlu1 %6045  ;;  %5959 = vmatprep.mubr.f32.mxu0 %v11374_v2 }
 0x9c7   :  { %v6053_v20 = vsel %vm530_vm2, %v6040_v12, %v6042_v52  ;;  %10647 = vmatmul.mubr.msk.f32.vlgmr.msra.gmra.mxu1 %vm81_vm1, %v10642_v36  ;;  %10648 = vmatmul.mubr.msk.f32.vlgmr.msra.gmra.mxu0 %vm81_vm1, %v10642_v36  ;;  %v6055_v51 = vsel %vm530_vm2, %v6044_v28, %v6046_v32  ;;  %v10666_v12 = vld [vmem:[%s13460_s1 + $0xc0] sm:$0xff] }
 0x9c8   :  { %5997 = vmatpush1.msra.mxu1 %v12619_v59  ;;  %6099 = vmatpush1.msra.mxu0 %v6053_v20 }
 0x9c9   :  { %6030 = vmatprep.mubr.f32.mxu1 %v11374_v2  ;;  %6132 = vmatprep.mubr.f32.mxu0 %v11374_v2 }
 0x9ca   :  { %v6048_v54 = vpop.permute.xlu0 %6047  ;;  %v6050_v43 = vpop.permute.xlu1 %6049 }
 0x9cb   :  { %v6056_v56 = vsel %vm530_vm2, %v6046_v32, %v6048_v54  ;;  %v6058_v3 = vsel %vm530_vm2, %v6050_v43, %v6052_v24  ;;  %10649 = vmatmul.mubr.msk.f32.vlgmr.msra.gmra.mxu1 %vm81_vm1, %v10642_v36  ;;  %10651 = vmatmul.mubr.msk.f32.vlgmr.msra.gmra.mxu0 %vm81_vm1, %v10650_v45  ;;  %v6057_v10 = vsel %vm530_vm2, %v6048_v54, %v6050_v43 }
 0x9cc   :  { %6169 = vmatprep.subr.mxu1 %v6056_v56  ;;  %6240 = vmatprep.subr.mxu0 %v6058_v3 }
 0x9cd   :  { %6170 = vmatpush1.msra.mxu1 %v6055_v51  ;;  %6241 = vmatpush1.msra.mxu0 %v6057_v10 }
 0x9ce   :  { %v6294_v33 = vpop.permute.xlu0 %6293  ;;  %v6292_v44 = vpop.permute.xlu1 %6291  ;;  %6203 = vmatprep.mubr.f32.mxu1 %v11374_v2  ;;  %6274 = vmatprep.mubr.f32.mxu0 %v11374_v2 }
 0x9cf   :  { %v6304_v11 = vsel %vm781_vm3, %v6292_v44, %v6294_v33  ;;  %10652 = vmatmul.mubr.msk.f32.vlgmr.msra.gmra.mxu1 %vm81_vm1, %v10650_v45  ;;  %10653 = vmatmul.mubr.msk.f32.vlgmr.msra.gmra.mxu0 %vm81_vm1, %v10650_v45 }
 0x9d0   :  { %6348 = vmatprep.subr.mxu1 %v6304_v11  ;;  %6382 = vmatprep.mubr.f32.mxu1 %v11374_v2  ;;  %v10670_v11 = vld [vmem:[%s13460_s1 + $0xc8] sm:$0xff] }
 0x9d1   :  { %6453 = vmatprep.mubr.f32.mxu0 %v11374_v2 }
 0x9d2   :  { %v6296_v14 = vpop.permute.xlu0 %6295  ;;  %v6290_v53 = vpop.permute.xlu1 %6289 }
 0x9d3   :  { %v6303_v35 = vsel %vm781_vm3, %v6290_v53, %v6292_v44  ;;  %v6305_v9 = vsel %vm781_vm3, %v6294_v33, %v6296_v14 }
 0x9d4   :  { %6349 = vmatpush1.msra.mxu1 %v6303_v35 }
 0x9d5   :  { %10655 = vmatmul.mubr.msk.f32.vlgmr.msra.gmra.mxu1 %vm81_vm1, %v10654_v46 }
 0x9d6   :  { %v6300_v50 = vpop.permute.xlu0 %6299  ;;  %v6298_v62 = vpop.permute.xlu1 %6297  ;;  %6524 = vmatprep.mubr.f32.mxu1 %v11374_v2 }
 0x9d7   :  { %v6307_v18 = vsel %vm781_vm3, %v6298_v62, %v6300_v50  ;;  %v6306_v31 = vsel %vm781_vm3, %v6296_v14, %v6298_v62  ;;  %v6308_v6 = vsel %vm781_vm3, %v6300_v50, %v12714_v29 }
 0x9d8   :  { %6419 = vmatprep.subr.mxu0 %v6306_v31  ;;  %6490 = vmatprep.subr.mxu1 %v6308_v6 }
 0x9d9   :  { %6420 = vmatpush1.msra.mxu0 %v6305_v9  ;;  %6491 = vmatpush1.msra.mxu1 %v6307_v18 }
 0x9da   :  { %v6542_v55 = vpop.permute.xlu0 %6541  ;;  %v6544_v7 = vpop.permute.xlu1 %6543  ;;  %10656 = vmatmul.mubr.msk.f32.vlgmr.msra.gmra.mxu0 %vm81_vm1, %v10654_v46  ;;  %10657 = vmatmul.mubr.msk.f32.vlgmr.msra.gmra.mxu1 %vm81_vm1, %v10654_v46 }
 0x9db   :  { %v6554_v26 = vsel %vm1032_vm4, %v6542_v55, %v6544_v7  ;;  %6632 = vmatprep.mubr.f32.mxu0 %v11374_v2  ;;  %6703 = vmatprep.mubr.f32.mxu1 %v11374_v2 }
 0x9dc   :  { %6598 = vmatprep.subr.mxu0 %v6554_v26 }
 0x9de   :  { %v6540_v37 = vpop.permute.xlu0 %6539  ;;  %v6546_v42 = vpop.permute.xlu1 %6545 }
 0x9df   :  { %v6553_v61 = vsel %vm1032_vm4, %v6540_v37, %v6542_v55  ;;  %v6555_v38 = vsel %vm1032_vm4, %v6544_v7, %v6546_v42  ;;  %v10674_v55 = vld [vmem:[%s13460_s1 + $0xd0] sm:$0xff] }
 0x9e0   :  { %6599 = vmatpush1.msra.mxu0 %v6553_v61 }
 0x9e1   :  { %10659 = vmatmul.mubr.msk.f32.vlgmr.msra.gmra.mxu0 %vm81_vm1, %v10658_v25 }
 0x9e2   :  { %v6548_v59 = vpop.permute.xlu0 %6547  ;;  %v6550_v16 = vpop.permute.xlu1 %6549  ;;  %6774 = vmatprep.mubr.f32.mxu0 %v11374_v2 }
 0x9e3   :  { %v6557_v4 = vsel %vm1032_vm4, %v6548_v59, %v6550_v16  ;;  %v6556_v24 = vsel %vm1032_vm4, %v6546_v42, %v6548_v59  ;;  %v6558_v29 = vsel %vm1032_vm4, %v6550_v16, %v12716_v19 }
 0x9e4   :  { %6669 = vmatprep.subr.mxu1 %v6556_v24  ;;  %6740 = vmatprep.subr.mxu0 %v6558_v29 }
 0x9e5   :  { %6670 = vmatpush1.msra.mxu1 %v6555_v38  ;;  %6741 = vmatpush1.msra.mxu0 %v6557_v4 }
 0x9e6   :  { %v6794_v49 = vpop.permute.xlu0 %6793  ;;  %v6792_v60 = vpop.permute.xlu1 %6791  ;;  %10660 = vmatmul.mubr.msk.f32.vlgmr.msra.gmra.mxu1 %vm81_vm1, %v10658_v25  ;;  %10661 = vmatmul.mubr.msk.f32.vlgmr.msra.gmra.mxu0 %vm81_vm1, %v10658_v25 }
 0x9e7   :  { %v6804_v0 = vsel %vm1283_vm5, %v6792_v60, %v6794_v49  ;;  %6882 = vmatprep.mubr.f32.mxu1 %v11374_v2  ;;  %6953 = vmatprep.mubr.f32.mxu0 %v11374_v2 }
 0x9e8   :  { %6848 = vmatprep.subr.mxu1 %v6804_v0 }
 0x9ea   :  { %v6796_v19 = vpop.permute.xlu0 %6795  ;;  %v6790_v47 = vpop.permute.xlu1 %6789 }
 0x9eb   :  { %v6803_v21 = vsel %vm1283_vm5, %v6790_v47, %v6792_v60  ;;  %v6805_v40 = vsel %vm1283_vm5, %v6794_v49, %v6796_v19 }
 0x9ec   :  { %6849 = vmatpush1.msra.mxu1 %v6803_v21 }
 0x9ed   :  { %10663 = vmatmul.mubr.msk.f32.vlgmr.msra.gmra.mxu1 %vm81_vm1, %v10662_v57 }
 0x9ee   :  { %v6800_v17 = vpop.permute.xlu0 %6799  ;;  %v6798_v41 = vpop.permute.xlu1 %6797  ;;  %7024 = vmatprep.mubr.f32.mxu1 %v11374_v2 }
 0x9ef   :  { %v6807_v22 = vsel %vm1283_vm5, %v6798_v41, %v6800_v17  ;;  %v6806_v34 = vsel %vm1283_vm5, %v6796_v19, %v6798_v41  ;;  %v6808_v48 = vsel %vm1283_vm5, %v6800_v17, %v12718_v63 }
 0x9f0   :  { %6919 = vmatprep.subr.mxu0 %v6806_v34  ;;  %6990 = vmatprep.subr.mxu1 %v6808_v48 }
 0x9f1   :  { %6920 = vmatpush1.msra.mxu0 %v6805_v40  ;;  %6991 = vmatpush1.msra.mxu1 %v6807_v22 }
 0x9f2   :  { %v7042_v52 = vpop.permute.xlu0 %7041  ;;  %10664 = vmatmul.mubr.msk.f32.vlgmr.msra.gmra.mxu0 %vm81_vm1, %v10662_v57  ;;  %10665 = vmatmul.mubr.msk.f32.vlgmr.msra.gmra.mxu1 %vm81_vm1, %v10662_v57  ;;  %v7044_v28 = vpop.permute.xlu1 %7043 }
 0x9f3   :  { %v7054_v30 = vsel %vm1534_vm6, %v7042_v52, %v7044_v28  ;;  %7132 = vmatprep.mubr.f32.mxu0 %v11374_v2  ;;  %7203 = vmatprep.mubr.f32.mxu1 %v11374_v2 }
 0x9f4   :  { %7098 = vmatprep.subr.mxu0 %v7054_v30 }
 0x9f6   :  { %v7040_v63 = vpop.permute.xlu0 %7039  ;;  %v7046_v36 = vpop.permute.xlu1 %7045 }
 0x9f7   :  { %v7053_v32 = vsel %vm1534_vm6, %v7040_v63, %v7042_v52  ;;  %v7055_v3 = vsel %vm1534_vm6, %v7044_v28, %v7046_v36 }
 0x9f8   :  { %7099 = vmatpush1.msra.mxu0 %v7053_v32 }
 0x9f9   :  { %10667 = vmatmul.mubr.msk.f32.vlgmr.msra.gmra.mxu0 %vm81_vm1, %v10666_v12 }
 0x9fa   :  { %v7048_v20 = vpop.permute.xlu0 %7047  ;;  %v7050_v45 = vpop.permute.xlu1 %7049  ;;  %7274 = vmatprep.mubr.f32.mxu0 %v11374_v2 }
 0x9fb   :  { %v7057_v54 = vsel %vm1534_vm6, %v7048_v20, %v7050_v45  ;;  %v7056_v43 = vsel %vm1534_vm6, %v7046_v36, %v7048_v20  ;;  %v7058_v56 = vsel %vm1534_vm6, %v7050_v45, %v12720_v8 }
 0x9fc   :  { %7169 = vmatprep.subr.mxu1 %v7056_v43  ;;  %7240 = vmatprep.subr.mxu0 %v7058_v56 }
 0x9fd   :  { %7170 = vmatpush1.msra.mxu1 %v7055_v3  ;;  %7241 = vmatpush1.msra.mxu0 %v7057_v54 }
 0x9fe   :  { %v7294_v10 = vpop.permute.xlu0 %7293  ;;  %10668 = vmatmul.mubr.msk.f32.vlgmr.msra.gmra.mxu1 %vm81_vm1, %v10666_v12  ;;  %10669 = vmatmul.mubr.msk.f32.vlgmr.msra.gmra.mxu0 %vm81_vm1, %v10666_v12  ;;  %v7292_v51 = vpop.permute.xlu1 %7291 }
 0x9ff   :  { %v7304_v33 = vsel %vm1785_vm7, %v7292_v51, %v7294_v10  ;;  %7382 = vmatprep.mubr.f32.mxu1 %v11374_v2  ;;  %7453 = vmatprep.mubr.f32.mxu0 %v11374_v2 }
 0xa00   :  { %7348 = vmatprep.subr.mxu1 %v7304_v33 }
 0xa02   :  { %v7296_v8 = vpop.permute.xlu0 %7295  ;;  %v7290_v44 = vpop.permute.xlu1 %7289 }
 0xa03   :  { %v7303_v14 = vsel %vm1785_vm7, %v7290_v44, %v7292_v51  ;;  %v7305_v18 = vsel %vm1785_vm7, %v7294_v10, %v7296_v8 }
 0xa04   :  { %7349 = vmatpush1.msra.mxu1 %v7303_v14 }
 0xa05   :  { %10671 = vmatmul.mubr.msk.f32.vlgmr.msra.gmra.mxu1 %vm81_vm1, %v10670_v11 }
 0xa06   :  { %v7300_v53 = vpop.permute.xlu0 %7299  ;;  %v7298_v46 = vpop.permute.xlu1 %7297  ;;  %7524 = vmatprep.mubr.f32.mxu1 %v11374_v2 }
 0xa07   :  { %v7307_v35 = vsel %vm1785_vm7, %v7298_v46, %v7300_v53  ;;  %v7306_v50 = vsel %vm1785_vm7, %v7296_v8, %v7298_v46  ;;  %v7308_v62 = vsel %vm1785_vm7, %v7300_v53, %v12722_v13 }
 0xa08   :  { %7419 = vmatprep.subr.mxu0 %v7306_v50  ;;  %7490 = vmatprep.subr.mxu1 %v7308_v62 }
 0xa09   :  { %7420 = vmatpush1.msra.mxu0 %v7305_v18  ;;  %7491 = vmatpush1.msra.mxu1 %v7307_v35 }
 0xa0a   :  { %v7542_v31 = vpop.permute.xlu0 %7541  ;;  %10672 = vmatmul.mubr.msk.f32.vlgmr.msra.gmra.mxu0 %vm81_vm1, %v10670_v11  ;;  %10673 = vmatmul.mubr.msk.f32.vlgmr.msra.gmra.mxu1 %vm81_vm1, %v10670_v11  ;;  %v7544_v6 = vpop.permute.xlu1 %7543 }
 0xa0b   :  { %v7554_v9 = vsel %vm2036_vm8, %v7542_v31, %v7544_v6  ;;  %7632 = vmatprep.mubr.f32.mxu0 %v11374_v2  ;;  %7703 = vmatprep.mubr.f32.mxu1 %v11374_v2 }
 0xa0c   :  { %7598 = vmatprep.subr.mxu0 %v7554_v9 }
 0xa0e   :  { %v7540_v13 = vpop.permute.xlu0 %7539  ;;  %v7546_v26 = vpop.permute.xlu1 %7545 }
 0xa0f   :  { %v7553_v7 = vsel %vm2036_vm8, %v7540_v13, %v7542_v31  ;;  %v7555_v25 = vsel %vm2036_vm8, %v7544_v6, %v7546_v26 }
 0xa10   :  { %7599 = vmatpush1.msra.mxu0 %v7553_v7 }
 0xa11   :  { %10675 = vmatmul.mubr.msk.f32.vlgmr.msra.gmra.mxu0 %vm81_vm1, %v10674_v55 }
 0xa12   :  { %v7548_v37 = vpop.permute.xlu0 %7547  ;;  %7774 = vmatprep.mubr.f32.mxu0 %v11374_v2  ;;  %v7550_v61 = vpop.permute.xlu1 %7549 }
 0xa13   :  { %v7556_v42 = vsel %vm2036_vm8, %v7546_v26, %v7548_v37  ;;  %v7557_v4 = vsel %vm2036_vm8, %v7548_v37, %v7550_v61 }
 0xa14   :  { %7669 = vmatprep.subr.mxu1 %v7556_v42 }
 0xa15   :  { %7670 = vmatpush1.msra.mxu1 %v7555_v25 }
 0xa16   :  { %v7552_v59 = vpop.permute.xlu0 %7551  ;;  %10676 = vmatmul.mubr.msk.f32.vlgmr.msra.gmra.mxu1 %vm81_vm1, %v10674_v55  ;;  %11137 = vmatprep.subr.mxu1 %v11383_v58 }
 0xa17   :  { %v7558_v16 = vsel %vm2036_vm8, %v7550_v61, %v7552_v59  ;;  %11138 = vmatpush3.msra.mxu1 %v11383_v58 }
 0xa18   :  { %7740 = vmatprep.subr.mxu0 %v7558_v16  ;;  %11139 = vmatprep.subr.mxu1 %v11383_v58 }
 0xa19   :  { %7741 = vmatpush1.msra.mxu0 %v7557_v4  ;;  %11140 = vmatpush3.msra.mxu1 %v11383_v58 }
 0xa1a   :  { %10677 = vmatmul.mubr.msk.f32.vlgmr.msra.gmra.mxu0 %vm81_vm1, %v10674_v55  ;;  %11141 = vmatprep.subr.mxu1 %v11383_v58 }
 0xa1b   :  { %11142 = vmatpush3.msra.mxu1 %v11383_v58  ;;  %11172 = vmatprep.subr.mxu0 %v11383_v58 }
 0xa1c   :  { %11143 = vmatprep.subr.mxu1 %v11383_v58  ;;  %11173 = vmatpush3.msra.mxu0 %v11383_v58 }
 0xa1d   :  { %11144 = vmatpush3.msra.mxu1 %v11383_v58  ;;  %11174 = vmatprep.subr.mxu0 %v11383_v58 }
 0xa1e   :  { %11145 = vmatprep.subr.mxu1 %v11383_v58  ;;  %11175 = vmatpush3.msra.mxu0 %v11383_v58 }
 0xa1f   :  { %11146 = vmatpush3.msra.mxu1 %v11383_v58  ;;  %11176 = vmatprep.subr.mxu0 %v11383_v58 }
 0xa20   :  { %11147 = vmatprep.subr.mxu1 %v11383_v58  ;;  %11177 = vmatpush3.msra.mxu0 %v11383_v58 }
 0xa21   :  { %11148 = vmatpush3.msra.mxu1 %v11383_v58  ;;  %11178 = vmatprep.subr.mxu0 %v11383_v58 }
 0xa22   :  { %11149 = vmatprep.subr.mxu1 %v11383_v58  ;;  %11179 = vmatpush3.msra.mxu0 %v11383_v58 }
 0xa23   :  { %11150 = vmatpush3.msra.mxu1 %v11383_v58  ;;  %11180 = vmatprep.subr.mxu0 %v11383_v58 }
 0xa24   :  { %11151 = vmatprep.subr.mxu1 %v11383_v58  ;;  %11181 = vmatpush3.msra.mxu0 %v11383_v58 }
 0xa25   :  { %11152 = vmatpush3.msra.mxu1 %v11383_v58  ;;  %11182 = vmatprep.subr.mxu0 %v11383_v58 }
 0xa26   :  { %11153 = vmatprep.subr.mxu1 %v11383_v58  ;;  %11183 = vmatpush3.msra.mxu0 %v11383_v58 }
 0xa27   :  { %11154 = vmatpush3.msra.mxu1 %v11383_v58  ;;  %11184 = vmatprep.subr.mxu0 %v11383_v58 }
 0xa28   :  { %11155 = vmatprep.subr.mxu1 %v11383_v58  ;;  %11185 = vmatpush3.msra.mxu0 %v11383_v58 }
 0xa29   :  { %11156 = vmatpush3.msra.mxu1 %v11383_v58  ;;  %11186 = vmatprep.subr.mxu0 %v11383_v58 }
 0xa2a   :  { %11157 = vmatprep.subr.mxu1 %v11383_v58  ;;  %11187 = vmatpush3.msra.mxu0 %v11383_v58 }
 0xa2b   :  { %11158 = vmatpush3.msra.mxu1 %v11383_v58  ;;  %11188 = vmatprep.subr.mxu0 %v11383_v58 }
 0xa2c   :  { %11159 = vmatprep.subr.mxu1 %v11383_v58  ;;  %11189 = vmatpush3.msra.mxu0 %v11383_v58 }
 0xa2d   :  { %11160 = vmatpush3.msra.mxu1 %v11383_v58  ;;  %11190 = vmatprep.subr.mxu0 %v11383_v58 }
 0xa2e   :  { %11161 = vmatprep.subr.mxu1 %v11383_v58  ;;  %11191 = vmatpush3.msra.mxu0 %v11383_v58 }
 0xa2f   :  { %11162 = vmatpush3.msra.mxu1 %v11383_v58  ;;  %11192 = vmatprep.subr.mxu0 %v11383_v58 }
 0xa30   :  { %11163 = vmatprep.subr.mxu1 %v11383_v58  ;;  %11193 = vmatpush3.msra.mxu0 %v11383_v58 }
 0xa31   :  { %11164 = vmatpush3.msra.mxu1 %v11383_v58  ;;  %11194 = vmatprep.subr.mxu0 %v11383_v58 }
 0xa32   :  { %11165 = vmatprep.subr.mxu1 %v11383_v58  ;;  %11195 = vmatpush3.msra.mxu0 %v11383_v58 }
 0xa33   :  { %11166 = vmatpush3.msra.mxu1 %v11383_v58  ;;  %11196 = vmatprep.subr.mxu0 %v11383_v58 }
 0xa34   :  { %11167 = vmatprep.subr.mxu1 %v11383_v58  ;;  %11197 = vmatpush3.msra.mxu0 %v11383_v58 }
 0xa35   :  { %11168 = vmatpush3.msra.mxu1 %v11383_v58  ;;  %11198 = vmatprep.subr.mxu0 %v11383_v58 }
 0xa36   :  { %11199 = vmatpush3.msra.mxu0 %v11383_v58  ;;  %11207 = vmatprep.subr.mxu1 %v11383_v58 }
 0xa37   :  { %11200 = vmatprep.subr.mxu0 %v11383_v58 }
 0xa38   :  { %11201 = vmatpush3.msra.mxu0 %v11383_v58 }
 0xa39   :  { %11202 = vmatprep.subr.mxu0 %v11383_v58 }
 0xa3a   :  { %11203 = vmatpush3.msra.mxu0 %v11383_v58 }
 0xa3b   :  { %11242 = vmatprep.subr.mxu0 %v11383_v58 }
 0xa7d   :  { %v5674_v24 = vpop.f32.mrf.mxu0 }
 0xa7f   :  { %v5676_v29 = vpop.f32.mrf.mxu0 }
 0xa82   :  { %v5745_v38 = vpop.f32.mrf.mxu1 }
 0xa83   :  { %v12928_v49 = vpop.f32.mrf.mxu0 }
 0xa84   :  { %v5747_v60 = vpop.f32.mrf.mxu1 }
 0xa85   :  { %v5818_v0 = vpop.f32.mrf.mxu0 }
 0xa87   :  { %v5890_v19 = vpop.f32.mrf.mxu1  ;;  %v5961_v57 = vpop.f32.mrf.mxu0 }
 0xa88   :  { %v5891_v14 = vadd.f32 %v5890_v19, %v5674_v24  ;;  %v5962_v31 = vadd.f32 %v5961_v57, %v5745_v38 }
 0xa89   :  { %v5892_v47 = vpop.f32.mrf.mxu1  ;;  %v5963_v17 = vpop.f32.mrf.mxu0 }
 0xa8a   :  { %v5893_v46 = vadd.f32 %v5892_v47, %v5676_v29  ;;  %v5964_v9 = vadd.f32 %v5963_v17, %v5747_v60 }
 0xa8b   :  { %v12930_v21 = vpop.f32.mrf.mxu1  ;;  %v6134_v22 = vpop.f32.mrf.mxu0 }
 0xa8c   :  { %v6281_v50 = vadd.f32 %v6134_v22, %v5891_v14 }
 0xa8d   :  { %v6034_v41 = vpop.f32.mrf.mxu1  ;;  %v6136_v48 = vpop.f32.mrf.mxu0 }
 0xa8e   :  { %v6282_v6 = vadd.f32 %v6136_v48, %v5893_v46  ;;  %v6035_v25 = vadd.f32 %v6034_v41, %v5818_v0  ;;  %v12947_v0 = vld [vmem:[%s13461_s3 + $0xc] sm:$0x3f] }
 0xa8f   :  { %v6205_v34 = vpop.f32.mrf.mxu1  ;;  %v12932_v52 = vpop.f32.mrf.mxu0 }
 0xa90   :  { %v6283_v26 = vadd.f32 %v6205_v34, %v5962_v31 }
 0xa91   :  { %v6207_v40 = vpop.f32.mrf.mxu1  ;;  %v6278_v30 = vpop.f32.mrf.mxu0 }
 0xa92   :  { %v6284_v61 = vadd.f32 %v6207_v40, %v5964_v9  ;;  %v6286_v47 = vadd.f32 %v6278_v30, %v6035_v25 }
 0xa95   :  { %v6384_v28 = vpop.f32.mrf.mxu1 }
 0xa96   :  { %v6531_v13 = vadd.f32 %v6384_v28, %v6281_v50 }
 0xa97   :  { %v6386_v63 = vpop.f32.mrf.mxu1 }
 0xa98   :  { %v6532_v37 = vadd.f32 %v6386_v63, %v6282_v6 }
 0xa9a   :  { %v6455_v36 = vpop.f32.mrf.mxu0  ;;  %v12934_v12 = vpop.f32.mrf.mxu1 }
 0xa9b   :  { %v6533_v24 = vadd.f32 %v6455_v36, %v6283_v26 }
 0xa9c   :  { %v6457_v32 = vpop.f32.mrf.mxu0  ;;  %v6528_v20 = vpop.f32.mrf.mxu1 }
 0xa9d   :  { %v6534_v22 = vadd.f32 %v6457_v32, %v6284_v61  ;;  %v6536_v41 = vadd.f32 %v6528_v20, %v6286_v47  ;;  %v12951_v32 = vrot.slane %v12947_v0, %v11769_v1  ;;  %v6033_v61 = vadd.f32 %v12930_v21, %v12928_v49 }
 0xaa1   :  { %v6634_v45 = vpop.f32.mrf.mxu0 }
 0xaa2   :  { %v6781_v59 = vadd.f32 %v6634_v45, %v6531_v13 }
 0xaa3   :  { %v6636_v43 = vpop.f32.mrf.mxu0 }
 0xaa4   :  { %v6782_v29 = vadd.f32 %v6636_v43, %v6532_v37  ;;  %v12955_v43 = vrot.slane %v12947_v0, %v11774_v5  ;;  %v12965_v5 = vrot.slane %v12947_v0, %v11782_v15 }
 0xaa6   :  { %v6705_v54 = vpop.f32.mrf.mxu1  ;;  %v12936_v3 = vpop.f32.mrf.mxu0 }
 0xaa7   :  { %v6783_v48 = vadd.f32 %v6705_v54, %v6533_v24 }
 0xaa8   :  { %v6707_v56 = vpop.f32.mrf.mxu1  ;;  %v6778_v51 = vpop.f32.mrf.mxu0 }
 0xaa9   :  { %v6784_v34 = vadd.f32 %v6707_v56, %v6534_v22  ;;  %v6786_v20 = vadd.f32 %v6778_v51, %v6536_v41 }
 0xaad   :  { %v6884_v10 = vpop.f32.mrf.mxu1 }
 0xaae   :  { %v7031_v38 = vadd.f32 %v6884_v10, %v6781_v59  ;;  %v6285_v59 = vadd.f32 %v12932_v52, %v6033_v61 }
 0xaaf   :  { %v6886_v8 = vpop.f32.mrf.mxu1 }
 0xab0   :  { %v7032_v57 = vadd.f32 %v6886_v8, %v6782_v29  ;;  %v6535_v49 = vadd.f32 %v12934_v12, %v6285_v59 }
 0xab2   :  { %v6955_v33 = vpop.f32.mrf.mxu0  ;;  %v12938_v11 = vpop.f32.mrf.mxu1  ;;  %v6785_v21 = vadd.f32 %v12936_v3, %v6535_v49 }
 0xab3   :  { %v7033_v36 = vadd.f32 %v6955_v33, %v6783_v48 }
 0xab4   :  { %v6957_v44 = vpop.f32.mrf.mxu0  ;;  %v7028_v35 = vpop.f32.mrf.mxu1  ;;  %v7035_v52 = vadd.f32 %v12938_v11, %v6785_v21 }
 0xab5   :  { %v7034_v45 = vadd.f32 %v6957_v44, %v6784_v34  ;;  %v7036_v31 = vadd.f32 %v7028_v35, %v6786_v20 }
 0xab9   :  { %v7134_v53 = vpop.f32.mrf.mxu0 }
 0xaba   :  { %v7281_v60 = vadd.f32 %v7134_v53, %v7031_v38 }
 0xabb   :  { %v7136_v62 = vpop.f32.mrf.mxu0 }
 0xabc   :  { %v7282_v28 = vadd.f32 %v7136_v62, %v7032_v57 }
 0xabe   :  { %v7205_v18 = vpop.f32.mrf.mxu1  ;;  %v12940_v55 = vpop.f32.mrf.mxu0 }
 0xabf   :  { %v7283_v8 = vadd.f32 %v7205_v18, %v7033_v36  ;;  %v12969_v18 = vrot.slane %v12947_v0, %v11793_v27  ;;  %v12982_v27 = vrot.slane %v12947_v0, %v11803_v39  ;;  %v7285_v12 = vadd.f32 %v12940_v55, %v7035_v52 }
 0xac0   :  { %v7207_v7 = vpop.f32.mrf.mxu1  ;;  %v7278_v16 = vpop.f32.mrf.mxu0  ;;  %v13049_v55 = vrot.slane %v12947_v0, %v11880_v23 }
 0xac1   :  { %v7284_v56 = vadd.f32 %v7207_v7, %v7034_v45  ;;  %v7286_v9 = vadd.f32 %v7278_v16, %v7036_v31 }
 0xac5   :  { %v7384_v42 = vpop.f32.mrf.mxu1 }
 0xac6   :  { %v7531_v40 = vadd.f32 %v7384_v42, %v7281_v60 }
 0xac7   :  { %v7386_v19 = vpop.f32.mrf.mxu1 }
 0xac8   :  { %v7532_v30 = vadd.f32 %v7386_v19, %v7282_v28 }
 0xaca   :  { %v7455_v4 = vpop.f32.mrf.mxu0  ;;  %v12942_v14 = vpop.f32.mrf.mxu1 }
 0xacb   :  { %v7533_v50 = vadd.f32 %v7455_v4, %v7283_v8  ;;  %v7535_v3 = vadd.f32 %v12942_v14, %v7285_v12 }
 0xacc   :  { %v7457_v17 = vpop.f32.mrf.mxu0  ;;  %v7528_v53 = vpop.f32.mrf.mxu1 }
 0xacd   :  { %v7534_v1 = vadd.f32 %v7457_v17, %v7284_v56  ;;  %v7536_v7 = vadd.f32 %v7528_v53, %v7286_v9 }
 0xad1   :  { %v7634_v63 = vpop.f32.mrf.mxu0 }
 0xad2   :  { %v7781_v54 = vadd.f32 %v7634_v63, %v7531_v40 }
 0xad3   :  { %v7636_v10 = vpop.f32.mrf.mxu0 }
 0xad4   :  { %v7782_v46 = vadd.f32 %v7636_v10, %v7532_v30  ;;  %v12961_v44 = vmul.f32 %v12955_v43, %v7781_v54 }
 0xad6   :  { %v12958_v33 = vmul.f32 %v12951_v32, %v7782_v46  ;;  %v7705_v62 = vpop.f32.mrf.mxu1  ;;  %v8038_v4 = vmul.f32 %v12961_v44, %v12961_v44 }
 0xad7   :  { %v7783_v6 = vadd.f32 %v7705_v62, %v7533_v50 }
 0xad8   :  { %v7707_v51 = vpop.f32.mrf.mxu1  ;;  %7892 = vmatprep.mubr.f32.mxu1 %v12958_v33  ;;  %v8039_v39 = vmul.f32 %v12958_v33, %v12958_v33 }
 0xad9   :  { %v7784_v13 = vadd.f32 %v7707_v51, %v7534_v1  ;;  %7893 = vmatmul.mubr.f32.vlgmr.msra.gmra.mxu1 %v12961_v44  ;;  %v12985_v26 = vmul.f32 %v12969_v18, %v7783_v6  ;;  %v10678_v1 = vld [vmem:[%s13462_s2 + $0x10] sm:$0xff] }
 0xada   :  { %11208 = vmatpush3.msra.mxu1 %v11383_v58  ;;  %v12974_v35 = vpop.f32.mrf.mxu0 }
 0xadb   :  { %v12977_v15 = vmul.f32 %v12965_v5, %v7784_v13  ;;  %11209 = vmatprep.subr.mxu1 %v11383_v58  ;;  %v7785_v11 = vadd.f32 %v12974_v35, %v7535_v3  ;;  %v8040_v29 = vmul.f32 %v12985_v26, %v12985_v26 }
 0xadc   :  { %11210 = vmatpush3.msra.mxu1 %v11383_v58  ;;  %v7778_v37 = vpop.f32.mrf.mxu0 }
 0xadd   :  { %v7786_v42 = vadd.f32 %v7778_v37, %v7536_v7  ;;  %11211 = vmatprep.subr.mxu1 %v11383_v58  ;;  %7962 = vmatprep.mubr.f32.mxu0 %v12977_v15  ;;  %v13060_v16 = vmul.f32 %v13049_v55, %v7785_v11  ;;  %v8041_v23 = vmul.f32 %v12977_v15, %v12977_v15 }
 0xade   :  { %11212 = vmatpush3.msra.mxu1 %v11383_v58  ;;  %7963 = vmatmul.mubr.f32.vlgmr.msra.gmra.mxu0 %v12985_v26 }
 0xadf   :  { %v12993_v25 = vmul.f32 %v12982_v27, %v7786_v42  ;;  %11213 = vmatprep.subr.mxu1 %v11383_v58  ;;  %11243 = vmatpush3.msra.mxu0 %v11383_v58  ;;  %v8042_v19 = vmul.f32 %v13060_v16, %v13060_v16 }
 0xae0   :  { %11214 = vmatpush3.msra.mxu1 %v11383_v58  ;;  %11244 = vmatprep.subr.mxu0 %v11383_v58 }
 0xae1   :  { %8108 = vmatprep.mubr.f32.mxu0 %v8039_v39  ;;  %11215 = vmatprep.subr.mxu1 %v11383_v58  ;;  %v8043_v24 = vmul.f32 %v12993_v25, %v12993_v25 }
 0xae2   :  { %11245 = vmatpush3.msra.mxu0 %v11383_v58  ;;  %11216 = vmatpush3.msra.mxu1 %v11383_v58 }
 0xae3   :  { %8032 = vmatprep.mubr.f32.mxu1 %v12993_v25  ;;  %11246 = vmatprep.subr.mxu0 %v11383_v58 }
 0xae4   :  { %11217 = vmatprep.subr.mxu1 %v11383_v58  ;;  %11247 = vmatpush3.msra.mxu0 %v11383_v58 }
 0xae5   :  { %11218 = vmatpush3.msra.mxu1 %v11383_v58  ;;  %11248 = vmatprep.subr.mxu0 %v11383_v58 }
 0xae6   :  { %11219 = vmatprep.subr.mxu1 %v11383_v58  ;;  %11249 = vmatpush3.msra.mxu0 %v11383_v58 }
 0xae7   :  { %11220 = vmatpush3.msra.mxu1 %v11383_v58  ;;  %11250 = vmatprep.subr.mxu0 %v11383_v58 }
 0xae8   :  { %11221 = vmatprep.subr.mxu1 %v11383_v58  ;;  %11251 = vmatpush3.msra.mxu0 %v11383_v58 }
 0xae9   :  { %11222 = vmatpush3.msra.mxu1 %v11383_v58  ;;  %11252 = vmatprep.subr.mxu0 %v11383_v58 }
 0xaea   :  { %11223 = vmatprep.subr.mxu1 %v11383_v58  ;;  %11253 = vmatpush3.msra.mxu0 %v11383_v58 }
 0xaeb   :  { %11224 = vmatpush3.msra.mxu1 %v11383_v58  ;;  %11254 = vmatprep.subr.mxu0 %v11383_v58 }
 0xaec   :  { %11225 = vmatprep.subr.mxu1 %v11383_v58  ;;  %11255 = vmatpush3.msra.mxu0 %v11383_v58 }
 0xaed   :  { %11226 = vmatpush3.msra.mxu1 %v11383_v58  ;;  %11256 = vmatprep.subr.mxu0 %v11383_v58 }
 0xaee   :  { %11227 = vmatprep.subr.mxu1 %v11383_v58  ;;  %11257 = vmatpush3.msra.mxu0 %v11383_v58 }
 0xaef   :  { %11228 = vmatpush3.msra.mxu1 %v11383_v58  ;;  %11258 = vmatprep.subr.mxu0 %v11383_v58 }
 0xaf0   :  { %11229 = vmatprep.subr.mxu1 %v11383_v58  ;;  %11259 = vmatpush3.msra.mxu0 %v11383_v58 }
 0xaf1   :  { %11230 = vmatpush3.msra.mxu1 %v11383_v58  ;;  %11260 = vmatprep.subr.mxu0 %v11383_v58 }
 0xaf2   :  { %11231 = vmatprep.subr.mxu1 %v11383_v58  ;;  %11261 = vmatpush3.msra.mxu0 %v11383_v58 }
 0xaf3   :  { %11232 = vmatpush3.msra.mxu1 %v11383_v58  ;;  %11262 = vmatprep.subr.mxu0 %v11383_v58 }
 0xaf4   :  { %11233 = vmatprep.subr.mxu1 %v11383_v58  ;;  %11263 = vmatpush3.msra.mxu0 %v11383_v58 }
 0xaf5   :  { %11234 = vmatpush3.msra.mxu1 %v11383_v58  ;;  %11264 = vmatprep.subr.mxu0 %v11383_v58 }
 0xaf6   :  { %11235 = vmatprep.subr.mxu1 %v11383_v58  ;;  %11265 = vmatpush3.msra.mxu0 %v11383_v58 }
 0xaf7   :  { %11236 = vmatpush3.msra.mxu1 %v11383_v58  ;;  %11266 = vmatprep.subr.mxu0 %v11383_v58 }
 0xaf8   :  { %11237 = vmatprep.subr.mxu1 %v11383_v58  ;;  %11267 = vmatpush3.msra.mxu0 %v11383_v58 }
 0xaf9   :  { %11238 = vmatpush3.msra.mxu1 %v11383_v58  ;;  %11268 = vmatprep.subr.mxu0 %v11383_v58 }
 0xafa   :  { %8033 = vmatmul.mubr.f32.vlgmr.msra.gmra.mxu1 %v13060_v16  ;;  %11269 = vmatpush3.msra.mxu0 %v11383_v58 }
 0xafb   :  { %11277 = vmatprep.subr.mxu1 %v11383_v58  ;;  %11270 = vmatprep.subr.mxu0 %v11383_v58 }
 0xafc   :  { %11278 = vmatpush3.msra.mxu1 %v11383_v58  ;;  %8178 = vmatprep.mubr.f32.mxu1 %v8041_v23 }
 0xafd   :  { %11271 = vmatpush3.msra.mxu0 %v11383_v58  ;;  %11279 = vmatprep.subr.mxu1 %v11383_v58 }
 0xafe   :  { %11272 = vmatprep.subr.mxu0 %v11383_v58  ;;  %11280 = vmatpush3.msra.mxu1 %v11383_v58 }
 0xaff   :  { %11273 = vmatpush3.msra.mxu0 %v11383_v58  ;;  %11281 = vmatprep.subr.mxu1 %v11383_v58 }
 0xb00   :  { %8109 = vmatmul.mubr.f32.vlgmr.msra.gmra.mxu0 %v8038_v4  ;;  %11282 = vmatpush3.msra.mxu1 %v11383_v58 }
 0xb01   :  { %11312 = vmatprep.subr.mxu0 %v11383_v58  ;;  %11283 = vmatprep.subr.mxu1 %v11383_v58 }
 0xb02   :  { %11313 = vmatpush3.msra.mxu0 %v11383_v58  ;;  %8248 = vmatprep.mubr.f32.mxu0 %v8043_v24 }
 0xb03   :  { %11284 = vmatpush3.msra.mxu1 %v11383_v58  ;;  %11314 = vmatprep.subr.mxu0 %v11383_v58 }
 0xb04   :  { %11285 = vmatprep.subr.mxu1 %v11383_v58  ;;  %11315 = vmatpush3.msra.mxu0 %v11383_v58 }
 0xb05   :  { %11286 = vmatpush3.msra.mxu1 %v11383_v58  ;;  %11316 = vmatprep.subr.mxu0 %v11383_v58 }
 0xb06   :  { %11287 = vmatprep.subr.mxu1 %v11383_v58  ;;  %11317 = vmatpush3.msra.mxu0 %v11383_v58 }
 0xb07   :  { %11288 = vmatpush3.msra.mxu1 %v11383_v58  ;;  %11318 = vmatprep.subr.mxu0 %v11383_v58 }
 0xb08   :  { %11289 = vmatprep.subr.mxu1 %v11383_v58  ;;  %11319 = vmatpush3.msra.mxu0 %v11383_v58 }
 0xb09   :  { %11290 = vmatpush3.msra.mxu1 %v11383_v58  ;;  %11320 = vmatprep.subr.mxu0 %v11383_v58 }
 0xb0a   :  { %11291 = vmatprep.subr.mxu1 %v11383_v58  ;;  %11321 = vmatpush3.msra.mxu0 %v11383_v58 }
 0xb0b   :  { %11292 = vmatpush3.msra.mxu1 %v11383_v58  ;;  %11322 = vmatprep.subr.mxu0 %v11383_v58 }
 0xb0c   :  { %11293 = vmatprep.subr.mxu1 %v11383_v58  ;;  %11323 = vmatpush3.msra.mxu0 %v11383_v58 }
 0xb0d   :  { %11294 = vmatpush3.msra.mxu1 %v11383_v58  ;;  %11324 = vmatprep.subr.mxu0 %v11383_v58 }
 0xb0e   :  { %11295 = vmatprep.subr.mxu1 %v11383_v58  ;;  %11325 = vmatpush3.msra.mxu0 %v11383_v58 }
 0xb0f   :  { %11296 = vmatpush3.msra.mxu1 %v11383_v58  ;;  %11326 = vmatprep.subr.mxu0 %v11383_v58 }
 0xb10   :  { %11297 = vmatprep.subr.mxu1 %v11383_v58  ;;  %11327 = vmatpush3.msra.mxu0 %v11383_v58 }
 0xb11   :  { %11298 = vmatpush3.msra.mxu1 %v11383_v58  ;;  %11328 = vmatprep.subr.mxu0 %v11383_v58 }
 0xb12   :  { %11299 = vmatprep.subr.mxu1 %v11383_v58  ;;  %11329 = vmatpush3.msra.mxu0 %v11383_v58 }
 0xb13   :  { %11300 = vmatpush3.msra.mxu1 %v11383_v58  ;;  %11330 = vmatprep.subr.mxu0 %v11383_v58 }
 0xb14   :  { %11301 = vmatprep.subr.mxu1 %v11383_v58  ;;  %11331 = vmatpush3.msra.mxu0 %v11383_v58 }
 0xb15   :  { %11302 = vmatpush3.msra.mxu1 %v11383_v58  ;;  %11332 = vmatprep.subr.mxu0 %v11383_v58 }
 0xb16   :  { %11303 = vmatprep.subr.mxu1 %v11383_v58  ;;  %11333 = vmatpush3.msra.mxu0 %v11383_v58 }
 0xb17   :  { %11304 = vmatpush3.msra.mxu1 %v11383_v58  ;;  %11334 = vmatprep.subr.mxu0 %v11383_v58 }
 0xb18   :  { %11305 = vmatprep.subr.mxu1 %v11383_v58  ;;  %11335 = vmatpush3.msra.mxu0 %v11383_v58 }
 0xb19   :  { %11306 = vmatpush3.msra.mxu1 %v11383_v58  ;;  %11336 = vmatprep.subr.mxu0 %v11383_v58 }
 0xb1a   :  { %11307 = vmatprep.subr.mxu1 %v11383_v58  ;;  %11337 = vmatpush3.msra.mxu0 %v11383_v58 }
 0xb1b   :  { %11308 = vmatpush3.msra.mxu1 %v11383_v58  ;;  %11338 = vmatprep.subr.mxu0 %v11383_v58 }
 0xb1c   :  { %8179 = vmatmul.mubr.f32.vlgmr.msra.gmra.mxu1 %v8040_v29  ;;  %11339 = vmatpush3.msra.mxu0 %v11383_v58 }
 0xb1d   :  { %11340 = vmatprep.subr.mxu0 %v11383_v58  ;;  %8431 = vmatprep.mubr.f32.mxu1 %v11374_v2 }
 0xb1e   :  { %11341 = vmatpush3.msra.mxu0 %v11383_v58 }
 0xb1f   :  { %11342 = vmatprep.subr.mxu0 %v11383_v58 }
 0xb20   :  { %11343 = vmatpush3.msra.mxu0 %v11383_v58 }
 0xb21   :  { %8249 = vmatmul.mubr.f32.vlgmr.msra.gmra.mxu0 %v8042_v19 }
 0xb22   :  { %8502 = vmatprep.mubr.f32.mxu0 %v11374_v2 }
 0xb99   :  { %v11169_v47 = vpop.f32.mrf.mxu1 }
 0xb9b   :  { %v11170_v22 = vpop.f32.mrf.mxu1 }
 0xb9c   :  { %v11171_v14 = vadd.f32 %v11170_v22, %v11169_v47 }
 0xb9e   :  { %v11204_v38 = vpop.f32.mrf.mxu0 }
 0xba0   :  { %v11205_v60 = vpop.f32.mrf.mxu0 }
 0xba1   :  { %v11206_v48 = vadd.f32 %v11205_v60, %v11204_v38 }
 0xba3   :  { %v7965_v34 = vadd.f32 %v11206_v48, %v11171_v14 }
 0xbba   :  { %v11239_v57 = vpop.f32.mrf.mxu1 }
 0xbbc   :  { %v11240_v17 = vpop.f32.mrf.mxu1 }
 0xbbd   :  { %v11241_v0 = vadd.f32 %v11240_v17, %v11239_v57 }
 0xbbf   :  { %v8035_v36 = vadd.f32 %v11241_v0, %v7965_v34 }
 0xbc0   :  { %v11274_v28 = vpop.f32.mrf.mxu0 }
 0xbc1   :  { %v8254_v10 = vmul.f32 0.0025510204, %v8035_v36 }
 0xbc2   :  { %v11275_v63 = vpop.f32.mrf.mxu0 }
 0xbc3   :  { %v11276_v45 = vadd.f32 %v11275_v63, %v11274_v28  ;;  %v8256_v20 = vmul.f32 %v8254_v10, %v8254_v10 }
 0xbdc   :  { %v11309_v41 = vpop.f32.mrf.mxu1 }
 0xbde   :  { %v11310_v40 = vpop.f32.mrf.mxu1 }
 0xbdf   :  { %v11311_v30 = vadd.f32 %v11310_v40, %v11309_v41  ;;  %v10681_v40 = vld [vmem:[%s13460_s1 + $0xe0] sm:$0xff] }
 0xbe1   :  { %v11344_v58 = vpop.f32.mrf.mxu0  ;;  %v8181_v8 = vadd.f32 %v11311_v30, %v11276_v45 }
 0xbe3   :  { %v11345_v54 = vpop.f32.mrf.mxu0 }
 0xbe4   :  { %v11346_v53 = vadd.f32 %v11345_v54, %v11344_v58 }
 0xbe6   :  { %v8251_v46 = vadd.f32 %v11346_v53, %v8181_v8 }
 0xbe8   :  { %v8255_v56 = vmul.f32 0.0025510204, %v8251_v46 }
 0xbea   :  { %v8257_v50 = vsub.f32 %v8255_v56, %v8256_v20  ;;  %v10680_v20 = vld [vmem:[%s13460_s1 + $0xd8] sm:$0xff] }
 0xbec   :  { %v8258_v62 = vadd.f32 1e-05, %v8257_v50 }
 0xbee   :  { %11372 = vrsqrt.f32 %v8258_v62 }
 0xbfb   :  { %v11373_v31 = vpop.eup %11372 }
 0xbfc   :  { %8261 = vrot.lane.b32.xlu1 %v11373_v31, %s11385_s11  ;;  %v10688_v31 = vld [vmem:[%s13460_s1 + $0xe8] sm:$0xff] }
 0xc6e   :  { %v8262_v6 = vpop.permute.xlu1 %8261 }
 0xc6f   :  { %v8264_v51 = vmul.f32 %v10678_v1, %v8262_v6 }
 0xc71   :  { %8266 = vrot.lane.b32.xlu0 %v8264_v51, %s11375_s19 }
 0xc75   :  { %8276 = vperm.xlu0 %11364, %v8264_v51  }
 0xc79   :  { %8810 = vrot.lane.b32.xlu0 %v11374_v2, %s11376_s30 }
 0xc7d   :  { %9310 = vrot.lane.b32.xlu0 %v11374_v2, %s11378_s5 }
 0xc81   :  { %9810 = vrot.lane.b32.xlu0 %v11374_v2, %s11380_s7 }
 0xce3   :  { %v8267_v9 = vpop.permute.xlu0 %8266 }
 0xce4   :  { %v8269_v13 = vmul.f32 %v8267_v9, %v8254_v10 }
 0xce6   :  { %8271 = vrot.lane.b32.xlu1 %v8269_v13, %s11387_s14 }
 0xcf0   :  { %v8277_v37 = vpop.permute.xlu0 %8276 }
 0xcf1   :  { %v8279_v42 = vmul.f32 %v8277_v37, %v12961_v44  ;;  %v8280_v39 = vmul.f32 %v8277_v37, %v12958_v33  ;;  %v8281_v61 = vmul.f32 %v8277_v37, %v12985_v26  ;;  %v8282_v59 = vmul.f32 %v8277_v37, %v12977_v15 }
 0xcf2   :  { %v8283_v11 = vmul.f32 %v8277_v37, %v13060_v16  ;;  %v8284_v23 = vmul.f32 %v8277_v37, %v12993_v25 }
 0xcf4   :  { %v8811_v38 = vpop.permute.xlu0 %8810 }
 0xcf8   :  { %v13297_v60 = vpop.permute.xlu0 %9310 }
 0xcfc   :  { %v13301_v48 = vpop.permute.xlu0 %9810 }
 0xd58   :  { %v8272_v35 = vpop.permute.xlu1 %8271 }
 0xd59   :  { %v8274_v7 = vsub.f32 %v10678_v1, %v8272_v35 }
 0xd5b   :  { %8287 = vperm.xlu1 %11365, %v8274_v7  }
 0xd5f   :  { %8350 = vrot.lane.b32.xlu1 %v11374_v2, %s11375_s19 }
 0xd63   :  { %9060 = vrot.lane.b32.xlu1 %v11374_v2, %s11377_s0 }
 0xd67   :  { %9560 = vrot.lane.b32.xlu1 %v11374_v2, %s11379_s6 }
 0xd6b   :  { %10060 = vrot.lane.b32.xlu1 %v11374_v2, %s11381_s8 }
 0xdd6   :  { %v8288_v49 = vpop.permute.xlu1 %8287 }
 0xdd7   :  { %v8290_v21 = vadd.f32 %v8288_v49, %v8279_v42  ;;  %v8291_v52 = vadd.f32 %v8288_v49, %v8280_v39  ;;  %v8292_v12 = vadd.f32 %v8288_v49, %v8281_v61  ;;  %v8293_v3 = vadd.f32 %v8288_v49, %v8282_v59 }
 0xdd8   :  { %v8294_v29 = vadd.f32 %v8288_v49, %v8283_v11  ;;  %v8295_v19 = vadd.f32 %v8288_v49, %v8284_v23 }
 0xdd9   :  { %v8297_v4 = vmax.f32 %v8291_v52, 0.0  ;;  %v8298_v24 = vmax.f32 %v8292_v12, 0.0  ;;  %v8296_v44 = vmax.f32 %v8290_v21, 0.0  ;;  %v8299_v47 = vmax.f32 %v8293_v3, 0.0  ;;  %v10692_v21 = vld [vmem:[%s13460_s1 + $0xf0] sm:$0xff] }
 0xdda   :  { %v8300_v26 = vmax.f32 %v8294_v29, 0.0  ;;  %v8301_v25 = vmax.f32 %v8295_v19, 0.0 }
 0xddb   :  { %v13175_v33 = vmul.f32 %v8297_v4, %v12951_v32  ;;  %v13178_v15 = vmul.f32 %v8298_v24, %v12969_v18  ;;  %v13185_v16 = vmul.f32 %v8296_v44, %v12955_v43  ;;  %v13188_v22 = vmul.f32 %v8299_v47, %v12965_v5  ;;  %v8351_v5 = vpop.permute.xlu1 %8350  ;;  %v10696_v47 = vld [vmem:[%s13460_s1 + $0xf8] sm:$0xff] }
 0xddc   :  { %v13195_v32 = vmul.f32 %v8300_v26, %v13049_v55  ;;  %v13198_v18 = vmul.f32 %v8301_v25, %v12982_v27  ;;  %v11388_v43 = vmov 0   ;;  %v10716_v27 = vld [vmem:[%s13462_s2 + $0x18] sm:$0xff] }
 0xddd   :  { %8342 = vrot.lane.b32.xlu0 %v13178_v15, %s11375_s19  ;;  %8340 = vrot.lane.b32.xlu1 %v13175_v33, %s11375_s19 }
 0xdde   :  { %11366 = vset.pattern.permute.xlu1 %v11388_v43  ;;  %11367 = vset.pattern.permute.xlu0 %v11388_v43 }
 0xddf   :  { %v13293_v55 = vpop.permute.xlu1 %9060 }
 0xde1   :  { %8344 = vrot.lane.b32.xlu0 %v13188_v22, %s11375_s19  ;;  %8338 = vrot.lane.b32.xlu1 %v13185_v16, %s11375_s19 }
 0xde3   :  { %v13295_v57 = vpop.permute.xlu1 %9560 }
 0xde5   :  { %8348 = vrot.lane.b32.xlu0 %v13198_v18, %s11375_s19  ;;  %8346 = vrot.lane.b32.xlu1 %v13195_v32, %s11375_s19 }
 0xde7   :  { %v13299_v17 = vpop.permute.xlu1 %10060 }
 0xde9   :  { %8800 = vrot.lane.b32.xlu0 %v13175_v33, %s11376_s30  ;;  %8802 = vrot.lane.b32.xlu1 %v13178_v15, %s11376_s30 }
 0xded   :  { %8798 = vrot.lane.b32.xlu0 %v13185_v16, %s11376_s30  ;;  %8804 = vrot.lane.b32.xlu1 %v13188_v22, %s11376_s30 }
 0xdf1   :  { %8806 = vrot.lane.b32.xlu0 %v13195_v32, %s11376_s30  ;;  %8808 = vrot.lane.b32.xlu1 %v13198_v18, %s11376_s30 }
 0xdf5   :  { %9052 = vrot.lane.b32.xlu0 %v13178_v15, %s11377_s0  ;;  %9050 = vrot.lane.b32.xlu1 %v13175_v33, %s11377_s0 }
 0xdf9   :  { %9056 = vrot.lane.b32.xlu0 %v13195_v32, %s11377_s0  ;;  %9054 = vrot.lane.b32.xlu1 %v13188_v22, %s11377_s0 }
 0xdfd   :  { %9058 = vrot.lane.b32.xlu0 %v13198_v18, %s11377_s0  ;;  %9048 = vrot.lane.b32.xlu1 %v13185_v16, %s11377_s0 }
 0xe01   :  { %9300 = vrot.lane.b32.xlu0 %v13175_v33, %s11378_s5  ;;  %9302 = vrot.lane.b32.xlu1 %v13178_v15, %s11378_s5 }
 0xe05   :  { %9298 = vrot.lane.b32.xlu0 %v13185_v16, %s11378_s5  ;;  %9304 = vrot.lane.b32.xlu1 %v13188_v22, %s11378_s5 }
 0xe09   :  { %9306 = vrot.lane.b32.xlu0 %v13195_v32, %s11378_s5  ;;  %9308 = vrot.lane.b32.xlu1 %v13198_v18, %s11378_s5 }
 0xe0d   :  { %9552 = vrot.lane.b32.xlu0 %v13178_v15, %s11379_s6  ;;  %9550 = vrot.lane.b32.xlu1 %v13175_v33, %s11379_s6 }
 0xe11   :  { %9556 = vrot.lane.b32.xlu0 %v13195_v32, %s11379_s6  ;;  %9554 = vrot.lane.b32.xlu1 %v13188_v22, %s11379_s6 }
 0xe15   :  { %9558 = vrot.lane.b32.xlu0 %v13198_v18, %s11379_s6  ;;  %9548 = vrot.lane.b32.xlu1 %v13185_v16, %s11379_s6 }
 0xe19   :  { %9800 = vrot.lane.b32.xlu0 %v13175_v33, %s11380_s7  ;;  %9802 = vrot.lane.b32.xlu1 %v13178_v15, %s11380_s7 }
 0xe1d   :  { %9798 = vrot.lane.b32.xlu0 %v13185_v16, %s11380_s7  ;;  %9804 = vrot.lane.b32.xlu1 %v13188_v22, %s11380_s7 }
 0xe21   :  { %9806 = vrot.lane.b32.xlu0 %v13195_v32, %s11380_s7  ;;  %9808 = vrot.lane.b32.xlu1 %v13198_v18, %s11380_s7 }
 0xe25   :  { %10052 = vrot.lane.b32.xlu0 %v13178_v15, %s11381_s8  ;;  %10050 = vrot.lane.b32.xlu1 %v13175_v33, %s11381_s8 }
 0xe29   :  { %10056 = vrot.lane.b32.xlu0 %v13195_v32, %s11381_s8  ;;  %10054 = vrot.lane.b32.xlu1 %v13188_v22, %s11381_s8 }
 0xe2d   :  { %10058 = vrot.lane.b32.xlu0 %v13198_v18, %s11381_s8  ;;  %10048 = vrot.lane.b32.xlu1 %v13185_v16, %s11381_s8 }
 0xe31   :  { %10300 = vrot.lane.b32.xlu0 %v13175_v33, %s11382_s9  ;;  %10302 = vrot.lane.b32.xlu1 %v13178_v15, %s11382_s9 }
 0xe35   :  { %10298 = vrot.lane.b32.xlu0 %v13185_v16, %s11382_s9  ;;  %10304 = vrot.lane.b32.xlu1 %v13188_v22, %s11382_s9 }
 0xe39   :  { %10306 = vrot.lane.b32.xlu0 %v13195_v32, %s11382_s9  ;;  %10308 = vrot.lane.b32.xlu1 %v13198_v18, %s11382_s9 }
 0xe3d   :  { %10310 = vrot.lane.b32.xlu0 %v11374_v2, %s11382_s9  ;;  %10550 = vperm.xlu1 %11366, %v10716_v27  }
 0xe4f   :  { %v8341_v28 = vpop.permute.xlu1 %8340  ;;  %v8343_v14 = vpop.permute.xlu0 %8342 }
 0xe50   :  { %v8353_v0 = vsel %vm68_vm0, %v8341_v28, %v8343_v14 }
 0xe51   :  { %8397 = vmatprep.subr.mxu1 %v8353_v0 }
 0xe53   :  { %v8339_v41 = vpop.permute.xlu1 %8338  ;;  %v8345_v34 = vpop.permute.xlu0 %8344 }
 0xe54   :  { %v8352_v63 = vsel %vm68_vm0, %v8339_v41, %v8341_v28  ;;  %v8354_v10 = vsel %vm68_vm0, %v8343_v14, %v8345_v34  ;;  %v10700_v28 = vld [vmem:[%s13460_s1 + $0x100] sm:$0xff] }
 0xe55   :  { %8398 = vmatpush1.msra.mxu1 %v8352_v63 }
 0xe56   :  { %10682 = vmatmul.mubr.msk.f32.vlgmr.msra.gmra.mxu1 %vm81_vm1, %v10681_v40 }
 0xe57   :  { %v8347_v36 = vpop.permute.xlu1 %8346  ;;  %v8349_v30 = vpop.permute.xlu0 %8348  ;;  %8573 = vmatprep.mubr.f32.mxu1 %v11374_v2 }
 0xe58   :  { %v8356_v58 = vsel %vm68_vm0, %v8347_v36, %v8349_v30  ;;  %v8355_v45 = vsel %vm68_vm0, %v8345_v34, %v8347_v36  ;;  %v8357_v54 = vsel %vm68_vm0, %v8349_v30, %v8351_v5 }
 0xe59   :  { %8468 = vmatprep.subr.mxu0 %v8355_v45  ;;  %8539 = vmatprep.subr.mxu1 %v8357_v54  ;;  %v10704_v45 = vld [vmem:[%s13460_s1 + $0x108] sm:$0xff] }
 0xe5a   :  { %8469 = vmatpush1.msra.mxu0 %v8354_v10  ;;  %8540 = vmatpush1.msra.mxu1 %v8356_v58 }
 0xe5b   :  { %v8803_v8 = vpop.permute.xlu1 %8802  ;;  %10683 = vmatmul.mubr.msk.f32.vlgmr.msra.gmra.mxu0 %vm81_vm1, %v10681_v40  ;;  %8613 = vmatprep.subr.mxu0 %v13175_v33  ;;  %v8801_v53 = vpop.permute.xlu0 %8800 }
 0xe5c   :  { %8684 = vmatprep.subr.mxu1 %v13188_v22  ;;  %10684 = vmatmul.mubr.msk.f32.vlgmr.msra.gmra.mxu1 %vm81_vm1, %v10681_v40  ;;  %v8813_v46 = vsel %vm530_vm2, %v8801_v53, %v8803_v8 }
 0xe5d   :  { %8614 = vmatpush1.msra.mxu0 %v13185_v16  ;;  %8685 = vmatpush1.msra.mxu1 %v13178_v15 }
 0xe5e   :  { %8755 = vmatprep.subr.mxu0 %v13198_v18  ;;  %8857 = vmatprep.subr.mxu1 %v8813_v46 }
 0xe5f   :  { %8647 = vmatprep.mubr.f32.mxu0 %v11374_v2  ;;  %v8805_v56 = vpop.permute.xlu1 %8804  ;;  %v8799_v50 = vpop.permute.xlu0 %8798  ;;  %8718 = vmatprep.mubr.f32.mxu1 %v11374_v2 }
 0xe60   :  { %10685 = vmatmul.mubr.msk.f32.vlgmr.msra.gmra.mxu0 %vm81_vm1, %v10680_v20  ;;  %v8812_v62 = vsel %vm530_vm2, %v8799_v50, %v8801_v53  ;;  %10686 = vmatmul.mubr.msk.f32.vlgmr.msra.gmra.mxu1 %vm81_vm1, %v10680_v20  ;;  %v8814_v35 = vsel %vm530_vm2, %v8803_v8, %v8805_v56 }
 0xe61   :  { %8756 = vmatpush1.msra.mxu0 %v13195_v32  ;;  %8858 = vmatpush1.msra.mxu1 %v8812_v62 }
 0xe62   :  { %8789 = vmatprep.mubr.f32.mxu0 %v11374_v2  ;;  %8891 = vmatprep.mubr.f32.mxu1 %v11374_v2 }
 0xe63   :  { %v8809_v1 = vpop.permute.xlu1 %8808  ;;  %v8807_v6 = vpop.permute.xlu0 %8806 }
 0xe64   :  { %v8816_v51 = vsel %vm530_vm2, %v8807_v6, %v8809_v1  ;;  %v8815_v9 = vsel %vm530_vm2, %v8805_v56, %v8807_v6  ;;  %v8817_v13 = vsel %vm530_vm2, %v8809_v1, %v8811_v38  ;;  %10687 = vmatmul.mubr.msk.f32.vlgmr.msra.gmra.mxu0 %vm81_vm1, %v10680_v20  ;;  %10689 = vmatmul.mubr.msk.f32.vlgmr.msra.gmra.mxu1 %vm81_vm1, %v10688_v31 }
 0xe65   :  { %8928 = vmatprep.subr.mxu0 %v8815_v9  ;;  %8999 = vmatprep.subr.mxu1 %v8817_v13  ;;  %v10708_v9 = vld [vmem:[%s13460_s1 + $0x110] sm:$0xff] }
 0xe66   :  { %8929 = vmatpush1.msra.mxu0 %v8814_v35  ;;  %9000 = vmatpush1.msra.mxu1 %v8816_v51 }
 0xe67   :  { %v9051_v7 = vpop.permute.xlu1 %9050  ;;  %v9053_v37 = vpop.permute.xlu0 %9052  ;;  %9033 = vmatprep.mubr.f32.mxu1 %v11374_v2  ;;  %8962 = vmatprep.mubr.f32.mxu0 %v11374_v2 }
 0xe68   :  { %v9063_v42 = vsel %vm781_vm3, %v9051_v7, %v9053_v37  ;;  %10691 = vmatmul.mubr.msk.f32.vlgmr.msra.gmra.mxu1 %vm81_vm1, %v10688_v31  ;;  %10690 = vmatmul.mubr.msk.f32.vlgmr.msra.gmra.mxu0 %vm81_vm1, %v10688_v31 }
 0xe69   :  { %9107 = vmatprep.subr.mxu0 %v9063_v42  ;;  %9141 = vmatprep.mubr.f32.mxu0 %v11374_v2 }
 0xe6a   :  { %9212 = vmatprep.mubr.f32.mxu1 %v11374_v2 }
 0xe6b   :  { %v9055_v39 = vpop.permute.xlu1 %9054  ;;  %v9057_v61 = vpop.permute.xlu0 %9056 }
 0xe6c   :  { %v9064_v59 = vsel %vm781_vm3, %v9053_v37, %v9055_v39  ;;  %v9065_v49 = vsel %vm781_vm3, %v9055_v39, %v9057_v61 }
 0xe6d   :  { %9178 = vmatprep.subr.mxu1 %v9065_v49 }
 0xe6e   :  { %9179 = vmatpush1.msra.mxu1 %v9064_v59 }
 0xe6f   :  { %v9049_v52 = vpop.permute.xlu1 %9048  ;;  %v9059_v12 = vpop.permute.xlu0 %9058  ;;  %10694 = vmatmul.mubr.msk.f32.vlgmr.msra.gmra.mxu1 %vm81_vm1, %v10692_v21 }
 0xe70   :  { %v9062_v3 = vsel %vm781_vm3, %v9049_v52, %v9051_v7  ;;  %v9067_v11 = vsel %vm781_vm3, %v9059_v12, %v13293_v55  ;;  %9391 = vmatprep.mubr.f32.mxu1 %v11374_v2  ;;  %v9066_v23 = vsel %vm781_vm3, %v9057_v61, %v9059_v12 }
 0xe71   :  { %9108 = vmatpush1.msra.mxu0 %v9062_v3 }
 0xe72   :  { %9249 = vmatprep.subr.mxu0 %v9067_v11  ;;  %10693 = vmatmul.mubr.msk.f32.vlgmr.msra.gmra.mxu0 %vm81_vm1, %v10692_v21 }
 0xe73   :  { %v9303_v4 = vpop.permute.xlu1 %9302  ;;  %9250 = vmatpush1.msra.mxu0 %v9066_v23  ;;  %v9301_v24 = vpop.permute.xlu0 %9300  ;;  %9283 = vmatprep.mubr.f32.mxu0 %v11374_v2 }
 0xe74   :  { %v9313_v29 = vsel %vm1032_vm4, %v9301_v24, %v9303_v4 }
 0xe75   :  { %9357 = vmatprep.subr.mxu1 %v9313_v29 }
 0xe76   :  { %10695 = vmatmul.mubr.msk.f32.vlgmr.msra.gmra.mxu0 %vm81_vm1, %v10692_v21 }
 0xe77   :  { %v9305_v19 = vpop.permute.xlu1 %9304  ;;  %v9299_v44 = vpop.permute.xlu0 %9298  ;;  %9462 = vmatprep.mubr.f32.mxu0 %v11374_v2 }
 0xe78   :  { %v9312_v33 = vsel %vm1032_vm4, %v9299_v44, %v9301_v24  ;;  %v9314_v32 = vsel %vm1032_vm4, %v9303_v4, %v9305_v19 }
 0xe79   :  { %9358 = vmatpush1.msra.mxu1 %v9312_v33 }
 0xe7a   :  { %10697 = vmatmul.mubr.msk.f32.vlgmr.msra.gmra.mxu1 %vm81_vm1, %v10696_v47 }
 0xe7b   :  { %v9309_v15 = vpop.permute.xlu1 %9308  ;;  %v9307_v26 = vpop.permute.xlu0 %9306  ;;  %9533 = vmatprep.mubr.f32.mxu1 %v11374_v2 }
 0xe7c   :  { %v9316_v25 = vsel %vm1032_vm4, %v9307_v26, %v9309_v15  ;;  %v9315_v16 = vsel %vm1032_vm4, %v9305_v19, %v9307_v26  ;;  %v9317_v22 = vsel %vm1032_vm4, %v9309_v15, %v13297_v60 }
 0xe7d   :  { %9428 = vmatprep.subr.mxu0 %v9315_v16  ;;  %9499 = vmatprep.subr.mxu1 %v9317_v22 }
 0xe7e   :  { %9429 = vmatpush1.msra.mxu0 %v9314_v32  ;;  %9500 = vmatpush1.msra.mxu1 %v9316_v25 }
 0xe7f   :  { %v9551_v18 = vpop.permute.xlu1 %9550  ;;  %v9553_v43 = vpop.permute.xlu0 %9552  ;;  %10698 = vmatmul.mubr.msk.f32.vlgmr.msra.gmra.mxu0 %vm81_vm1, %v10696_v47  ;;  %10699 = vmatmul.mubr.msk.f32.vlgmr.msra.gmra.mxu1 %vm81_vm1, %v10696_v47 }
 0xe80   :  { %v9563_v5 = vsel %vm1283_vm5, %v9551_v18, %v9553_v43  ;;  %9641 = vmatprep.mubr.f32.mxu0 %v11374_v2  ;;  %9712 = vmatprep.mubr.f32.mxu1 %v11374_v2 }
 0xe81   :  { %9607 = vmatprep.subr.mxu0 %v9563_v5 }
 0xe83   :  { %v9555_v27 = vpop.permute.xlu1 %9554  ;;  %v9557_v55 = vpop.permute.xlu0 %9556 }
 0xe84   :  { %v9564_v38 = vsel %vm1283_vm5, %v9553_v43, %v9555_v27  ;;  %v9565_v60 = vsel %vm1283_vm5, %v9555_v27, %v9557_v55 }
 0xe85   :  { %9678 = vmatprep.subr.mxu1 %v9565_v60 }
 0xe86   :  { %9679 = vmatpush1.msra.mxu1 %v9564_v38 }
 0xe87   :  { %v9549_v14 = vpop.permute.xlu1 %9548  ;;  %v9559_v0 = vpop.permute.xlu0 %9558  ;;  %10702 = vmatmul.mubr.msk.f32.vlgmr.msra.gmra.mxu1 %vm81_vm1, %v10700_v28 }
 0xe88   :  { %v9562_v41 = vsel %vm1283_vm5, %v9549_v14, %v9551_v18  ;;  %v9567_v34 = vsel %vm1283_vm5, %v9559_v0, %v13295_v57  ;;  %9891 = vmatprep.mubr.f32.mxu1 %v11374_v2  ;;  %v9566_v40 = vsel %vm1283_vm5, %v9557_v55, %v9559_v0 }
 0xe89   :  { %9608 = vmatpush1.msra.mxu0 %v9562_v41 }
 0xe8a   :  { %10701 = vmatmul.mubr.msk.f32.vlgmr.msra.gmra.mxu0 %vm81_vm1, %v10700_v28  ;;  %9749 = vmatprep.subr.mxu0 %v9567_v34 }
 0xe8b   :  { %v9803_v63 = vpop.permute.xlu1 %9802  ;;  %9750 = vmatpush1.msra.mxu0 %v9566_v40  ;;  %v9801_v36 = vpop.permute.xlu0 %9800  ;;  %9783 = vmatprep.mubr.f32.mxu0 %v11374_v2 }
 0xe8c   :  { %v9813_v30 = vsel %vm1534_vm6, %v9801_v36, %v9803_v63 }
 0xe8d   :  { %9857 = vmatprep.subr.mxu1 %v9813_v30 }
 0xe8e   :  { %10703 = vmatmul.mubr.msk.f32.vlgmr.msra.gmra.mxu0 %vm81_vm1, %v10700_v28 }
 0xe8f   :  { %v9805_v58 = vpop.permute.xlu1 %9804  ;;  %v9799_v57 = vpop.permute.xlu0 %9798  ;;  %9962 = vmatprep.mubr.f32.mxu0 %v11374_v2 }
 0xe90   :  { %v9812_v54 = vsel %vm1534_vm6, %v9799_v57, %v9801_v36  ;;  %v9814_v56 = vsel %vm1534_vm6, %v9803_v63, %v9805_v58 }
 0xe91   :  { %9858 = vmatpush1.msra.mxu1 %v9812_v54 }
 0xe92   :  { %10705 = vmatmul.mubr.msk.f32.vlgmr.msra.gmra.mxu1 %vm81_vm1, %v10704_v45 }
 0xe93   :  { %v9809_v10 = vpop.permute.xlu1 %9808  ;;  %v9807_v8 = vpop.permute.xlu0 %9806  ;;  %10033 = vmatprep.mubr.f32.mxu1 %v11374_v2 }
 0xe94   :  { %v9816_v53 = vsel %vm1534_vm6, %v9807_v8, %v9809_v10  ;;  %v9815_v46 = vsel %vm1534_vm6, %v9805_v58, %v9807_v8  ;;  %v9817_v20 = vsel %vm1534_vm6, %v9809_v10, %v13301_v48 }
 0xe95   :  { %9928 = vmatprep.subr.mxu0 %v9815_v46  ;;  %9999 = vmatprep.subr.mxu1 %v9817_v20 }
 0xe96   :  { %9929 = vmatpush1.msra.mxu0 %v9814_v56  ;;  %10000 = vmatpush1.msra.mxu1 %v9816_v53 }
 0xe97   :  { %v10051_v50 = vpop.permute.xlu1 %10050  ;;  %10706 = vmatmul.mubr.msk.f32.vlgmr.msra.gmra.mxu0 %vm81_vm1, %v10704_v45  ;;  %10707 = vmatmul.mubr.msk.f32.vlgmr.msra.gmra.mxu1 %vm81_vm1, %v10704_v45  ;;  %v10053_v62 = vpop.permute.xlu0 %10052 }
 0xe98   :  { %v10063_v31 = vsel %vm1785_vm7, %v10051_v50, %v10053_v62  ;;  %10212 = vmatprep.mubr.f32.mxu1 %v11374_v2  ;;  %10141 = vmatprep.mubr.f32.mxu0 %v11374_v2 }
 0xe99   :  { %10107 = vmatprep.subr.mxu0 %v10063_v31 }
 0xe9b   :  { %v10055_v48 = vpop.permute.xlu1 %10054  ;;  %v10057_v1 = vpop.permute.xlu0 %10056 }
 0xe9c   :  { %v10064_v6 = vsel %vm1785_vm7, %v10053_v62, %v10055_v48  ;;  %v10065_v51 = vsel %vm1785_vm7, %v10055_v48, %v10057_v1 }
 0xe9d   :  { %10178 = vmatprep.subr.mxu1 %v10065_v51 }
 0xe9e   :  { %10179 = vmatpush1.msra.mxu1 %v10064_v6 }
 0xe9f   :  { %v10049_v13 = vpop.permute.xlu1 %10048  ;;  %10710 = vmatmul.mubr.msk.f32.vlgmr.msra.gmra.mxu1 %vm81_vm1, %v10708_v9  ;;  %v10059_v35 = vpop.permute.xlu0 %10058 }
 0xea0   :  { %v10062_v7 = vsel %vm1785_vm7, %v10049_v13, %v10051_v50  ;;  %v10067_v37 = vsel %vm1785_vm7, %v10059_v35, %v13299_v17  ;;  %10391 = vmatprep.mubr.f32.mxu1 %v11374_v2  ;;  %v10066_v42 = vsel %vm1785_vm7, %v10057_v1, %v10059_v35  ;;  %v10712_v17 = vld [vmem:[%s13460_s1 + $0x118] sm:$0xff] }
 0xea1   :  { %10108 = vmatpush1.msra.mxu0 %v10062_v7 }
 0xea2   :  { %10709 = vmatmul.mubr.msk.f32.vlgmr.msra.gmra.mxu0 %vm81_vm1, %v10708_v9  ;;  %10249 = vmatprep.subr.mxu0 %v10067_v37 }
 0xea3   :  { %v10303_v39 = vpop.permute.xlu1 %10302  ;;  %10250 = vmatpush1.msra.mxu0 %v10066_v42  ;;  %v10301_v61 = vpop.permute.xlu0 %10300  ;;  %10283 = vmatprep.mubr.f32.mxu0 %v11374_v2 }
 0xea4   :  { %v10313_v59 = vsel %vm2036_vm8, %v10301_v61, %v10303_v39 }
 0xea5   :  { %10357 = vmatprep.subr.mxu1 %v10313_v59 }
 0xea6   :  { %10711 = vmatmul.mubr.msk.f32.vlgmr.msra.gmra.mxu0 %vm81_vm1, %v10708_v9 }
 0xea7   :  { %v10299_v49 = vpop.permute.xlu0 %10298  ;;  %10462 = vmatprep.mubr.f32.mxu0 %v11374_v2  ;;  %v10305_v21 = vpop.permute.xlu1 %10304 }
 0xea8   :  { %v10312_v52 = vsel %vm2036_vm8, %v10299_v49, %v10301_v61  ;;  %v10314_v11 = vsel %vm2036_vm8, %v10303_v39, %v10305_v21 }
 0xea9   :  { %10358 = vmatpush1.msra.mxu1 %v10312_v52 }
 0xeaa   :  { %10713 = vmatmul.mubr.msk.f32.vlgmr.msra.gmra.mxu1 %vm81_vm1, %v10712_v17 }
 0xeab   :  { %v10307_v12 = vpop.permute.xlu0 %10306  ;;  %10533 = vmatprep.mubr.f32.mxu1 %v11374_v2  ;;  %v10309_v23 = vpop.permute.xlu1 %10308 }
 0xeac   :  { %v10315_v3 = vsel %vm2036_vm8, %v10305_v21, %v10307_v12  ;;  %v10316_v29 = vsel %vm2036_vm8, %v10307_v12, %v10309_v23 }
 0xead   :  { %10428 = vmatprep.subr.mxu0 %v10315_v3 }
 0xeae   :  { %10429 = vmatpush1.msra.mxu0 %v10314_v11 }
 0xeaf   :  { %10714 = vmatmul.mubr.msk.f32.vlgmr.msra.gmra.mxu0 %vm81_vm1, %v10712_v17  ;;  %v10311_v4 = vpop.permute.xlu0 %10310 }
 0xeb0   :  { %v10317_v24 = vsel %vm2036_vm8, %v10309_v23, %v10311_v4 }
 0xeb1   :  { %10499 = vmatprep.subr.mxu1 %v10317_v24 }
 0xeb2   :  { %10500 = vmatpush1.msra.mxu1 %v10316_v29 }
 0xeb3   :  { %10715 = vmatmul.mubr.msk.f32.vlgmr.msra.gmra.mxu1 %vm81_vm1, %v10712_v17 }
 0xf16   :  { %v8433_v19 = vpop.f32.mrf.mxu1 }
 0xf18   :  { %v8435_v2 = vpop.f32.mrf.mxu1 }
 0xf1b   :  { %v8504_v44 = vpop.f32.mrf.mxu0 }
 0xf1c   :  { %v8575_v47 = vpop.f32.mrf.mxu1 }
 0xf1d   :  { %v8506_v33 = vpop.f32.mrf.mxu0 }
 0xf1e   :  { %v8577_v15 = vpop.f32.mrf.mxu1 }
 0xf20   :  { %v8649_v26 = vpop.f32.mrf.mxu0  ;;  %v8720_v25 = vpop.f32.mrf.mxu1 }
 0xf21   :  { %v8650_v56 = vadd.f32 %v8649_v26, %v8433_v19  ;;  %v8721_v62 = vadd.f32 %v8720_v25, %v8504_v44 }
 0xf22   :  { %v8651_v16 = vpop.f32.mrf.mxu0  ;;  %v8722_v22 = vpop.f32.mrf.mxu1 }
 0xf23   :  { %v8652_v50 = vadd.f32 %v8651_v16, %v8435_v2  ;;  %v8723_v6 = vadd.f32 %v8722_v22, %v8506_v33 }
 0xf24   :  { %v8791_v32 = vpop.f32.mrf.mxu0  ;;  %v8893_v18 = vpop.f32.mrf.mxu1 }
 0xf25   :  { %v9040_v1 = vadd.f32 %v8893_v18, %v8650_v56  ;;  %v8792_v37 = vadd.f32 %v8791_v32, %v8575_v47 }
 0xf26   :  { %v8793_v43 = vpop.f32.mrf.mxu0  ;;  %v8895_v5 = vpop.f32.mrf.mxu1 }
 0xf27   :  { %v9041_v9 = vadd.f32 %v8895_v5, %v8652_v50  ;;  %v8794_v59 = vadd.f32 %v8793_v43, %v8577_v15  ;;  %v10551_v43 = vpop.permute.xlu1 %10550 }
 0xf28   :  { %v8964_v27 = vpop.f32.mrf.mxu0  ;;  %v9035_v55 = vpop.f32.mrf.mxu1 }
 0xf29   :  { %v9042_v13 = vadd.f32 %v8964_v27, %v8721_v62  ;;  %v9044_v12 = vadd.f32 %v9035_v55, %v8792_v37 }
 0xf2a   :  { %v8966_v38 = vpop.f32.mrf.mxu0  ;;  %v9037_v60 = vpop.f32.mrf.mxu1 }
 0xf2b   :  { %v9043_v42 = vadd.f32 %v8966_v38, %v8723_v6  ;;  %v9045_v29 = vadd.f32 %v9037_v60, %v8794_v59 }
 0xf2f   :  { %v9214_v14 = vpop.f32.mrf.mxu1 }
 0xf30   :  { %v9292_v49 = vadd.f32 %v9214_v14, %v9042_v13 }
 0xf31   :  { %v9216_v41 = vpop.f32.mrf.mxu1 }
 0xf32   :  { %v9143_v28 = vpop.f32.mrf.mxu0  ;;  %v9293_v3 = vadd.f32 %v9216_v41, %v9043_v42 }
 0xf33   :  { %v9290_v7 = vadd.f32 %v9143_v28, %v9040_v1 }
 0xf34   :  { %v9145_v0 = vpop.f32.mrf.mxu0 }
 0xf35   :  { %v9291_v61 = vadd.f32 %v9145_v0, %v9041_v9 }
 0xf36   :  { %v9285_v34 = vpop.f32.mrf.mxu0 }
 0xf37   :  { %v9294_v33 = vadd.f32 %v9285_v34, %v9044_v12 }
 0xf38   :  { %v9287_v63 = vpop.f32.mrf.mxu0 }
 0xf39   :  { %v9295_v22 = vadd.f32 %v9287_v63, %v9045_v29 }
 0xf3a   :  { %v9393_v40 = vpop.f32.mrf.mxu1 }
 0xf3b   :  { %v9540_v52 = vadd.f32 %v9393_v40, %v9290_v7 }
 0xf3c   :  { %v9395_v36 = vpop.f32.mrf.mxu1 }
 0xf3d   :  { %v9541_v23 = vadd.f32 %v9395_v36, %v9291_v61 }
 0xf3f   :  { %v9464_v30 = vpop.f32.mrf.mxu0  ;;  %v9535_v58 = vpop.f32.mrf.mxu1 }
 0xf40   :  { %v9542_v19 = vadd.f32 %v9464_v30, %v9292_v49  ;;  %v9544_v55 = vadd.f32 %v9535_v58, %v9294_v33 }
 0xf41   :  { %v9466_v57 = vpop.f32.mrf.mxu0  ;;  %v9537_v45 = vpop.f32.mrf.mxu1 }
 0xf42   :  { %v9543_v47 = vadd.f32 %v9466_v57, %v9293_v3  ;;  %v9545_v40 = vadd.f32 %v9537_v45, %v9295_v22 }
 0xf47   :  { %v9714_v10 = vpop.f32.mrf.mxu1 }
 0xf48   :  { %v9792_v32 = vadd.f32 %v9714_v10, %v9542_v19 }
 0xf49   :  { %v9716_v53 = vpop.f32.mrf.mxu1 }
 0xf4a   :  { %v9643_v54 = vpop.f32.mrf.mxu0  ;;  %v9793_v38 = vadd.f32 %v9716_v53, %v9543_v47 }
 0xf4b   :  { %v9790_v4 = vadd.f32 %v9643_v54, %v9540_v52 }
 0xf4c   :  { %v9645_v8 = vpop.f32.mrf.mxu0 }
 0xf4d   :  { %v9791_v2 = vadd.f32 %v9645_v8, %v9541_v23 }
 0xf4e   :  { %v9785_v46 = vpop.f32.mrf.mxu0 }
 0xf4f   :  { %v9794_v34 = vadd.f32 %v9785_v46, %v9544_v55 }
 0xf50   :  { %v9787_v31 = vpop.f32.mrf.mxu0 }
 0xf51   :  { %v9795_v54 = vadd.f32 %v9787_v31, %v9545_v40 }
 0xf52   :  { %v9893_v20 = vpop.f32.mrf.mxu1 }
 0xf53   :  { %v10040_v44 = vadd.f32 %v9893_v20, %v9790_v4 }
 0xf54   :  { %v9895_v48 = vpop.f32.mrf.mxu1 }
 0xf55   :  { %v10041_v25 = vadd.f32 %v9895_v48, %v9791_v2 }
 0xf57   :  { %v9964_v51 = vpop.f32.mrf.mxu0  ;;  %v10035_v35 = vpop.f32.mrf.mxu1 }
 0xf58   :  { %v10042_v28 = vadd.f32 %v9964_v51, %v9792_v32  ;;  %v10044_v10 = vadd.f32 %v10035_v35, %v9794_v34 }
 0xf59   :  { %v9966_v39 = vpop.f32.mrf.mxu0  ;;  %v10037_v17 = vpop.f32.mrf.mxu1 }
 0xf5a   :  { %v10043_v36 = vadd.f32 %v9966_v39, %v9793_v38  ;;  %v10045_v20 = vadd.f32 %v10037_v17, %v9795_v54 }
 0xf5f   :  { %v10214_v11 = vpop.f32.mrf.mxu1 }
 0xf60   :  { %v10292_v30 = vadd.f32 %v10214_v11, %v10042_v28 }
 0xf61   :  { %v10216_v26 = vpop.f32.mrf.mxu1 }
 0xf62   :  { %v10143_v21 = vpop.f32.mrf.mxu0  ;;  %v10293_v8 = vadd.f32 %v10216_v26, %v10043_v36 }
 0xf63   :  { %v10290_v16 = vadd.f32 %v10143_v21, %v10040_v44 }
 0xf64   :  { %v10145_v24 = vpop.f32.mrf.mxu0 }
 0xf65   :  { %v10291_v5 = vadd.f32 %v10145_v24, %v10041_v25 }
 0xf66   :  { %v10285_v15 = vpop.f32.mrf.mxu0 }
 0xf67   :  { %v10294_v45 = vadd.f32 %v10285_v15, %v10044_v10 }
 0xf68   :  { %v10287_v60 = vpop.f32.mrf.mxu0 }
 0xf69   :  { %v10295_v62 = vadd.f32 %v10287_v60, %v10045_v20 }
 0xf6a   :  { %v10393_v18 = vpop.f32.mrf.mxu1 }
 0xf6b   :  { %v10540_v27 = vadd.f32 %v10393_v18, %v10290_v16 }
 0xf6c   :  { %v10395_v14 = vpop.f32.mrf.mxu1 }
 0xf6d   :  { %v10553_v0 = vadd.f32 %v10551_v43, %v10540_v27  ;;  %v10541_v41 = vadd.f32 %v10395_v14, %v10291_v5 }
 0xf6f   :  { %10559 = vst [vmem:[%s13463_s4] sm:$0xff] %v10553_v0  ;;  %v10554_v63 = vadd.f32 %v10551_v43, %v10541_v41  ;;  %v10464_v57 = vpop.f32.mrf.mxu0 }
 0xf70   :  { %v10542_v58 = vadd.f32 %v10464_v57, %v10292_v30 }
 0xf71   :  { %10560 = vst [vmem:[%s13463_s4 + $0x8] sm:$0xff] %v10554_v63  ;;  %v10466_v53 = vpop.f32.mrf.mxu0 }
 0xf72   :  { %v10555_v46 = vadd.f32 %v10551_v43, %v10542_v58  ;;  %v10543_v56 = vadd.f32 %v10466_v53, %v10293_v8 }
 0xf73   :  { %v10535_v50 = vpop.f32.mrf.mxu1 }
 0xf74   :  { %10561 = vst [vmem:[%s13463_s4 + $0x10] sm:$0xff] %v10555_v46  ;;  %v10556_v48 = vadd.f32 %v10551_v43, %v10543_v56  ;;  %v10544_v31 = vadd.f32 %v10535_v50, %v10294_v45 }
 0xf75   :  { %v10537_v1 = vpop.f32.mrf.mxu1 }
 0xf76   :  { %10562 = vst [vmem:[%s13463_s4 + $0x18] sm:$0xff] %v10556_v48  ;;  %v10557_v6 = vadd.f32 %v10551_v43, %v10544_v31  ;;  %v10545_v51 = vadd.f32 %v10537_v1, %v10295_v62 }
 0xf78   :  { %10563 = vst [vmem:[%s13463_s4 + $0x20] sm:$0xff] %v10557_v6  ;;  %v10558_v9 = vadd.f32 %v10551_v43, %v10545_v51 }
 0xf7a   :  { %10564 = vst [vmem:[%s13463_s4 + $0x28] sm:$0xff] %v10558_v9 }

</bundles_post_ra>
